<compile_context>
chip_gen: v7x
topology: tpu7x:2x2x1
jax: 0.10.0
libtpu: 0.0.40
codegen_flags: <defaults>
</compile_context>

<pallas_src>
from functools import partial

import jax
import jax.numpy as jnp
from jax.experimental import pallas as pl
from jax.experimental.pallas import tpu as pltpu


def _mha_kernel(q_in, k_in, v_in,
                wq_t, bq, wk_t, bk, wv_t, bv, wo_t, bo, gamma, beta,
                *out_and_scratch, with_attn):
    # Grid = (batch, q_tile, head). Each step handles one head for one query
    # tile of one batch element; the head axis is the reduction axis for the
    # output-projection accumulator.
    if with_attn:
        out_ref, attn_ref, acc_ref = out_and_scratch
    else:
        out_ref, acc_ref = out_and_scratch
        attn_ref = None

    h = pl.program_id(2)
    last_h = pl.num_programs(2) - 1

    op_dtype = q_in.dtype            # MXU operand dtype (bf16 stays bf16)

    Qt = q_in[0]                     # (Tq, D)
    K = k_in[0]                      # (S, D)
    V = v_in[0]                      # (S, D)

    # Per-head projections: weights arrive pre-transposed (D, d_k) column
    # slices for this head, already cast to op_dtype; 1/sqrt(d_k) is folded
    # into wq_t / bq. Accumulate in f32, add f32 bias, then cast the operands
    # of the downstream matmuls back to op_dtype for native MXU rate.
    q = (jnp.dot(Qt, wq_t[...], preferred_element_type=jnp.float32)
         + bq[...]).astype(op_dtype)                                   # (Tq, d_k)
    k = (jnp.dot(K, wk_t[...], preferred_element_type=jnp.float32)
         + bk[...]).astype(op_dtype)                                   # (S, d_k)
    v = (jnp.dot(V, wv_t[...], preferred_element_type=jnp.float32)
         + bv[...]).astype(op_dtype)                                   # (S, d_k)

    # Scores q . k^T without materializing a transpose: contract last dims.
    s = jax.lax.dot_general(q, k, (((1,), (1,)), ((), ())),
                            preferred_element_type=jnp.float32)        # (Tq, S)

    # Numerically-stable softmax in f32; exact reciprocal (rows sum to 1
    # within f32 rounding — review correctness concern).
    # TODO(synk): mask argument of the PyTorch forward is None in this setup.
    s = s - jnp.max(s, axis=-1, keepdims=True)
    p = jnp.exp(s)
    p = p * pl.reciprocal(jnp.sum(p, axis=-1, keepdims=True), approx=False)

    if attn_ref is not None:
        attn_ref[0, 0] = p.astype(attn_ref.dtype)

    head = jnp.dot(p.astype(op_dtype), v,
                   preferred_element_type=jnp.float32)                 # (Tq, d_k)

    # Initialize the accumulator once per (batch, q_tile) with the residual
    # and the (once-only) output-projection bias.
    @pl.when(h == 0)
    def _():
        acc_ref[...] = Qt.astype(jnp.float32) + bo[...]

    # Output projection accumulated across heads:
    #   concat(head_0..head_{H-1}) @ Wo^T == sum_h head_h @ Wo^T[h*d_k:(h+1)*d_k, :]
    acc_ref[...] += jnp.dot(head.astype(op_dtype), wo_t[...],
                            preferred_element_type=jnp.float32)

    # LayerNorm(eps=1e-6) and writeback on the last head.
    @pl.when(h == last_h)
    def _():
        o = acc_ref[...]
        mean = jnp.mean(o, axis=-1, keepdims=True)
        var = jnp.mean((o - mean) ** 2, axis=-1, keepdims=True)
        normed = (o - mean) * jax.lax.rsqrt(var + 1e-6)
        out_ref[0] = (normed * gamma[...] + beta[...]).astype(out_ref.dtype)


def multihead_attention(Q, K, V, params, n_heads, *,
                        q_tile=None, return_attn=True, attn_dtype=None):
    B, S, D = Q.shape
    assert D % n_heads == 0
    d_k = D // n_heads
    # TODO(synk): for d_k < 128 (e.g. BERT-style 64), pack 2+ heads per grid
    # step (or pad) so the last block dim stays a multiple of 128.
    assert d_k % 128 == 0, "this kernel requires d_k to be a multiple of 128"

    if q_tile is None:
        q_tile = min(S, 256)
    assert S % q_tile == 0
    nq = S // q_tile

    wq, bq, wk, bk, wv, bv, wo, bo, gamma, beta = params
    op_dtype = Q.dtype
    attn_dtype = attn_dtype or op_dtype

    # Host-side weight prep: transpose once (PyTorch nn.Linear stores (out, in)),
    # fold the attention temperature into the Q projection, and cast weights to
    # the activation dtype so bf16 activations get native-rate bf16 matmuls.
    # Biases / gamma / beta stay f32 (all elementwise math is f32 in-kernel).
    scale = 1.0 / (d_k ** 0.5)
    wq_t = (wq * scale).T.astype(op_dtype)   # (D, H*d_k)
    wk_t = wk.T.astype(op_dtype)
    wv_t = wv.T.astype(op_dtype)
    wo_t = wo.T.astype(op_dtype)             # (H*d_k, D)
    bq_s = (bq * scale).astype(jnp.float32)  # (1, H*d_k)
    bk_f = bk.astype(jnp.float32)
    bv_f = bv.astype(jnp.float32)
    bo_f = bo.astype(jnp.float32)
    gamma_f = gamma.astype(jnp.float32)
    beta_f = beta.astype(jnp.float32)

    q_spec = pl.BlockSpec((1, q_tile, D), lambda b, qi, h: (b, qi, 0))
    kv_spec = pl.BlockSpec((1, S, D), lambda b, qi, h: (b, 0, 0))
    wqkv_spec = pl.BlockSpec((D, d_k), lambda b, qi, h: (0, h))     # head-h cols
    bqkv_spec = pl.BlockSpec((1, d_k), lambda b, qi, h: (0, h))
    wo_spec = pl.BlockSpec((d_k, D), lambda b, qi, h: (h, 0))       # head-h rows
    d_spec = pl.BlockSpec((1, D), lambda b, qi, h: (0, 0))          # bo, gamma, beta
    out_spec = pl.BlockSpec((1, q_tile, D), lambda b, qi, h: (b, qi, 0))
    attn_spec = pl.BlockSpec((1, 1, q_tile, S), lambda b, qi, h: (b, h, qi, 0))

    if return_attn:
        out_shape = (jax.ShapeDtypeStruct((B, S, D), Q.dtype),
                     jax.ShapeDtypeStruct((B, n_heads, S, S), attn_dtype))
        out_specs = (out_spec, attn_spec)
    else:
        out_shape = jax.ShapeDtypeStruct((B, S, D), Q.dtype)
        out_specs = out_spec

    result = pl.pallas_call(
        partial(_mha_kernel, with_attn=return_attn),
        out_shape=out_shape,
        grid=(B, nq, n_heads),
        in_specs=[q_spec, kv_spec, kv_spec,
                  wqkv_spec, bqkv_spec,     # q projection (scale folded in)
                  wqkv_spec, bqkv_spec,     # k projection
                  wqkv_spec, bqkv_spec,     # v projection
                  wo_spec, d_spec,          # output projection
                  d_spec, d_spec],          # layer-norm gamma, beta
        out_specs=out_specs,
        scratch_shapes=[pltpu.VMEM((q_tile, D), jnp.float32)],
        compiler_params=pltpu.CompilerParams(
            # batch and query-tile axes are independent (megacore-shardable on
            # v7x even for B=1); the head axis carries the output-projection
            # accumulator so it must be "arbitrary".
            dimension_semantics=("parallel", "parallel", "arbitrary"),
            # v5e scoped default is only 16 MiB; 32 MiB is also safe on v7x
            # (64 MiB physical).
            vmem_limit_bytes=32 * 1024 * 1024,
        ),
    )(Q, K, V, wq_t, bq_s, wk_t, bk_f, wv_t, bv_f, wo_t, bo_f, gamma_f, beta_f)

    if return_attn:
        return result
    return result, None


def init_params(key, d_model):
    # Deterministic synthetic parameters (PyTorch nn.Linear-shaped: (out, in)).
    ks = jax.random.split(key, 8)
    lim = 1.0 / (d_model ** 0.5)

    def lin(kw, kb):
        w = jax.random.uniform(kw, (d_model, d_model), jnp.float32, -lim, lim)
        b = jax.random.uniform(kb, (1, d_model), jnp.float32, -lim, lim)
        return w, b

    wq, bq = lin(ks[0], ks[1])
    wk, bk = lin(ks[2], ks[3])
    wv, bv = lin(ks[4], ks[5])
    wo, bo = lin(ks[6], ks[7])
    gamma = jnp.ones((1, d_model), jnp.float32)   # LayerNorm default init
    beta = jnp.zeros((1, d_model), jnp.float32)
    return (wq, bq, wk, bk, wv, bv, wo, bo, gamma, beta)


def reference(Q, K, V, params, n_heads):
    # Pure-JAX reference mirroring the PyTorch module for a sanity check.
    wq, bq, wk, bk, wv, bv, wo, bo, gamma, beta = params
    B, S, D = Q.shape
    d_k = D // n_heads

    def proj(x, w, b):
        return (x @ w.T + b).reshape(B, S, n_heads, d_k).transpose(0, 2, 1, 3)

    q, k, v = proj(Q, wq, bq), proj(K, wk, bk), proj(V, wv, bv)
    s = jnp.einsum("bhqd,bhkd->bhqk", q, k) / (d_k ** 0.5)
    attn = jax.nn.softmax(s, axis=-1)
    o = jnp.einsum("bhqk,bhkd->bhqd", attn, v)
    o = o.transpose(0, 2, 1, 3).reshape(B, S, D)
    o = o @ wo.T + bo + Q
    mean = o.mean(-1, keepdims=True)
    var = ((o - mean) ** 2).mean(-1, keepdims=True)
    out = (o - mean) / jnp.sqrt(var + 1e-6) * gamma + beta
    return out, attn


if __name__ == "__main__":
    # Small but lane-dense shapes: S, D multiples of 128; d_k = D // H = 128.
    B, S, D, H = 2, 128, 256, 2

    key = jax.random.PRNGKey(0)
    kq, kk, kv, kp = jax.random.split(key, 4)
    Q = jax.random.normal(kq, (B, S, D), jnp.float32)
    K = jax.random.normal(kk, (B, S, D), jnp.float32)
    V = jax.random.normal(kv, (B, S, D), jnp.float32)
    params = init_params(kp, D)

    # Full-semantics path (returns attention probabilities like the module).
    out, attn = multihead_attention(Q, K, V, params, H, return_attn=True)
    jax.block_until_ready((out, attn))

    # Fast path: skips the S^2 attention writeback entirely.
    out_fast, _ = multihead_attention(Q, K, V, params, H, return_attn=False)
    jax.block_until_ready(out_fast)

    out_ref, attn_ref = reference(Q, K, V, params, H)
    assert jnp.allclose(out, out_ref, atol=2e-3, rtol=2e-3)
    assert jnp.allclose(attn, attn_ref, atol=2e-3, rtol=2e-3)
    assert jnp.allclose(out_fast, out_ref, atol=2e-3, rtol=2e-3)

    print("KERNEL_OK")
</pallas_src>

<mosaic_0001>
module attributes {stable_mosaic.version = 11 : i64} {
  func.func @_mha_kernel(%arg0: i32, %arg1: i32, %arg2: i32, %arg3: memref<1x128x256xf32, #tpu.memory_space<vmem>>, %arg4: memref<1x128x256xf32, #tpu.memory_space<vmem>>, %arg5: memref<1x128x256xf32, #tpu.memory_space<vmem>>, %arg6: memref<256x128xf32, #tpu.memory_space<vmem>>, %arg7: memref<1x128xf32, #tpu.memory_space<vmem>>, %arg8: memref<256x128xf32, #tpu.memory_space<vmem>>, %arg9: memref<1x128xf32, #tpu.memory_space<vmem>>, %arg10: memref<256x128xf32, #tpu.memory_space<vmem>>, %arg11: memref<1x128xf32, #tpu.memory_space<vmem>>, %arg12: memref<128x256xf32, #tpu.memory_space<vmem>>, %arg13: memref<1x256xf32, #tpu.memory_space<vmem>>, %arg14: memref<1x256xf32, #tpu.memory_space<vmem>>, %arg15: memref<1x256xf32, #tpu.memory_space<vmem>>, %arg16: memref<1x128x256xf32, #tpu.memory_space<vmem>>, %arg17: memref<1x1x128x128xf32, #tpu.memory_space<vmem>>, %arg18: memref<128x256xf32, #tpu.memory_space<vmem>>) attributes {dimension_semantics = [#tpu.dimension_semantics<parallel>, #tpu.dimension_semantics<parallel>, #tpu.dimension_semantics<arbitrary>], iteration_bounds = array<i64: 2, 1, 2>, scalar_prefetch = 0 : i64, scratch_operands = 1 : i64, tpu.core_type = #tpu.core_type<tc>, window_params = [{transform_indices = @transform_0, window_bounds = array<i64: 1, 128, 256>}, {transform_indices = @transform_1, window_bounds = array<i64: 1, 128, 256>}, {transform_indices = @transform_2, window_bounds = array<i64: 1, 128, 256>}, {transform_indices = @transform_3, window_bounds = array<i64: 256, 128>}, {transform_indices = @transform_4, window_bounds = array<i64: 1, 128>}, {transform_indices = @transform_5, window_bounds = array<i64: 256, 128>}, {transform_indices = @transform_6, window_bounds = array<i64: 1, 128>}, {transform_indices = @transform_7, window_bounds = array<i64: 256, 128>}, {transform_indices = @transform_8, window_bounds = array<i64: 1, 128>}, {transform_indices = @transform_9, window_bounds = array<i64: 128, 256>}, {pipeline_mode = #tpu.pipeline_mode<synchronous>, transform_indices = @transform_10, window_bounds = array<i64: 1, 256>}, {pipeline_mode = #tpu.pipeline_mode<synchronous>, transform_indices = @transform_11, window_bounds = array<i64: 1, 256>}, {pipeline_mode = #tpu.pipeline_mode<synchronous>, transform_indices = @transform_12, window_bounds = array<i64: 1, 256>}, {transform_indices = @transform_13, window_bounds = array<i64: 1, 128, 256>}, {transform_indices = @transform_14, window_bounds = array<i64: 1, 1, 128, 128>}]} {
    %c0 = arith.constant 0 : index
    %c0_0 = arith.constant 0 : index
    %c0_1 = arith.constant 0 : index
    %0 = vector.load %arg3[%c0, %c0_0, %c0_1] : memref<1x128x256xf32, #tpu.memory_space<vmem>>, vector<1x128x256xf32>
    %1 = vector.shape_cast %0 : vector<1x128x256xf32> to vector<128x256xf32>
    %c0_2 = arith.constant 0 : index
    %c0_3 = arith.constant 0 : index
    %c0_4 = arith.constant 0 : index
    %2 = vector.load %arg4[%c0_2, %c0_3, %c0_4] : memref<1x128x256xf32, #tpu.memory_space<vmem>>, vector<1x128x256xf32>
    %3 = vector.shape_cast %2 : vector<1x128x256xf32> to vector<128x256xf32>
    %c0_5 = arith.constant 0 : index
    %c0_6 = arith.constant 0 : index
    %c0_7 = arith.constant 0 : index
    %4 = vector.load %arg5[%c0_5, %c0_6, %c0_7] : memref<1x128x256xf32, #tpu.memory_space<vmem>>, vector<1x128x256xf32>
    %5 = vector.shape_cast %4 : vector<1x128x256xf32> to vector<128x256xf32>
    %c0_8 = arith.constant 0 : index
    %c0_9 = arith.constant 0 : index
    %6 = vector.load %arg6[%c0_8, %c0_9] : memref<256x128xf32, #tpu.memory_space<vmem>>, vector<256x128xf32>
    %cst = arith.constant dense<0.000000e+00> : vector<128x128xf32>
    %7 = tpu.matmul %1, %6, %cst {dimension_numbers = #tpu.dot_dimension_numbers<[1], [0], [0], [1], [0, 0, 1, 1], [], []>} : vector<128x256xf32>, vector<256x128xf32>, vector<128x128xf32> -> vector<128x128xf32>
    %c0_10 = arith.constant 0 : index
    %c0_11 = arith.constant 0 : index
    %8 = vector.load %arg7[%c0_10, %c0_11] : memref<1x128xf32, #tpu.memory_space<vmem>>, vector<1x128xf32>
    %9 = vector.broadcast %8 : vector<1x128xf32> to vector<128x128xf32>
    %10 = arith.addf %7, %9 : vector<128x128xf32>
    %c0_12 = arith.constant 0 : index
    %c0_13 = arith.constant 0 : index
    %11 = vector.load %arg8[%c0_12, %c0_13] : memref<256x128xf32, #tpu.memory_space<vmem>>, vector<256x128xf32>
    %cst_14 = arith.constant dense<0.000000e+00> : vector<128x128xf32>
    %12 = tpu.matmul %3, %11, %cst_14 {dimension_numbers = #tpu.dot_dimension_numbers<[1], [0], [0], [1], [0, 0, 1, 1], [], []>} : vector<128x256xf32>, vector<256x128xf32>, vector<128x128xf32> -> vector<128x128xf32>
    %c0_15 = arith.constant 0 : index
    %c0_16 = arith.constant 0 : index
    %13 = vector.load %arg9[%c0_15, %c0_16] : memref<1x128xf32, #tpu.memory_space<vmem>>, vector<1x128xf32>
    %14 = vector.broadcast %13 : vector<1x128xf32> to vector<128x128xf32>
    %15 = arith.addf %12, %14 : vector<128x128xf32>
    %c0_17 = arith.constant 0 : index
    %c0_18 = arith.constant 0 : index
    %16 = vector.load %arg10[%c0_17, %c0_18] : memref<256x128xf32, #tpu.memory_space<vmem>>, vector<256x128xf32>
    %cst_19 = arith.constant dense<0.000000e+00> : vector<128x128xf32>
    %17 = tpu.matmul %5, %16, %cst_19 {dimension_numbers = #tpu.dot_dimension_numbers<[1], [0], [0], [1], [0, 0, 1, 1], [], []>} : vector<128x256xf32>, vector<256x128xf32>, vector<128x128xf32> -> vector<128x128xf32>
    %c0_20 = arith.constant 0 : index
    %c0_21 = arith.constant 0 : index
    %18 = vector.load %arg11[%c0_20, %c0_21] : memref<1x128xf32, #tpu.memory_space<vmem>>, vector<1x128xf32>
    %19 = vector.broadcast %18 : vector<1x128xf32> to vector<128x128xf32>
    %20 = arith.addf %17, %19 : vector<128x128xf32>
    %cst_22 = arith.constant dense<0.000000e+00> : vector<128x128xf32>
    %21 = tpu.matmul %10, %15, %cst_22 {dimension_numbers = #tpu.dot_dimension_numbers<[1], [1], [0], [0], [0, 0, 1, 0], [], []>} : vector<128x128xf32>, vector<128x128xf32>, vector<128x128xf32> -> vector<128x128xf32>
    %cst_23 = arith.constant dense<0xFF800000> : vector<128xf32>
    %22 = vector.multi_reduction <maximumf>, %21, %cst_23 [1] : vector<128x128xf32> to vector<128xf32>
    %23 = vector.shape_cast %22 : vector<128xf32> to vector<128x1xf32>
    %24 = vector.broadcast %23 : vector<128x1xf32> to vector<128x128xf32>
    %25 = arith.subf %21, %24 : vector<128x128xf32>
    %26 = math.exp %25 : vector<128x128xf32>
    %cst_24 = arith.constant dense<0.000000e+00> : vector<128xf32>
    %27 = vector.multi_reduction <add>, %26, %cst_24 [1] : vector<128x128xf32> to vector<128xf32>
    %28 = vector.shape_cast %27 : vector<128xf32> to vector<128x1xf32>
    %29 = tpu.reciprocal %28 : vector<128x1xf32> -> vector<128x1xf32>
    %30 = vector.broadcast %29 : vector<128x1xf32> to vector<128x128xf32>
    %31 = arith.mulf %26, %30 : vector<128x128xf32>
    %c0_25 = arith.constant 0 : index
    %c0_26 = arith.constant 0 : index
    %c0_27 = arith.constant 0 : index
    %c0_28 = arith.constant 0 : index
    %32 = vector.load %arg17[%c0_25, %c0_26, %c0_27, %c0_28] : memref<1x1x128x128xf32, #tpu.memory_space<vmem>>, vector<1x1x128x128xf32>
    %33 = vector.shape_cast %32 : vector<1x1x128x128xf32> to vector<128x128xf32>
    %34 = vector.shape_cast %31 : vector<128x128xf32> to vector<1x1x128x128xf32>
    tpu.vector_store %arg17[%c0_25, %c0_26, %c0_27, %c0_28], %34 {strides = array<i32>} : memref<1x1x128x128xf32, #tpu.memory_space<vmem>>, vector<1x1x128x128xf32>,
    %cst_29 = arith.constant dense<0.000000e+00> : vector<128x128xf32>
    %35 = tpu.matmul %31, %20, %cst_29 {dimension_numbers = #tpu.dot_dimension_numbers<[1], [0], [0], [1], [0, 0, 1, 1], [], []>} : vector<128x128xf32>, vector<128x128xf32>, vector<128x128xf32> -> vector<128x128xf32>
    %c0_i32 = arith.constant 0 : i32
    %36 = arith.cmpi eq, %arg2, %c0_i32 : i32
    %37 = arith.extui %36 : i1 to i32
    %c0_i32_30 = arith.constant 0 : i32
    %38 = arith.cmpi ne, %37, %c0_i32_30 : i32
    scf.if %38 {
      %c0_39 = arith.constant 0 : index
      %c0_40 = arith.constant 0 : index
      %47 = vector.load %arg13[%c0_39, %c0_40] : memref<1x256xf32, #tpu.memory_space<vmem>>, vector<1x256xf32>
      %48 = vector.broadcast %47 : vector<1x256xf32> to vector<128x256xf32>
      %49 = arith.addf %1, %48 : vector<128x256xf32>
      %c0_41 = arith.constant 0 : index
      %c0_42 = arith.constant 0 : index
      %50 = vector.load %arg18[%c0_41, %c0_42] : memref<128x256xf32, #tpu.memory_space<vmem>>, vector<128x256xf32>
      tpu.vector_store %arg18[%c0_41, %c0_42], %49 {strides = array<i32>} : memref<128x256xf32, #tpu.memory_space<vmem>>, vector<128x256xf32>,
    } else {
    }
    %c0_31 = arith.constant 0 : index
    %c0_32 = arith.constant 0 : index
    %39 = vector.load %arg18[%c0_31, %c0_32] : memref<128x256xf32, #tpu.memory_space<vmem>>, vector<128x256xf32>
    %c0_33 = arith.constant 0 : index
    %c0_34 = arith.constant 0 : index
    %40 = vector.load %arg12[%c0_33, %c0_34] : memref<128x256xf32, #tpu.memory_space<vmem>>, vector<128x256xf32>
    %cst_35 = arith.constant dense<0.000000e+00> : vector<128x256xf32>
    %41 = tpu.matmul %35, %40, %cst_35 {dimension_numbers = #tpu.dot_dimension_numbers<[1], [0], [0], [1], [0, 0, 1, 1], [], []>} : vector<128x128xf32>, vector<128x256xf32>, vector<128x256xf32> -> vector<128x256xf32>
    %42 = arith.addf %39, %41 : vector<128x256xf32>
    %c0_36 = arith.constant 0 : index
    %c0_37 = arith.constant 0 : index
    %43 = vector.load %arg18[%c0_36, %c0_37] : memref<128x256xf32, #tpu.memory_space<vmem>>, vector<128x256xf32>
    tpu.vector_store %arg18[%c0_36, %c0_37], %42 {strides = array<i32>} : memref<128x256xf32, #tpu.memory_space<vmem>>, vector<128x256xf32>,
    %c1_i32 = arith.constant 1 : i32
    %44 = arith.cmpi eq, %arg2, %c1_i32 : i32
    %45 = arith.extui %44 : i1 to i32
    %c0_i32_38 = arith.constant 0 : i32
    %46 = arith.cmpi ne, %45, %c0_i32_38 : i32
    scf.if %46 {
      %c0_39 = arith.constant 0 : index
      %c0_40 = arith.constant 0 : index
      %47 = vector.load %arg18[%c0_39, %c0_40] : memref<128x256xf32, #tpu.memory_space<vmem>>, vector<128x256xf32>
      %cst_41 = arith.constant dense<0.000000e+00> : vector<128xf32>
      %48 = vector.multi_reduction <add>, %47, %cst_41 [1] : vector<128x256xf32> to vector<128xf32>
      %49 = vector.shape_cast %48 : vector<128xf32> to vector<128x1xf32>
      %cst_42 = arith.constant 2.560000e+02 : f32
      %50 = vector.broadcast %cst_42 : f32 to vector<128x1xf32>
      %51 = arith.divf %49, %50 : vector<128x1xf32>
      %52 = vector.broadcast %51 : vector<128x1xf32> to vector<128x256xf32>
      %53 = arith.subf %47, %52 : vector<128x256xf32>
      %54 = arith.mulf %53, %53 : vector<128x256xf32>
      %cst_43 = arith.constant dense<0.000000e+00> : vector<128xf32>
      %55 = vector.multi_reduction <add>, %54, %cst_43 [1] : vector<128x256xf32> to vector<128xf32>
      %56 = vector.shape_cast %55 : vector<128xf32> to vector<128x1xf32>
      %cst_44 = arith.constant 2.560000e+02 : f32
      %57 = vector.broadcast %cst_44 : f32 to vector<128x1xf32>
      %58 = arith.divf %56, %57 : vector<128x1xf32>
      %59 = vector.broadcast %51 : vector<128x1xf32> to vector<128x256xf32>
      %60 = arith.subf %47, %59 : vector<128x256xf32>
      %cst_45 = arith.constant 9.99999997E-7 : f32
      %61 = vector.broadcast %cst_45 : f32 to vector<128x1xf32>
      %62 = arith.addf %58, %61 : vector<128x1xf32>
      %63 = math.rsqrt %62 : vector<128x1xf32>
      %64 = vector.broadcast %63 : vector<128x1xf32> to vector<128x256xf32>
      %65 = arith.mulf %60, %64 : vector<128x256xf32>
      %c0_46 = arith.constant 0 : index
      %c0_47 = arith.constant 0 : index
      %66 = vector.load %arg14[%c0_46, %c0_47] : memref<1x256xf32, #tpu.memory_space<vmem>>, vector<1x256xf32>
      %67 = vector.broadcast %66 : vector<1x256xf32> to vector<128x256xf32>
      %68 = arith.mulf %65, %67 : vector<128x256xf32>
      %c0_48 = arith.constant 0 : index
      %c0_49 = arith.constant 0 : index
      %69 = vector.load %arg15[%c0_48, %c0_49] : memref<1x256xf32, #tpu.memory_space<vmem>>, vector<1x256xf32>
      %70 = vector.broadcast %69 : vector<1x256xf32> to vector<128x256xf32>
      %71 = arith.addf %68, %70 : vector<128x256xf32>
      %c0_50 = arith.constant 0 : index
      %c0_51 = arith.constant 0 : index
      %c0_52 = arith.constant 0 : index
      %72 = vector.load %arg16[%c0_50, %c0_51, %c0_52] : memref<1x128x256xf32, #tpu.memory_space<vmem>>, vector<1x128x256xf32>
      %73 = vector.shape_cast %72 : vector<1x128x256xf32> to vector<128x256xf32>
      %74 = vector.shape_cast %71 : vector<128x256xf32> to vector<1x128x256xf32>
      tpu.vector_store %arg16[%c0_50, %c0_51, %c0_52], %74 {strides = array<i32>} : memref<1x128x256xf32, #tpu.memory_space<vmem>>, vector<1x128x256xf32>,
    } else {
    }
    return
  }
  func.func @transform_0(%arg0: i32, %arg1: i32, %arg2: i32) -> (i32, i32, i32) {
    %c0_i32 = arith.constant 0 : i32
    %c0_i32_0 = arith.constant 0 : i32
    return %arg0, %arg1, %c0_i32 : i32, i32, i32
  }
  func.func @transform_1(%arg0: i32, %arg1: i32, %arg2: i32) -> (i32, i32, i32) {
    %c0_i32 = arith.constant 0 : i32
    %c0_i32_0 = arith.constant 0 : i32
    %c0_i32_1 = arith.constant 0 : i32
    return %arg0, %c0_i32, %c0_i32_0 : i32, i32, i32
  }
  func.func @transform_2(%arg0: i32, %arg1: i32, %arg2: i32) -> (i32, i32, i32) {
    %c0_i32 = arith.constant 0 : i32
    %c0_i32_0 = arith.constant 0 : i32
    %c0_i32_1 = arith.constant 0 : i32
    return %arg0, %c0_i32, %c0_i32_0 : i32, i32, i32
  }
  func.func @transform_3(%arg0: i32, %arg1: i32, %arg2: i32) -> (i32, i32) {
    %c0_i32 = arith.constant 0 : i32
    %c0_i32_0 = arith.constant 0 : i32
    return %c0_i32, %arg2 : i32, i32
  }
  func.func @transform_4(%arg0: i32, %arg1: i32, %arg2: i32) -> (i32, i32) {
    %c0_i32 = arith.constant 0 : i32
    %c0_i32_0 = arith.constant 0 : i32
    return %c0_i32, %arg2 : i32, i32
  }
  func.func @transform_5(%arg0: i32, %arg1: i32, %arg2: i32) -> (i32, i32) {
    %c0_i32 = arith.constant 0 : i32
    %c0_i32_0 = arith.constant 0 : i32
    return %c0_i32, %arg2 : i32, i32
  }
  func.func @transform_6(%arg0: i32, %arg1: i32, %arg2: i32) -> (i32, i32) {
    %c0_i32 = arith.constant 0 : i32
    %c0_i32_0 = arith.constant 0 : i32
    return %c0_i32, %arg2 : i32, i32
  }
  func.func @transform_7(%arg0: i32, %arg1: i32, %arg2: i32) -> (i32, i32) {
    %c0_i32 = arith.constant 0 : i32
    %c0_i32_0 = arith.constant 0 : i32
    return %c0_i32, %arg2 : i32, i32
  }
  func.func @transform_8(%arg0: i32, %arg1: i32, %arg2: i32) -> (i32, i32) {
    %c0_i32 = arith.constant 0 : i32
    %c0_i32_0 = arith.constant 0 : i32
    return %c0_i32, %arg2 : i32, i32
  }
  func.func @transform_9(%arg0: i32, %arg1: i32, %arg2: i32) -> (i32, i32) {
    %c0_i32 = arith.constant 0 : i32
    %c0_i32_0 = arith.constant 0 : i32
    return %arg2, %c0_i32 : i32, i32
  }
  func.func @transform_10(%arg0: i32, %arg1: i32, %arg2: i32) -> (i32, i32) {
    %c0_i32 = arith.constant 0 : i32
    %c0_i32_0 = arith.constant 0 : i32
    %c0_i32_1 = arith.constant 0 : i32
    return %c0_i32, %c0_i32_0 : i32, i32
  }
  func.func @transform_11(%arg0: i32, %arg1: i32, %arg2: i32) -> (i32, i32) {
    %c0_i32 = arith.constant 0 : i32
    %c0_i32_0 = arith.constant 0 : i32
    %c0_i32_1 = arith.constant 0 : i32
    return %c0_i32, %c0_i32_0 : i32, i32
  }
  func.func @transform_12(%arg0: i32, %arg1: i32, %arg2: i32) -> (i32, i32) {
    %c0_i32 = arith.constant 0 : i32
    %c0_i32_0 = arith.constant 0 : i32
    %c0_i32_1 = arith.constant 0 : i32
    return %c0_i32, %c0_i32_0 : i32, i32
  }
  func.func @transform_13(%arg0: i32, %arg1: i32, %arg2: i32) -> (i32, i32, i32) {
    %c0_i32 = arith.constant 0 : i32
    %c0_i32_0 = arith.constant 0 : i32
    return %arg0, %arg1, %c0_i32 : i32, i32, i32
  }
  func.func @transform_14(%arg0: i32, %arg1: i32, %arg2: i32) -> (i32, i32, i32, i32) {
    %c0_i32 = arith.constant 0 : i32
    %c0_i32_0 = arith.constant 0 : i32
    return %arg0, %arg2, %arg1, %c0_i32 : i32, i32, i32, i32
  }
}

</mosaic_0001>

<bundles_post_ra>
// kernel: tpu_custom_call.1
= control target key start
LH: loop header
LB: loop body
LE: loop exit
PB: predicated region body
PF: predicated region fallthrough
CT: control target
= control target key end

     0   :  { %s6169_s0 = inlined_call_operand.hbm [shape: f32[2,128,256], index: 0, kind: input, shape index: {}]   ;;  %s6170_s1 = inlined_call_operand.hbm [shape: f32[2,128,256], index: 1, kind: input, shape index: {}]   ;;  %s6171_s2 = inlined_call_operand.hbm [shape: f32[2,128,256], index: 2, kind: input, shape index: {}]   ;;  %s6172_s3 = inlined_call_operand.hbm [shape: f32[256,256], index: 3, kind: input, shape index: {}]   ;;  %s6173_s4 = inlined_call_operand.vmem [shape: f32[1,256], index: 4, kind: input, shape index: {}]   ;;  %s6174_s5 = inlined_call_operand.hbm [shape: f32[256,256], index: 5, kind: input, shape index: {}]   ;;  %s6175_s6 = inlined_call_operand.vmem [shape: f32[1,256], index: 6, kind: input, shape index: {}]   ;;  %s6176_s7 = inlined_call_operand.hbm [shape: f32[256,256], index: 7, kind: input, shape index: {}]   ;;  %s6177_s8 = inlined_call_operand.vmem [shape: f32[1,256], index: 8, kind: input, shape index: {}]   ;;  %s6178_s9 = inlined_call_operand.hbm [shape: f32[256,256], index: 9, kind: input, shape index: {}]   ;;  %s6179_s10 = inlined_call_operand.vmem [shape: f32[1,256], index: 10, kind: input, shape index: {}]   ;;  %s6180_s11 = inlined_call_operand.vmem [shape: f32[1,256], index: 11, kind: input, shape index: {}]   ;;  %s6181_s12 = inlined_call_operand.vmem [shape: f32[1,256], index: 12, kind: input, shape index: {}]   ;;  %s6182_s13 = inlined_call_operand.hbm [shape: f32[2,128,256], index: 13, kind: output, shape index: {0}]   ;;  %s6183_s14 = inlined_call_operand.hbm [shape: f32[2,2,128,128], index: 14, kind: output, shape index: {1}]  }
   0x1   :  { %6239 = sst [smem:[#allocation48_spill]] %s6169_s0 }
   0x2   :  { %6240 = sst [smem:[#allocation49_spill]] %s6170_s1 }
   0x3   :  { %6241 = sst [smem:[#allocation50_spill]] %s6171_s2 }
   0x4   :  { %6242 = sst [smem:[#allocation51_spill]] %s6172_s3 }
   0x5   :  { %6243 = sst [smem:[#allocation52_spill]] %s6173_s4 }
   0x6   :  { %6244 = sst [smem:[#allocation53_spill]] %s6174_s5 }
   0x7   :  { %6245 = sst [smem:[#allocation54_spill]] %s6175_s6 }
   0x8   :  { %6246 = sst [smem:[#allocation55_spill]] %s6176_s7 }
   0x9   :  { %6247 = sst [smem:[#allocation56_spill]] %s6177_s8 }
   0xa   :  { %6248 = sst [smem:[#allocation57_spill]] %s6178_s9 }
   0xb   :  { %6249 = sst [smem:[#allocation58_spill]] %s6179_s10 }
   0xc   :  { %6250 = sst [smem:[#allocation59_spill]] %s6180_s11 }
   0xd   :  { %6251 = sst [smem:[#allocation60_spill]] %s6181_s12 }
   0xe   :  { %6252 = sst [smem:[#allocation61_spill]] %s6182_s13 }
   0xf   :  { %6253 = sst [smem:[#allocation62_spill]] %s6183_s14 }
  0x10   :  { %20 = vsyncpa [#allocation4], 0 }
  0x11   :  { %22 = vsyncpa [#allocation4 + $0x1], 0 }
  0x12   :  { %23 = vsyncpa [#allocation7], 0 }
  0x13   :  { %25 = vsyncpa [#allocation7 + $0x1], 0 }
  0x14   :  { %26 = vsyncpa [#allocation10], 0 }
  0x15   :  { %28 = vsyncpa [#allocation10 + $0x1], 0 }
  0x16   :  { %29 = vsyncpa [#allocation13], 0 }
  0x17   :  { %31 = vsyncpa [#allocation13 + $0x1], 0 }
  0x18   :  { %32 = vsyncpa [#allocation5], 0 }
  0x19   :  { %34 = vsyncpa [#allocation5 + $0x1], 0 }
  0x1a   :  { %35 = vsyncpa [#allocation17], 0 }
  0x1b   :  { %37 = vsyncpa [#allocation17 + $0x1], 0  ;;  %s4448_s29 = smov 0   ;;  %s4450_s30 = smov 0  }
  0x1c   :  { %s4452_s15 = smov 0   ;;  %s4454_s16 = smov 0  }
  0x1d   :  { %s4456_s17 = smov 0   ;;  %s4458_s18 = smov 0  }
  0x1e   :  { %s4460_s19 = smov 0   ;;  %s4462_s20 = smov 0  }
  0x1f   :  { %s4464_s21 = smov 0   ;;  %s4466_s22 = smov 0  }
  0x20   :  { %s4468_s23 = smov 0   ;;  %s4470_s24 = smov 0  }
  0x21   :  { %s4472_s25 = smov 0   ;;  %s4474_s26 = smov 0  }
  0x22 LB: > { %6254 = sst [smem:[#allocation24_spill]] %s4301_s29  ;;  %s4519_s27 = sadd.s32 4294967295, %s4353_s26   ;;  %s4353_s26 = sphi %s4474_s26, %s43_s26   ;;  %s4349_s25 = sphi %s4472_s25, %s6365_s25   ;;  %s4345_s24 = sphi %s4470_s24, %s6374_s24   ;;  %s4341_s23 = sphi %s4468_s23, %s6363_s23   ;;  %s4337_s22 = sphi %s4466_s22, %s6373_s22   ;;  %s4333_s21 = sphi %s4464_s21, %s6372_s21   ;;  %s4329_s20 = sphi %s4462_s20, %s6371_s20   ;;  %s4325_s19 = sphi %s4460_s19, %s6361_s19   ;;  %s4321_s18 = sphi %s4458_s18, %s6370_s18   ;;  %s4317_s17 = sphi %s4456_s17, %s6369_s17   ;;  %s4313_s16 = sphi %s4454_s16, %s6368_s16   ;;  %s4309_s15 = sphi %s4452_s15, %s6367_s15   ;;  %s4305_s30 = sphi %s4450_s30, %s6366_s30   ;;  %s4301_s29 = sphi %s4448_s29, %s6358_s29  }
  0x23   : > { %6255 = sst [smem:[#allocation25_spill]] %s4305_s30  ;;  %s3011_s28 = sadd.s32 4294967294, %s4353_s26  }
  0x24   : > { %6256 = sst [smem:[#allocation26_spill]] %s4317_s17  ;;  %p78_p0 = scmp.ne.s32.totalorder %s4333_s21, %s4329_s20 }
  0x25   : > { %6257 = sst [smem:[#allocation27_spill]] %s4325_s19  ;;  %p6203_p1 = scmp.eq.s32.totalorder %s4353_s26, 0 }
  0x26   : > { %6258 = sst [smem:[#allocation28_spill]] %s4329_s20  ;;  %p84_p2 = scmp.ne.s32.totalorder %s4329_s20, %s4325_s19 }
  0x27   : > { %6259 = sst [smem:[#allocation29_spill]] %s4337_s22  ;;  %p6188_p3 = scmp.eq.s32.totalorder %s4519_s27, 0 }
  0x28   : > { %6260 = sst [smem:[#allocation30_spill]] %s4341_s23  ;;  %p4532_p4 = por %p6203_p1, %p78_p0 }
  0x29   : > { %6261 = sst [smem:[#allocation31_spill]] %s4349_s25  ;;  %p407_p5 = scmp.eq.s32.totalorder %s4519_s27, 3 }
  0x2a   : > { %6262 = sst [smem:[#allocation32_spill]] %s4519_s27  ;;  %p4539_p6 = por %p6188_p3, %p84_p2 }
  0x2b   : > { %p413_p7 = scmp.eq.s32.totalorder %s3011_s28, 3  ;;  %p4543_p8 = por %p407_p5, %p78_p0 }
  0x2c   : > { %s6264_s14 = scalar_select %p4539_p6, 1, 0 }
  0x2d   : > { %s6266_s13 = scalar_select %p4543_p8, 1, 0 }
  0x2e   : > { %6265 = sst [smem:[#allocation33_spill]] %s6264_s14  ;;  %p436_p9 = scmp.ne.s32.totalorder %s4309_s15, %s4305_s30 }
  0x2f   : > { %6267 = sst [smem:[#allocation34_spill]] %s6266_s13  ;;  %p4549_p10 = por %p413_p7, %p84_p2 }
  0x30   : > { %p442_p11 = scmp.ne.s32.totalorder %s4305_s30, %s4301_s29  ;;  %p4555_p12 = por %p436_p9, %p407_p5 }
  0x31   : > { %s6268_s19 = scalar_select %p4549_p10, 1, 0 }
  0x32   : > { %s6270_s12 = scalar_select %p4555_p12, 1, 0 }
  0x33   : > { %6269 = sst [smem:[#allocation35_spill]] %s6268_s19  ;;  %p4559_p13 = por %p442_p11, %p413_p7 }
  0x34   : > { %6271 = sst [smem:[#allocation36_spill]] %s6270_s12  ;;  %p6202_p3 = scmp.lt.s32.totalorder %s4353_s26, 4 }
  0x35   : > { %s6272_s11 = scalar_select %p4559_p13, 1, 0 }
  0x36   : > { %s6198_s28 = sand.u32 1, %s4333_s21   ;;  %s4566_s10 = sshll.u32 %s4349_s25, 12 }
  0x37   : > { %6273 = sst [smem:[#allocation37_spill]] %s6272_s11  ;;  %s4570_s13 = sshll.u32 %s6198_s28, 8 }
  0x38   : > { %p4576_p0 = pnand %p6202_p3, %p4532_p4  ;;  %s4581_s19 = sand.u32 1, %s4353_s26  }
  0x39   : > { %s6275_s1 = sld [smem:[#allocation49_spill]]  ;;  %s500_s23 = scalar_lea.vmem [#allocation6], %s4570_s13 }
  0x3a   : > { %s6274_s29 = scalar_select %p4576_p0, 1, 0 }
  0x3b   : > { %s507_s28 = sshll.u32 %s500_s23, 4  ;;  %p4598_p5 = pneg %p4576_p0  ;;  %s4590_s28 = int_to_ptr.vmem [resolvable:$true] %s507_s28 }
  0x3d   : > { %s6276_s4 = scalar_select %p4598_p5, 1, 0 }
  0x3f   : > { %s4587_s30 = scalar_lea.hbm %s6275_s1, %s4566_s10  ;;  %s3958_s22 = scalar_lea.hbm %s6275_s1, 8192 }
  0x40   : > { %s3953_s6 = scalar_lea.hbm %s4587_s30, 4096  ;;  %p3959_p11 = scmp.lt.u32.totalorder %s4587_s30, %s6275_s1 }
  0x41   : > { %p3954_p4 = scmp.ne.s32.totalorder %s4587_s30, %s3953_s6  ;;  %p3960_p3 = scmp.lt.u32.totalorder %s3958_s22, %s3953_s6 }
  0x42   : > { %p3962_p2 = scmp.lt.u32.totalorder %s3953_s6, %s4587_s30 }
  0x43   : > { %p3956_p7 = pnand %p4598_p5, %p3954_p4  ;;  %p3961_p1 = por %p3960_p3, %p3959_p11 }
  0x45   : > { %p3957_p9 = pneg %p3956_p7  ;;  %p3963_p13 = por %p3962_p2, %p3961_p1 }
  0x47   : > { %p3964_p10 = pnand %p3963_p13, %p3957_p9 }
  0x49   : > { %3967 = shalt.err (!%p3964_p10)
}
  0x4a   : > { %s3968_s8 = scalar_lea.vmem %s4590_s28, 4096  ;;  %s4355_s11 = smov [#allocation6]  }
  0x4b   : > { %p3969_p4 = scmp.ne.s32.totalorder %s4590_s28, %s3968_s8  ;;  %s3973_s12 = sshll.u32 %s4355_s11, 4  ;;  %s3974_s12 = int_to_ptr.vmem [resolvable:$false] %s3973_s12 }
  0x4c   : > { %s3975_s14 = scalar_lea.vmem %s3974_s12, 8192  ;;  %p3976_p8 = scmp.lt.s32.totalorder %s4590_s28, %s3974_s12 }
  0x4d   : > { %p3971_p7 = pnand %p3969_p4, %p4598_p5  ;;  %p3977_p6 = scmp.lt.s32.totalorder %s3975_s14, %s3968_s8 }
  0x4f   : > { %p3972_p12 = pneg %p3971_p7  ;;  %p3978_p3 = por %p3977_p6, %p3976_p8 }
  0x51   : > { %p3979_p11 = pnand %p3978_p3, %p3972_p12 }
  0x53   : > { %3982 = shalt.err (!%p3979_p11)
}
  0x54   : > { %s6209_s6 = smov 256   ;;  %s6207_s8 = smov 16  }
  0x55   : > { %s6277_s22 = scalar_lea.sflag [#allocation7], %s4581_s19  ;;  %p636_p1 = scmp.lt.s32.totalorder %s4353_s26, 5 }
  0x56   : > { %3711 = dma.hbm_to_vmem [thread:$0]  (!%p4576_p0), %s4587_s30, 4096, %s4590_s28, %s6277_s22, %s6209_s6, %s6209_s6, %s6207_s8  }
  0x57   : > { %p6278_p6 = scmp.ge.s32.totalorder %s4353_s26, 1  ;;  %s55_s11 = sadd.s32 1, %s4345_s24 }
  0x58   : > { %s149_s12 = sadd.s32 1, %s4321_s18  ;;  %p56_p10 = scmp.ge.s32.totalorder %s55_s11, 2 }
  0x59   : > { %p4629_p8 = pnand %p6278_p6, %p636_p1  ;;  %p156_p12 = scmp.ne.s32.totalorder %s4321_s18, %s4317_s17 }
  0x5a   : > { %p162_p13 = scmp.ne.s32.totalorder %s4317_s17, %s4313_s16  ;;  %s426_s14 = sadd.s32 1, %s4309_s15 }
  0x5b   : > { %s6279_s23 = scalar_select %p4629_p8, 1, 0 }
  0x5c   : > { %s6376_s11 = smov (%p56_p10, %s55_s11), 0  ;;  %s6282_s30 = sadd.s32 1, %s4349_s25 }
  0x5d   : > { %6280 = sst [smem:[#allocation38_spill]] %s6279_s23  ;;  %s6378_s30 = smov (!%p56_p10, %s6282_s30), %s4349_s25 }
  0x5e   : > { %6281 = sst [smem:[#allocation39_spill]] %s6376_s11  ;;  %s146_s28 = ssub.s32 %s4345_s24, %s6376_s11 }
  0x5f   : > { %p6283_p2 = scmp.eq.s32.totalorder %s4353_s26, 0  ;;  %p64_p4 = scmp.ge.s32.totalorder %s6378_s30, 2 }
  0x60   : > { %p147_p7 = scmp.eq.s32.totalorder %s146_s28, 0  ;;  %p6285_p3 = scmp.eq.s32.totalorder %s4519_s27, 0 }
  0x61   : > { %p4649_p9 = por %p156_p12, %p6283_p2  ;;  %s6380_s30 = smov (%p64_p4, %s6378_s30), 0 }
  0x62   : > { %p4655_p11 = por %p162_p13, %p6285_p3  ;;  %6288 = sst [smem:[#allocation41_spill]] %s6380_s30 }
  0x63   : > { %s4662_s8 = scalar_select %p147_p7, %s4321_s18, %s149_s12  }
  0x64   : > { %s6286_s16 = scalar_select %p4655_p11, 1, 0 }
  0x65   : > { %6289 = sst [smem:[#allocation42_spill]] %s4662_s8  ;;  %s66_s6 = ssub.s32 %s4349_s25, %s6380_s30 }
  0x66   : > { %6287 = sst [smem:[#allocation40_spill]] %s6286_s16  ;;  %s540_s1 = sand.u32 1, %s4321_s18  }
  0x67   : > { %p69_p1 = scmp.eq.s32.totalorder %s66_s6, 0  ;;  %s421_s11 = sor.u32 %s146_s28, %s66_s6 }
  0x68   : > { %p424_p6 = scmp.eq.s32.totalorder %s421_s11, 0  ;;  %s4667_s17 = sshll.u32 %s540_s1, 8 }
  0x69   : > { %s6290_s27 = sadd.s32 1, %s4333_s21  ;;  %s4678_s23 = sshll.u32 %s4345_s24, 7 }
  0x6a   : > { %s4672_s20 = scalar_select %p69_p1, %s4333_s21, %s6290_s27  }
  0x6b   : > { %s4675_s16 = scalar_select %p424_p6, %s4309_s15, %s426_s14  }
  0x6c   : > { %6291 = sst [smem:[#allocation43_spill]] %s4672_s20  ;;  %s6292_s3 = sld [smem:[#allocation51_spill]] }
  0x6d   : > { %s542_s1 = scalar_lea.vmem [#allocation9], %s4667_s17  ;;  %p6293_p10 = scmp.lt.s32.totalorder %s4353_s26, 4 }
  0x6e   : > { %s548_s6 = sshll.u32 %s542_s1, 4  ;;  %s4687_s6 = int_to_ptr.vmem [resolvable:$true] %s548_s6 }
  0x6f   : > { %p4693_p12 = pnand %p6293_p10, %p4649_p9 }
  0x71   : > { %s6294_s27 = scalar_select %p4693_p12, 1, 0 }
  0x72   : > { %s4684_s12 = scalar_lea.hbm %s6292_s3, %s4678_s23  ;;  %p4702_p2 = pneg %p4693_p12 }
  0x73   : > { %s3983_s14 = scalar_lea.hbm %s4684_s12, 4096  ;;  %s3988_s22 = scalar_lea.hbm %s6292_s3, 8192 }
  0x74   : > { %p3984_p13 = scmp.ne.s32.totalorder %s4684_s12, %s3983_s14  ;;  %p3989_p9 = scmp.lt.u32.totalorder %s4684_s12, %s6292_s3 }
  0x75   : > { %s6295_s5 = scalar_select %p4702_p2, 1, 0 }
  0x76   : > { %p3986_p4 = pnand %p4702_p2, %p3984_p13  ;;  %p3990_p3 = scmp.lt.u32.totalorder %s3988_s22, %s3983_s14 }
  0x77   : > { %p3992_p6 = scmp.lt.u32.totalorder %s3983_s14, %s4684_s12 }
  0x78   : > { %p3987_p7 = pneg %p3986_p4  ;;  %p3991_p1 = por %p3990_p3, %p3989_p9 }
  0x7a   : > { %p3993_p10 = por %p3992_p6, %p3991_p1 }
  0x7c   : > { %p3994_p11 = pnand %p3993_p10, %p3987_p7 }
  0x7e   : > { %3997 = shalt.err (!%p3994_p11)
}
  0x7f   : > { %s3998_s11 = scalar_lea.vmem %s4687_s6, 4096  ;;  %s4358_s9 = smov [#allocation9]  }
  0x80   : > { %p3999_p13 = scmp.ne.s32.totalorder %s4687_s6, %s3998_s11  ;;  %s4003_s28 = sshll.u32 %s4358_s9, 4  ;;  %s4004_s28 = int_to_ptr.vmem [resolvable:$false] %s4003_s28 }
  0x81   : > { %s4005_s30 = scalar_lea.vmem %s4004_s28, 8192  ;;  %p4006_p0 = scmp.lt.s32.totalorder %s4687_s6, %s4004_s28 }
  0x82   : > { %p4001_p4 = pnand %p3999_p13, %p4702_p2  ;;  %p4007_p5 = scmp.lt.s32.totalorder %s4005_s30, %s3998_s11 }
  0x84   : > { %p4002_p8 = pneg %p4001_p4  ;;  %p4008_p9 = por %p4007_p5, %p4006_p0 }
  0x86   : > { %p4009_p3 = pnand %p4008_p9, %p4002_p8 }
  0x88   : > { %4012 = shalt.err (!%p4009_p3)
}
  0x89   : > { %s4359_s14 = smov 128   ;;  %s4360_s22 = smov 8  }
  0x8a   : > { %s6296_s1 = smov 256   ;;  %s6297_s9 = scalar_lea.sflag [#allocation10], %s4581_s19 }
  0x8b   : > { %3717 = dma.hbm_to_vmem [thread:$0]  (!%p4693_p12), %s4684_s12, 4096, %s4687_s6, %s6297_s9, %s6296_s1, %s4359_s14, %s4360_s22  }
  0x8c   : > { %s6298_s7 = sld [smem:[#allocation55_spill]]  ;;  %s594_s3 = scalar_lea.vmem [#allocation12], %s4667_s17 }
  0x8d   : > { %s600_s25 = sshll.u32 %s594_s3, 4  ;;  %s6227_s20 = scalar_lea.sflag [#allocation13], %s4581_s19  ;;  %s4737_s25 = int_to_ptr.vmem [resolvable:$true] %s600_s25 }
  0x92   : > { %s4734_s30 = scalar_lea.hbm %s6298_s7, %s4678_s23  ;;  %s4018_s9 = scalar_lea.hbm %s6298_s7, 8192 }
  0x93   : > { %s4013_s8 = scalar_lea.hbm %s4734_s30, 4096  ;;  %p4019_p11 = scmp.lt.u32.totalorder %s4734_s30, %s6298_s7 }
  0x94   : > { %p4014_p0 = scmp.ne.s32.totalorder %s4734_s30, %s4013_s8  ;;  %p4020_p7 = scmp.lt.u32.totalorder %s4018_s9, %s4013_s8 }
  0x95   : > { %p4022_p6 = scmp.lt.u32.totalorder %s4013_s8, %s4734_s30 }
  0x96   : > { %p4016_p5 = pnand %p4014_p0, %p4702_p2  ;;  %p4021_p1 = por %p4020_p7, %p4019_p11 }
  0x98   : > { %p4017_p8 = pneg %p4016_p5  ;;  %p4023_p10 = por %p4022_p6, %p4021_p1 }
  0x9a   : > { %p4024_p13 = pnand %p4023_p10, %p4017_p8 }
  0x9c   : > { %4027 = shalt.err (!%p4024_p13)
}
  0x9d   : > { %s4028_s3 = scalar_lea.vmem %s4737_s25, 4096  ;;  %s4361_s12 = smov [#allocation12]  }
  0x9e   : > { %p4029_p4 = scmp.ne.s32.totalorder %s4737_s25, %s4028_s3  ;;  %s4033_s6 = sshll.u32 %s4361_s12, 4  ;;  %s4034_s6 = int_to_ptr.vmem [resolvable:$false] %s4033_s6 }
  0x9f   : > { %s4035_s11 = scalar_lea.vmem %s4034_s6, 8192  ;;  %p4036_p0 = scmp.lt.s32.totalorder %s4737_s25, %s4034_s6 }
  0xa0   : > { %p4031_p9 = pnand %p4029_p4, %p4702_p2  ;;  %p4037_p5 = scmp.lt.s32.totalorder %s4035_s11, %s4028_s3 }
  0xa2   : > { %p4032_p3 = pneg %p4031_p9  ;;  %p4038_p11 = por %p4037_p5, %p4036_p0 }
  0xa4   : > { %p4039_p7 = pnand %p4038_p11, %p4032_p3 }
  0xa6   : > { %4042 = shalt.err (!%p4039_p7)
}
  0xa7   : > { %3723 = dma.hbm_to_vmem [thread:$0]  (!%p4693_p12), %s4734_s30, 4096, %s4737_s25, %s6227_s20, %s6296_s1, %s4359_s14, %s4360_s22  }
  0xa8   : > { %s6299_s0 = sld [smem:[#allocation48_spill]]  ;;  %s476_s3 = scalar_lea.vmem [#allocation3], %s4570_s13 }
  0xa9   : > { %s486_s12 = sshll.u32 %s476_s3, 4  ;;  %s6300_s6 = sand.u32 1, %s4333_s21   ;;  %s4773_s12 = int_to_ptr.vmem [resolvable:$true] %s486_s12 }
  0xaa   : > { %s4777_s11 = scalar_lea.sflag [#allocation4], %s6300_s6  ;;  %p6301_p1 = scmp.ne.s32.totalorder %s6276_s4, 0 }
  0xae   : > { %s4770_s28 = scalar_lea.hbm %s6299_s0, %s4566_s10  ;;  %s4048_s8 = scalar_lea.hbm %s6299_s0, 8192 }
  0xaf   : > { %s4043_s7 = scalar_lea.hbm %s4770_s28, 4096  ;;  %p4049_p13 = scmp.lt.u32.totalorder %s4770_s28, %s6299_s0 }
  0xb0   : > { %p4044_p8 = scmp.ne.s32.totalorder %s4770_s28, %s4043_s7  ;;  %p4050_p4 = scmp.lt.u32.totalorder %s4048_s8, %s4043_s7 }
  0xb1   : > { %p4052_p3 = scmp.lt.u32.totalorder %s4043_s7, %s4770_s28 }
  0xb2   : > { %p4046_p6 = pnand %p4044_p8, %p6301_p1  ;;  %p4051_p9 = por %p4050_p4, %p4049_p13 }
  0xb4   : > { %p4047_p10 = pneg %p4046_p6  ;;  %p4053_p0 = por %p4052_p3, %p4051_p9 }
  0xb6   : > { %p4054_p5 = pnand %p4053_p0, %p4047_p10 }
  0xb8   : > { %4057 = shalt.err (!%p4054_p5)
}
  0xb9   : > { %s4058_s3 = scalar_lea.vmem %s4773_s12, 4096  ;;  %s4362_s6 = smov [#allocation3]  }
  0xba   : > { %p4059_p11 = scmp.ne.s32.totalorder %s4773_s12, %s4058_s3  ;;  %s4063_s25 = sshll.u32 %s4362_s6, 4  ;;  %s4064_s25 = int_to_ptr.vmem [resolvable:$false] %s4063_s25 }
  0xbb   : > { %s4065_s20 = scalar_lea.vmem %s4064_s25, 8192  ;;  %p4066_p6 = scmp.lt.s32.totalorder %s4773_s12, %s4064_s25 }
  0xbc   : > { %p4061_p7 = pnand %p4059_p11, %p6301_p1  ;;  %p4067_p12 = scmp.lt.s32.totalorder %s4065_s20, %s4058_s3 }
  0xbe   : > { %p4062_p8 = pneg %p4061_p7  ;;  %p4068_p13 = por %p4067_p12, %p4066_p6 }
  0xc0   : > { %p4069_p4 = pnand %p4068_p13, %p4062_p8 }
  0xc2   : > { %4072 = shalt.err (!%p4069_p4)
}
  0xc3   : > { %p6302_p10 = scmp.ne.s32.totalorder %s6274_s29, 0  ;;  %s6303_s7 = smov 16  }
  0xc4   : > { %s6304_s2 = sld [smem:[#allocation50_spill]]  ;;  %s521_s3 = scalar_lea.vmem [#allocation8], %s4570_s13 }
  0xc5   : > { %3708 = dma.hbm_to_vmem [thread:$0]  (!%p6302_p10), %s4770_s28, 4096, %s4773_s12, %s4777_s11, %s6296_s1, %s6296_s1, %s6303_s7  }
  0xc6   : > { %s528_s6 = sshll.u32 %s521_s3, 4  ;;  %s4811_s6 = int_to_ptr.vmem [resolvable:$true] %s528_s6 }
  0xca   : > { %s4808_s9 = scalar_lea.hbm %s6304_s2, %s4566_s10  ;;  %s4078_s12 = scalar_lea.hbm %s6304_s2, 8192 }
  0xcb   : > { %s4073_s25 = scalar_lea.hbm %s4808_s9, 4096  ;;  %p4079_p0 = scmp.lt.u32.totalorder %s4808_s9, %s6304_s2 }
  0xcc   : > { %p4074_p12 = scmp.ne.s32.totalorder %s4808_s9, %s4073_s25  ;;  %p4080_p5 = scmp.lt.u32.totalorder %s4078_s12, %s4073_s25 }
  0xcd   : > { %p4082_p7 = scmp.lt.u32.totalorder %s4073_s25, %s4808_s9 }
  0xce   : > { %p4076_p9 = pnand %p4074_p12, %p6301_p1  ;;  %p4081_p11 = por %p4080_p5, %p4079_p0 }
  0xd0   : > { %p4077_p3 = pneg %p4076_p9  ;;  %p4083_p8 = por %p4082_p7, %p4081_p11 }
  0xd2   : > { %p4084_p6 = pnand %p4083_p8, %p4077_p3 }
  0xd4   : > { %4087 = shalt.err (!%p4084_p6)
}
  0xd5   : > { %s4088_s13 = scalar_lea.vmem %s4811_s6, 4096  ;;  %s4363_s30 = smov [#allocation8]  }
  0xd6   : > { %p4089_p13 = scmp.ne.s32.totalorder %s4811_s6, %s4088_s13  ;;  %s4093_s8 = sshll.u32 %s4363_s30, 4  ;;  %s4094_s8 = int_to_ptr.vmem [resolvable:$false] %s4093_s8 }
  0xd7   : > { %s4095_s3 = scalar_lea.vmem %s4094_s8, 8192  ;;  %p4096_p9 = scmp.lt.s32.totalorder %s4811_s6, %s4094_s8 }
  0xd8   : > { %p4091_p4 = pnand %p4089_p13, %p6301_p1  ;;  %p4097_p2 = scmp.lt.s32.totalorder %s4095_s3, %s4088_s13 }
  0xda   : > { %p4092_p12 = pneg %p4091_p4  ;;  %p4098_p0 = por %p4097_p2, %p4096_p9 }
  0xdc   : > { %p4099_p5 = pnand %p4098_p0, %p4092_p12 }
  0xde   : > { %4102 = shalt.err (!%p4099_p5)
}
  0xdf   : > { %s6305_s25 = scalar_lea.sflag [#allocation7], %s4581_s19  ;;  %s6306_s28 = sld [smem:[#allocation53_spill]] }
  0xe0   : > { %3714 = dma.hbm_to_vmem [thread:$0]  (!%p6302_p10), %s4808_s9, 4096, %s4811_s6, %s6305_s25, %s6296_s1, %s6296_s1, %s6303_s7  }
  0xe1   : > { %s568_s29 = scalar_lea.vmem [#allocation11], %s4667_s17  ;;  %p6307_p1 = scmp.ne.s32.totalorder %s6295_s5, 0 }
  0xe2   : > { %s574_s11 = sshll.u32 %s568_s29, 4  ;;  %s4846_s11 = int_to_ptr.vmem [resolvable:$true] %s574_s11 }
  0xe5   : > { %s4843_s12 = scalar_lea.hbm %s6306_s28, %s4678_s23  ;;  %s4108_s6 = scalar_lea.hbm %s6306_s28, 8192 }
  0xe6   : > { %s4103_s10 = scalar_lea.hbm %s4843_s12, 4096  ;;  %p4109_p10 = scmp.lt.u32.totalorder %s4843_s12, %s6306_s28 }
  0xe7   : > { %p4104_p2 = scmp.ne.s32.totalorder %s4843_s12, %s4103_s10  ;;  %p4110_p7 = scmp.lt.u32.totalorder %s4108_s6, %s4103_s10 }
  0xe8   : > { %p4112_p6 = scmp.lt.u32.totalorder %s4103_s10, %s4843_s12 }
  0xe9   : > { %p4106_p3 = pnand %p4104_p2, %p6307_p1  ;;  %p4111_p8 = por %p4110_p7, %p4109_p10 }
  0xeb   : > { %p4107_p11 = pneg %p4106_p3  ;;  %p4113_p13 = por %p4112_p6, %p4111_p8 }
  0xed   : > { %p4114_p4 = pnand %p4113_p13, %p4107_p11 }
  0xef   : > { %4117 = shalt.err (!%p4114_p4)
}
  0xf0   : > { %s4118_s8 = scalar_lea.vmem %s4846_s11, 4096  ;;  %s4364_s3 = smov [#allocation11]  }
  0xf1   : > { %p4119_p12 = scmp.ne.s32.totalorder %s4846_s11, %s4118_s8  ;;  %s4123_s25 = sshll.u32 %s4364_s3, 4  ;;  %s4124_s25 = int_to_ptr.vmem [resolvable:$false] %s4123_s25 }
  0xf2   : > { %s4125_s4 = scalar_lea.vmem %s4124_s25, 8192  ;;  %p4126_p5 = scmp.lt.s32.totalorder %s4846_s11, %s4124_s25 }
  0xf3   : > { %p4121_p9 = pnand %p4119_p12, %p6307_p1  ;;  %p4127_p2 = scmp.lt.s32.totalorder %s4125_s4, %s4118_s8 }
  0xf5   : > { %p4122_p0 = pneg %p4121_p9  ;;  %p4128_p3 = por %p4127_p2, %p4126_p5 }
  0xf7   : > { %p4129_p10 = pnand %p4128_p3, %p4122_p0 }
  0xf9   : > { %4132 = shalt.err (!%p4129_p10)
}
  0xfa   : > { %p6308_p11 = scmp.ne.s32.totalorder %s6294_s27, 0  ;;  %s6309_s20 = scalar_lea.sflag [#allocation10], %s4581_s19 }
  0xfb   : > { %s3061_s29 = sshll.u32 %s4345_s24, 12  ;;  %s620_s10 = scalar_lea.vmem [#allocation14], %s4667_s17 }
  0xfc   : > { %3720 = dma.hbm_to_vmem [thread:$0]  (!%p6308_p11), %s4843_s12, 4096, %s4846_s11, %s6309_s20, %s6296_s1, %s4359_s14, %s4360_s22  }
  0xfd   : > { %s628_s13 = sshll.u32 %s620_s10, 4  ;;  %s6310_s30 = sld [smem:[#allocation57_spill]]  ;;  %s4881_s13 = int_to_ptr.vmem [resolvable:$true] %s628_s13 }
 0x103   : > { %s6311_s8 = smov %s6310_s30  ;;  %s4879_s23 = scalar_lea.hbm %s6310_s30, %s3061_s29 }
 0x104   : > { %s4133_s3 = scalar_lea.hbm %s4879_s23, 4096  ;;  %s4138_s17 = scalar_lea.hbm %s6311_s8, 8192 }
 0x105   : > { %p4134_p7 = scmp.ne.s32.totalorder %s4879_s23, %s4133_s3  ;;  %p4139_p13 = scmp.lt.u32.totalorder %s4879_s23, %s6311_s8 }
 0x106   : > { %p4140_p4 = scmp.lt.u32.totalorder %s4138_s17, %s4133_s3  ;;  %p4142_p9 = scmp.lt.u32.totalorder %s4133_s3, %s4879_s23 }
 0x107   : > { %p4136_p8 = pnand %p4134_p7, %p6307_p1 }
 0x108   : > { %p4141_p12 = por %p4140_p4, %p4139_p13 }
 0x109   : > { %p4137_p6 = pneg %p4136_p8 }
 0x10a   : > { %p4143_p0 = por %p4142_p9, %p4141_p12 }
 0x10c   : > { %p4144_p5 = pnand %p4143_p0, %p4137_p6 }
 0x10e   : > { %4147 = shalt.err (!%p4144_p5)
}
 0x10f   : > { %s4148_s25 = scalar_lea.vmem %s4881_s13, 4096  ;;  %s4365_s4 = smov [#allocation14]  }
 0x110   : > { %p4149_p2 = scmp.ne.s32.totalorder %s4881_s13, %s4148_s25  ;;  %s4153_s20 = sshll.u32 %s4365_s4, 4  ;;  %s4154_s20 = int_to_ptr.vmem [resolvable:$false] %s4153_s20 }
 0x111   : > { %s4155_s29 = scalar_lea.vmem %s4154_s20, 8192  ;;  %p4156_p7 = scmp.lt.s32.totalorder %s4881_s13, %s4154_s20 }
 0x112   : > { %p4151_p3 = pnand %p4149_p2, %p6307_p1  ;;  %p4157_p8 = scmp.lt.s32.totalorder %s4155_s29, %s4148_s25 }
 0x114   : > { %p4152_p10 = pneg %p4151_p3  ;;  %p4158_p13 = por %p4157_p8, %p4156_p7 }
 0x116   : > { %p4159_p4 = pnand %p4158_p13, %p4152_p10 }
 0x118   : > { %4162 = shalt.err (!%p4159_p4)
}
 0x119   : > { %s6312_s10 = scalar_lea.sflag [#allocation13], %s4581_s19  ;;  %s6313_s5 = sld [smem:[#allocation38_spill]] }
 0x11a   : > { %3726 = dma.hbm_to_vmem [thread:$0]  (!%p6308_p11), %s4879_s23, 4096, %s4881_s13, %s6312_s10, %s6296_s1, %s6296_s1, %s6303_s7  }
 0x11f   : > { %p6314_p1 = scmp.ne.s32.totalorder %s6313_s5, 0 }
 0x121   : > { %640 = sbr.rel (%p6314_p1) target bundleno = 2144 (0x860), region = 72 }
 0x128   : > { %s6315_s9 = sld [smem:[#allocation28_spill]]  ;;  %s6316_s6 = sld [smem:[#allocation33_spill]] }
 0x12e   : > { %s4912_s30 = sand.u32 1, %s6315_s9   ;;  %p6317_p6 = scmp.ne.s32.totalorder %s6316_s6, 0 }
 0x12f   : > { %s4915_s3 = sshll.u32 %s4912_s30, 8  ;;  %s643_s27 = scalar_lea.sflag [#allocation4], %s4912_s30 }
 0x130   : > { %s4919_s14 = scalar_lea.vmem [#allocation3], %s4915_s3 }
 0x131   : > { %4276 = dma.done.wait (%p6317_p6), %s643_s27, 4096  }
 0x132   : > { %4278 = vsyncadd (%p6317_p6), %s643_s27, 4294963200  ;;  %s6318_s19 = sld [smem:[#allocation32_spill]]  ;;  %s4927_s13 = scalar_lea.vmem [#allocation6], %s4915_s3 }
 0x138   : > { %s651_s1 = sand.u32 1, %s6318_s19  }
 0x139   : > { %s652_s7 = scalar_lea.sflag [#allocation7], %s651_s1 }
 0x13a   : > { %4280 = dma.done.wait (%p6317_p6), %s652_s7, 8192  }
 0x13b   : > { %4282 = vsyncadd (%p6317_p6), %s652_s7, 4294959104  ;;  %s6319_s23 = sld [smem:[#allocation26_spill]]  ;;  %s6320_s22 = sld [smem:[#allocation40_spill]] }
 0x13c   : > { %s4937_s11 = scalar_lea.vmem [#allocation8], %s4915_s3  ;;  %s670_s25 = scalar_lea.sflag [#allocation10], %s651_s1 }
 0x141   : > { %s671_s17 = sand.u32 1, %s6319_s23   ;;  %p6321_p11 = scmp.ne.s32.totalorder %s6320_s22, 0 }
 0x142   : > { %s4934_s12 = sshll.u32 %s671_s17, 8 }
 0x143   : > { %s4940_s4 = scalar_lea.vmem [#allocation9], %s4934_s12 }
 0x144   : > { %4284 = dma.done.wait (%p6321_p11), %s670_s25, 8192  }
 0x145   : > { %4286 = vsyncadd (%p6321_p11), %s670_s25, 4294959104  ;;  %s4947_s20 = scalar_lea.vmem [#allocation11], %s4934_s12  ;;  %s688_s29 = scalar_lea.sflag [#allocation13], %s651_s1 }
 0x146   : > { %s4950_s10 = scalar_lea.vmem [#allocation12], %s4934_s12 }
 0x147   : > { %4288 = dma.done.wait (%p6321_p11), %s688_s29, 8192  }
 0x148   : > { %4290 = vsyncadd (%p6321_p11), %s688_s29, 4294959104  ;;  %v914_v0 = vld [vmem:[%s4940_s4 + $0x80] sm:$0xff]  ;;  %v915_v1 = vld [vmem:[%s4940_s4 + $0x88] sm:$0xff]  ;;  %s6326_s5 = sld [smem:[#allocation29_spill]]  ;;  %s5544_s6 = scalar_lea.vmem [#allocation15], %s4915_s3 }
 0x149   : > { %v898_v2 = vld [vmem:[%s4940_s4] sm:$0xff]  ;;  %v3479_v3 = vpack.c.bf16 %v915_v1, %v914_v0  ;;  %v899_v4 = vld [vmem:[%s4940_s4 + $0x8] sm:$0xff]  ;;  %v916_v5 = vld [vmem:[%s4940_s4 + $0x90] sm:$0xff] }
 0x14a   : > { %v917_v6 = vld [vmem:[%s4940_s4 + $0x98] sm:$0xff]  ;;  %v3481_v7 = vpack.c.bf16 %v899_v4, %v898_v2  ;;  %v900_v9 = vld [vmem:[%s4940_s4 + $0x10] sm:$0xff]  ;;  %v918_v11 = vld [vmem:[%s4940_s4 + $0xa0] sm:$0xff] }
 0x14b   : > { %v3483_v8 = vpack.c.bf16 %v917_v6, %v916_v5  ;;  %v901_v10 = vld [vmem:[%s4940_s4 + $0x18] sm:$0xff]  ;;  %3671 = vmatprep.subr.bf16.mxu1 %v3479_v3  ;;  %v919_v12 = vld [vmem:[%s4940_s4 + $0xa8] sm:$0xff]  ;;  %3480 = vmatprep.subr.bf16.mxu0 %v3479_v3  ;;  %v902_v15 = vld [vmem:[%s4940_s4 + $0x20] sm:$0xff] }
 0x14c   : > { %3679 = vmatpush3.bf16.msra.mxu1 %v3481_v7  ;;  %v3485_v13 = vpack.c.bf16 %v901_v10, %v900_v9  ;;  %3482 = vmatpush3.bf16.msra.mxu0 %v3481_v7  ;;  %v3487_v14 = vpack.c.bf16 %v919_v12, %v918_v11  ;;  %v903_v16 = vld [vmem:[%s4940_s4 + $0x28] sm:$0xff]  ;;  %v920_v17 = vld [vmem:[%s4940_s4 + $0xb0] sm:$0xff]  ;;  %v921_v18 = vld [vmem:[%s4940_s4 + $0xb8] sm:$0xff] }
 0x14d   : > { %3672 = vmatprep.subr.bf16.mxu1 %v3483_v8  ;;  %3484 = vmatprep.subr.bf16.mxu0 %v3483_v8  ;;  %v3489_v19 = vpack.c.bf16 %v903_v16, %v902_v15  ;;  %v3491_v20 = vpack.c.bf16 %v921_v18, %v920_v17  ;;  %v904_v21 = vld [vmem:[%s4940_s4 + $0x30] sm:$0xff]  ;;  %v905_v22 = vld [vmem:[%s4940_s4 + $0x38] sm:$0xff]  ;;  %v922_v23 = vld [vmem:[%s4940_s4 + $0xc0] sm:$0xff] }
 0x14e   : > { %v923_v24 = vld [vmem:[%s4940_s4 + $0xc8] sm:$0xff]  ;;  %v3493_v26 = vpack.c.bf16 %v905_v22, %v904_v21  ;;  %v906_v28 = vld [vmem:[%s4940_s4 + $0x40] sm:$0xff]  ;;  %v924_v30 = vld [vmem:[%s4940_s4 + $0xd0] sm:$0xff]  ;;  %p790_p12 = scmp.lt.s32.totalorder %s6326_s5, 1  ;;  %p3046_p9 = scmp.ne.s32.totalorder %s6326_s5, 0 }
 0x14f   : > { %v4975_v25 = vld [vmem:[%s4919_s14 + $0x88] sm:$0xff]  ;;  %v3495_v27 = vpack.c.bf16 %v923_v24, %v922_v23  ;;  %v925_v31 = vld [vmem:[%s4940_s4 + $0xd8] sm:$0xff]  ;;  %v908_v34 = vld [vmem:[%s4940_s4 + $0x50] sm:$0xff] }
 0x150   : > { %3680 = vmatpush3.bf16.msra.mxu1 %v3485_v13  ;;  %3486 = vmatpush3.bf16.msra.mxu0 %v3485_v13  ;;  %v907_v29 = vld [vmem:[%s4940_s4 + $0x48] sm:$0xff]  ;;  %v3499_v33 = vpack.c.bf16 %v925_v31, %v924_v30  ;;  %v909_v35 = vld [vmem:[%s4940_s4 + $0x58] sm:$0xff]  ;;  %v926_v36 = vld [vmem:[%s4940_s4 + $0xe0] sm:$0xff]  ;;  %s5182_s9 = scalar_select %p790_p12, %s6326_s5, 1 }
 0x151   : > { %3673 = vmatprep.subr.bf16.mxu1 %v3487_v14  ;;  %3488 = vmatprep.subr.bf16.mxu0 %v3487_v14  ;;  %v3497_v32 = vpack.c.bf16 %v907_v29, %v906_v28  ;;  %v927_v37 = vld [vmem:[%s4940_s4 + $0xe8] sm:$0xff]  ;;  %v3501_v38 = vpack.c.bf16 %v909_v35, %v908_v34  ;;  %v910_v40 = vld [vmem:[%s4940_s4 + $0x60] sm:$0xff]  ;;  %v928_v42 = vld [vmem:[%s4940_s4 + $0xf0] sm:$0xff] }
 0x152   : > { %1041 = vmatprep.mubr.f32.mxu1 %v4975_v25  ;;  %v3503_v39 = vpack.c.bf16 %v927_v37, %v926_v36  ;;  %v911_v41 = vld [vmem:[%s4940_s4 + $0x68] sm:$0xff]  ;;  %v929_v43 = vld [vmem:[%s4940_s4 + $0xf8] sm:$0xff]  ;;  %v912_v46 = vld [vmem:[%s4940_s4 + $0x70] sm:$0xff] }
 0x153   : > { %v3505_v44 = vpack.c.bf16 %v911_v41, %v910_v40  ;;  %v3507_v45 = vpack.c.bf16 %v929_v43, %v928_v42  ;;  %v913_v47 = vld [vmem:[%s4940_s4 + $0x78] sm:$0xff]  ;;  %v1098_v48 = vld [vmem:[%s4947_s20 + $0x80] sm:$0xff]  ;;  %v1099_v49 = vld [vmem:[%s4947_s20 + $0x88] sm:$0xff]  ;;  %s6330_s4 = sld [smem:[#allocation25_spill]] }
 0x154   : > { %3681 = vmatpush3.bf16.msra.mxu1 %v3489_v19  ;;  %3490 = vmatpush3.bf16.msra.mxu0 %v3489_v19  ;;  %v3509_v50 = vpack.c.bf16 %v913_v47, %v912_v46  ;;  %v3511_v51 = vpack.c.bf16 %v1099_v49, %v1098_v48  ;;  %v1082_v52 = vld [vmem:[%s4947_s20] sm:$0xff]  ;;  %v1083_v53 = vld [vmem:[%s4947_s20 + $0x8] sm:$0xff]  ;;  %v1100_v54 = vld [vmem:[%s4947_s20 + $0x90] sm:$0xff] }
 0x155   : > { %3674 = vmatprep.subr.bf16.mxu1 %v3491_v20  ;;  %3492 = vmatprep.subr.bf16.mxu0 %v3491_v20  ;;  %v1101_v55 = vld [vmem:[%s4947_s20 + $0x98] sm:$0xff]  ;;  %v4999_v56 = vld [vmem:[%s4919_s14 + $0x80] sm:$0xff]  ;;  %v3513_v57 = vpack.c.bf16 %v1083_v53, %v1082_v52  ;;  %v1084_v60 = vld [vmem:[%s4947_s20 + $0x10] sm:$0xff] }
 0x156   : > { %v5002_v58 = vld [vmem:[%s4919_s14 + $0x98] sm:$0xff]  ;;  %v3515_v59 = vpack.c.bf16 %v1101_v55, %v1100_v54  ;;  %v1102_v62 = vld [vmem:[%s4947_s20 + $0xa0] sm:$0xff]  ;;  %v1103_v63 = vld [vmem:[%s4947_s20 + $0xa8] sm:$0xff] }
 0x157   : > { %v1085_v61 = vld [vmem:[%s4947_s20 + $0x18] sm:$0xff]  ;;  %v5010_v0 = vld [vmem:[%s4919_s14 + $0x90] sm:$0xff]  ;;  %v5014_v2 = vld [vmem:[%s4919_s14 + $0xa8] sm:$0xff]  ;;  %v3519_v5 = vpack.c.bf16 %v1103_v63, %v1102_v62 }
 0x158   : > { %3682 = vmatpush3.bf16.msra.mxu1 %v3493_v26  ;;  %3494 = vmatpush3.bf16.msra.mxu0 %v3493_v26  ;;  %v3517_v1 = vpack.c.bf16 %v1085_v61, %v1084_v60  ;;  %v5017_v3 = vld [vmem:[%s4919_s14 + $0x8] sm:$0xff]  ;;  %v5020_v4 = vld [vmem:[%s4919_s14] sm:$0xff]  ;;  %v5026_v8 = vld [vmem:[%s4919_s14 + $0x18] sm:$0xff] }
 0x159   : > { %3675 = vmatprep.subr.bf16.mxu1 %v3495_v27  ;;  %3496 = vmatprep.subr.bf16.mxu0 %v3495_v27  ;;  %v1086_v6 = vld [vmem:[%s4947_s20 + $0x20] sm:$0xff]  ;;  %v1087_v7 = vld [vmem:[%s4947_s20 + $0x28] sm:$0xff]  ;;  %v1104_v9 = vld [vmem:[%s4947_s20 + $0xb0] sm:$0xff] }
 0x15a   : > { %1001 = vmatprep.mubr.f32.mxu0 %v5017_v3  ;;  %v1105_v10 = vld [vmem:[%s4947_s20 + $0xb8] sm:$0xff]  ;;  %v5034_v11 = vld [vmem:[%s4919_s14 + $0x10] sm:$0xff]  ;;  %v5038_v12 = vld [vmem:[%s4919_s14 + $0xa0] sm:$0xff]  ;;  %v3521_v13 = vpack.c.bf16 %v1087_v7, %v1086_v6 }
 0x15b   : > { %v5041_v14 = vld [vmem:[%s4919_s14 + $0x28] sm:$0xff]  ;;  %v5044_v15 = vld [vmem:[%s4919_s14 + $0xb8] sm:$0xff]  ;;  %v3523_v16 = vpack.c.bf16 %v1105_v10, %v1104_v9  ;;  %v1088_v17 = vld [vmem:[%s4947_s20 + $0x30] sm:$0xff] }
 0x15c   : > { %3683 = vmatpush3.bf16.msra.mxu1 %v3497_v32  ;;  %3498 = vmatpush3.bf16.msra.mxu0 %v3497_v32  ;;  %v1089_v18 = vld [vmem:[%s4947_s20 + $0x38] sm:$0xff]  ;;  %v1106_v19 = vld [vmem:[%s4947_s20 + $0xc0] sm:$0xff]  ;;  %v1107_v20 = vld [vmem:[%s4947_s20 + $0xc8] sm:$0xff] }
 0x15d   : > { %3676 = vmatprep.subr.bf16.mxu1 %v3499_v33  ;;  %3500 = vmatprep.subr.bf16.mxu0 %v3499_v33  ;;  %v5054_v21 = vld [vmem:[%s4919_s14 + $0x20] sm:$0xff]  ;;  %v5058_v22 = vld [vmem:[%s4919_s14 + $0xb0] sm:$0xff]  ;;  %v3525_v23 = vpack.c.bf16 %v1089_v18, %v1088_v17  ;;  %v5061_v24 = vld [vmem:[%s4919_s14 + $0x38] sm:$0xff]  ;;  %v3527_v27 = vpack.c.bf16 %v1107_v20, %v1106_v19 }
 0x15e   : > { %v5064_v26 = vld [vmem:[%s4919_s14 + $0xc8] sm:$0xff]  ;;  %v1090_v28 = vld [vmem:[%s4947_s20 + $0x40] sm:$0xff]  ;;  %v1108_v30 = vld [vmem:[%s4947_s20 + $0xd0] sm:$0xff] }
 0x15f   : > { %v1091_v29 = vld [vmem:[%s4947_s20 + $0x48] sm:$0xff]  ;;  %v1109_v31 = vld [vmem:[%s4947_s20 + $0xd8] sm:$0xff]  ;;  %v5074_v32 = vld [vmem:[%s4919_s14 + $0x30] sm:$0xff] }
 0x160   : > { %3684 = vmatpush3.bf16.msra.mxu1 %v3501_v38  ;;  %3502 = vmatpush3.bf16.msra.mxu0 %v3501_v38  ;;  %v5078_v33 = vld [vmem:[%s4919_s14 + $0xc0] sm:$0xff]  ;;  %v3529_v34 = vpack.c.bf16 %v1091_v29, %v1090_v28  ;;  %v5081_v35 = vld [vmem:[%s4919_s14 + $0x48] sm:$0xff]  ;;  %v5084_v36 = vld [vmem:[%s4919_s14 + $0xd8] sm:$0xff]  ;;  %v3531_v37 = vpack.c.bf16 %v1109_v31, %v1108_v30 }
 0x161   : > { %3677 = vmatprep.subr.bf16.mxu1 %v3503_v39  ;;  %3504 = vmatprep.subr.bf16.mxu0 %v3503_v39  ;;  %v1092_v38 = vld [vmem:[%s4947_s20 + $0x50] sm:$0xff]  ;;  %v1093_v39 = vld [vmem:[%s4947_s20 + $0x58] sm:$0xff]  ;;  %v1110_v40 = vld [vmem:[%s4947_s20 + $0xe0] sm:$0xff] }
 0x162   : > { %v1111_v41 = vld [vmem:[%s4947_s20 + $0xe8] sm:$0xff]  ;;  %v5094_v42 = vld [vmem:[%s4919_s14 + $0x40] sm:$0xff]  ;;  %v5098_v43 = vld [vmem:[%s4919_s14 + $0xd0] sm:$0xff] }
 0x163   : > { %v5104_v46 = vld [vmem:[%s4919_s14 + $0xe8] sm:$0xff]  ;;  %v3535_v47 = vpack.c.bf16 %v1111_v41, %v1110_v40  ;;  %v1094_v48 = vld [vmem:[%s4947_s20 + $0x60] sm:$0xff]  ;;  %v5114_v52 = vld [vmem:[%s4919_s14 + $0x50] sm:$0xff] }
 0x164   : > { %3685 = vmatpush3.bf16.msra.mxu1 %v3505_v44  ;;  %3506 = vmatpush3.bf16.msra.mxu0 %v3505_v44  ;;  %v3533_v44 = vpack.c.bf16 %v1093_v39, %v1092_v38  ;;  %6322 = vst [vmem:[#allocation44_spill] sm:$0xff] %v5104_v46  ;;  %v1095_v49 = vld [vmem:[%s4947_s20 + $0x68] sm:$0xff]  ;;  %v5118_v53 = vld [vmem:[%s4919_s14 + $0xe0] sm:$0xff]  ;;  %v1096_v60 = vld [vmem:[%s4947_s20 + $0x70] sm:$0xff] }
 0x165   : > { %3678 = vmatprep.subr.bf16.mxu1 %v3507_v45  ;;  %3508 = vmatprep.subr.bf16.mxu0 %v3507_v45  ;;  %v5101_v45 = vld [vmem:[%s4919_s14 + $0x58] sm:$0xff]  ;;  %6323 = vst [vmem:[#allocation45_spill] sm:$0xff] %v5118_v53  ;;  %v3537_v54 = vpack.c.bf16 %v1095_v49, %v1094_v48  ;;  %v5121_v55 = vld [vmem:[%s4919_s14 + $0x68] sm:$0xff]  ;;  %v5132_v62 = vld [vmem:[%s4919_s14 + $0x60] sm:$0xff] }
 0x166   : > { %v1097_v61 = vld [vmem:[%s4947_s20 + $0x78] sm:$0xff]  ;;  %v5136_v63 = vld [vmem:[%s4919_s14 + $0xf0] sm:$0xff]  ;;  %v835_v6 = vld [vmem:[%s4927_s13 + $0x8] sm:$0xff] }
 0x167   : > { %6325 = vst [vmem:[#allocation47_spill] sm:$0xff] %v5136_v63  ;;  %v5146_v7 = vld [vmem:[%s4919_s14 + $0x70] sm:$0xff]  ;;  %v834_v9 = vld [vmem:[%s4927_s13] sm:$0xff]  ;;  %v837_v10 = vld [vmem:[%s4927_s13 + $0x18] sm:$0xff] }
 0x168   : > { %3686 = vmatpush3.bf16.msra.mxu1 %v3509_v50  ;;  %3510 = vmatpush3.bf16.msra.mxu0 %v3509_v50  ;;  %v1112_v50 = vld [vmem:[%s4947_s20 + $0xf0] sm:$0xff]  ;;  %v838_v17 = vld [vmem:[%s4927_s13 + $0x20] sm:$0xff]  ;;  %v841_v18 = vld [vmem:[%s4927_s13 + $0x38] sm:$0xff] }
 0x169   : > { %3512 = vmatprep.subr.bf16.mxu1 %v3511_v51  ;;  %v1113_v51 = vld [vmem:[%s4947_s20 + $0xf8] sm:$0xff]  ;;  %v840_v19 = vld [vmem:[%s4927_s13 + $0x30] sm:$0xff]  ;;  %v843_v20 = vld [vmem:[%s4927_s13 + $0x48] sm:$0xff]  ;;  %s6236_s20 = sand.u32 1, %s6330_s4  }
 0x16a   : > { %v844_v28 = vld [vmem:[%s4927_s13 + $0x50] sm:$0xff]  ;;  %v847_v29 = vld [vmem:[%s4927_s13 + $0x68] sm:$0xff]  ;;  %v846_v30 = vld [vmem:[%s4927_s13 + $0x60] sm:$0xff]  ;;  %s3042_s29 = sshll.u32 %s6236_s20, 7 }
 0x16b   : > { %1042 = vmatmul.mubr.f32.vlgmr.msra.gmra.mrb[0].mxu1 %v4999_v56  ;;  %1002 = vmatmul.mubr.f32.vlgmr.msra.gmra.mrb[0].mxu0 %v5020_v4  ;;  %v849_v31 = vld [vmem:[%s4927_s13 + $0x78] sm:$0xff]  ;;  %v850_v38 = vld [vmem:[%s4927_s13 + $0x80] sm:$0xff]  ;;  %v852_v40 = vld [vmem:[%s4927_s13 + $0x90] sm:$0xff] }
 0x16c   : > { %3514 = vmatpush3.bf16.msra.mxu1 %v3513_v57  ;;  %1046 = vmatprep.mubr.f32.mxu1 %v5002_v58  ;;  %v5124_v57 = vld [vmem:[%s4919_s14 + $0xf8] sm:$0xff]  ;;  %v855_v41 = vld [vmem:[%s4927_s13 + $0xa8] sm:$0xff]  ;;  %v856_v48 = vld [vmem:[%s4927_s13 + $0xb0] sm:$0xff] }
 0x16d   : > { %3516 = vmatprep.subr.bf16.mxu1 %v3515_v59  ;;  %1006 = vmatprep.mubr.f32.mxu0 %v5026_v8  ;;  %6324 = vst [vmem:[#allocation46_spill] sm:$0xff] %v5124_v57  ;;  %v3539_v59 = vpack.c.bf16 %v1113_v51, %v1112_v50  ;;  %v853_v39 = vld [vmem:[%s4927_s13 + $0x98] sm:$0xff]  ;;  %v859_v49 = vld [vmem:[%s4927_s13 + $0xc8] sm:$0xff]  ;;  %v858_v50 = vld [vmem:[%s4927_s13 + $0xc0] sm:$0xff] }
 0x16e   : > { %v861_v51 = vld [vmem:[%s4927_s13 + $0xd8] sm:$0xff] }
 0x16f   : > { %1047 = vmatmul.mubr.f32.gmra.mrb[2].mxu1 %v5010_v0  ;;  %1007 = vmatmul.mubr.f32.gmra.mrb[2].mxu0 %v5034_v11 }
 0x170   : > { %3518 = vmatpush3.bf16.msra.mxu1 %v3517_v1  ;;  %1051 = vmatprep.mubr.f32.mxu1 %v5014_v2  ;;  %v3541_v1 = vpack.c.bf16 %v1097_v61, %v1096_v60  ;;  %v862_v60 = vld [vmem:[%s4927_s13 + $0xe0] sm:$0xff]  ;;  %v865_v61 = vld [vmem:[%s4927_s13 + $0xf8] sm:$0xff] }
 0x171   : > { %3520 = vmatprep.subr.bf16.mxu1 %v3519_v5  ;;  %1011 = vmatprep.mubr.f32.mxu0 %v5041_v14  ;;  %v5139_v5 = vld [vmem:[%s4919_s14 + $0x78] sm:$0xff]  ;;  %s6327_s14 = sld [smem:[#allocation52_spill]] }
 0x173   : > { %1052 = vmatmul.mubr.f32.gmra.mrb[4].mxu1 %v5038_v12  ;;  %1012 = vmatmul.mubr.f32.gmra.mrb[4].mxu0 %v5054_v21 }
 0x174   : > { %3522 = vmatpush3.bf16.msra.mxu1 %v3521_v13  ;;  %1056 = vmatprep.mubr.f32.mxu1 %v5044_v15  ;;  %v836_v13 = vld [vmem:[%s4927_s13 + $0x10] sm:$0xff] }
 0x175   : > { %3524 = vmatprep.subr.bf16.mxu1 %v3523_v16  ;;  %1016 = vmatprep.mubr.f32.mxu0 %v5061_v24  ;;  %v839_v16 = vld [vmem:[%s4927_s13 + $0x28] sm:$0xff] }
 0x177   : > { %1057 = vmatmul.mubr.f32.gmra.mrb[6].mxu1 %v5058_v22  ;;  %1017 = vmatmul.mubr.f32.gmra.mrb[6].mxu0 %v5074_v32  ;;  %s792_s19 = scalar_lea.vmem %s6327_s14, %s5182_s9 }
 0x178   : > { %3526 = vmatpush3.bf16.msra.mxu1 %v3525_v23  ;;  %1061 = vmatprep.mubr.f32.mxu1 %v5064_v26  ;;  %v842_v23 = vld [vmem:[%s4927_s13 + $0x40] sm:$0xff] }
 0x179   : > { %3528 = vmatprep.subr.bf16.mxu1 %v3527_v27  ;;  %1021 = vmatprep.mubr.f32.mxu0 %v5081_v35  ;;  %v845_v27 = vld [vmem:[%s4927_s13 + $0x58] sm:$0xff] }
 0x17b   : > { %1062 = vmatmul.mubr.f32.gmra.mrb[8].mxu1 %v5078_v33  ;;  %1022 = vmatmul.mubr.f32.gmra.mrb[8].mxu0 %v5094_v42 }
 0x17c   : > { %3530 = vmatpush3.bf16.msra.mxu1 %v3529_v34  ;;  %1066 = vmatprep.mubr.f32.mxu1 %v5084_v36  ;;  %v848_v34 = vld [vmem:[%s4927_s13 + $0x70] sm:$0xff] }
 0x17d   : > { %3532 = vmatprep.subr.bf16.mxu1 %v3531_v37  ;;  %1026 = vmatprep.mubr.f32.mxu0 %v5101_v45  ;;  %v851_v37 = vld [vmem:[%s4927_s13 + $0x88] sm:$0xff] }
 0x17f   : > { %1067 = vmatmul.mubr.f32.gmra.mrb[10].mxu1 %v5098_v43  ;;  %1027 = vmatmul.mubr.f32.gmra.mrb[10].mxu0 %v5114_v52 }
 0x180   : > { %3534 = vmatpush3.bf16.msra.mxu1 %v3533_v44  ;;  %1071 = vmatprep.mubr.f32.mxu1 %v5104_v46  ;;  %v854_v44 = vld [vmem:[%s4927_s13 + $0xa0] sm:$0xff] }
 0x181   : > { %3536 = vmatprep.subr.bf16.mxu1 %v3535_v47  ;;  %1031 = vmatprep.mubr.f32.mxu0 %v5121_v55  ;;  %v857_v47 = vld [vmem:[%s4927_s13 + $0xb8] sm:$0xff] }
 0x183   : > { %1072 = vmatmul.mubr.f32.gmra.mrb[12].mxu1 %v5118_v53  ;;  %1032 = vmatmul.mubr.f32.gmra.mrb[12].mxu0 %v5132_v62 }
 0x184   : > { %3538 = vmatpush3.bf16.msra.mxu1 %v3537_v54  ;;  %1076 = vmatprep.mubr.f32.mxu1 %v5124_v57  ;;  %v860_v54 = vld [vmem:[%s4927_s13 + $0xd0] sm:$0xff] }
 0x185   : > { %3540 = vmatprep.subr.bf16.mxu1 %v3539_v59  ;;  %1036 = vmatprep.mubr.f32.mxu0 %v5139_v5  ;;  %v863_v59 = vld [vmem:[%s4927_s13 + $0xe8] sm:$0xff] }
 0x187   : > { %1077 = vmatmul.mubr.f32.gmra.mrb[14].mxu1 %v5136_v63  ;;  %1037 = vmatmul.mubr.f32.gmra.mrb[14].mxu0 %v5146_v7 }
 0x188   : > { %3542 = vmatpush3.bf16.msra.mxu1 %v3541_v1  ;;  %1185 = vmatprep.mubr.f32.mxu1 %v835_v6  ;;  %v864_v1 = vld [vmem:[%s4927_s13 + $0xf0] sm:$0xff]  ;;  %s6328_s13 = sld [smem:[#allocation54_spill]] }
 0x18b   : > { %1186 = vmatmul.mubr.f32.vlgmr.msra.gmra.mrb[16].mxu1 %v834_v9  ;;  %v5188_v9 = vld [vmem:[%s792_s19] ss:$0 sm:$0xff]  ;;  %s6331_s19 = sld [smem:[#allocation58_spill]] (!%p3046_p9) }
 0x18c   : > { %1190 = vmatprep.mubr.f32.mxu1 %v837_v10 }
 0x18e   : > { %s795_s23 = scalar_lea.vmem %s6328_s13, %s5182_s9 }
 0x18f   : > { %1191 = vmatmul.mubr.f32.gmra.mrb[18].mxu1 %v836_v13 }
 0x190   : > { %1195 = vmatprep.mubr.f32.mxu1 %v839_v16 }
 0x193   : > { %1196 = vmatmul.mubr.f32.gmra.mrb[20].mxu1 %v838_v17 }
 0x194   : > { %1200 = vmatprep.mubr.f32.mxu1 %v841_v18 }
 0x197   : > { %1201 = vmatmul.mubr.f32.gmra.mrb[22].mxu1 %v840_v19 }
 0x198   : > { %1205 = vmatprep.mubr.f32.mxu1 %v843_v20 }
 0x19b   : > { %1206 = vmatmul.mubr.f32.gmra.mrb[24].mxu1 %v842_v23 }
 0x19c   : > { %1210 = vmatprep.mubr.f32.mxu1 %v845_v27 }
 0x19f   : > { %1211 = vmatmul.mubr.f32.gmra.mrb[26].mxu1 %v844_v28 }
 0x1a0   : > { %1215 = vmatprep.mubr.f32.mxu1 %v847_v29 }
 0x1a3   : > { %1216 = vmatmul.mubr.f32.gmra.mrb[28].mxu1 %v846_v30 }
 0x1a4   : > { %1220 = vmatprep.mubr.f32.mxu1 %v849_v31 }
 0x1a7   : > { %1221 = vmatmul.mubr.f32.gmra.mrb[30].mxu1 %v848_v34 }
 0x1a8   : > { %1225 = vmatprep.mubr.f32.mxu1 %v851_v37  ;;  %v1282_v37 = vld [vmem:[%s4950_s10 + $0x80] sm:$0xff] }
 0x1ab   : > { %1226 = vmatmul.mubr.f32.gmra.mrb[32].mxu1 %v850_v38  ;;  %v1283_v38 = vld [vmem:[%s4950_s10 + $0x88] sm:$0xff] }
 0x1ac   : > { %1230 = vmatprep.mubr.f32.mxu1 %v853_v39  ;;  %v1266_v39 = vld [vmem:[%s4950_s10] sm:$0xff] }
 0x1af   : > { %1231 = vmatmul.mubr.f32.gmra.mrb[34].mxu1 %v852_v40 }
 0x1b0   : > { %1235 = vmatprep.mubr.f32.mxu1 %v855_v41 }
 0x1b3   : > { %1236 = vmatmul.mubr.f32.gmra.mrb[36].mxu1 %v854_v44  ;;  %v3543_v44 = vpack.c.bf16 %v1283_v38, %v1282_v37 }
 0x1b4   : > { %1240 = vmatprep.mubr.f32.mxu1 %v857_v47  ;;  %v1267_v47 = vld [vmem:[%s4950_s10 + $0x8] sm:$0xff] }
 0x1b5   : > { %3544 = vmatprep.subr.bf16.mxu0 %v3543_v44 }
 0x1b7   : > { %1241 = vmatmul.mubr.f32.gmra.mrb[38].mxu1 %v856_v48 }
 0x1b8   : > { %1245 = vmatprep.mubr.f32.mxu1 %v859_v49  ;;  %v3545_v49 = vpack.c.bf16 %v1267_v47, %v1266_v39 }
 0x1ba   : > { %3546 = vmatpush3.bf16.msra.mxu0 %v3545_v49 }
 0x1bb   : > { %1246 = vmatmul.mubr.f32.gmra.mrb[40].mxu1 %v858_v50 }
 0x1bc   : > { %1250 = vmatprep.mubr.f32.mxu1 %v861_v51 }
 0x1bf   : > { %1251 = vmatmul.mubr.f32.gmra.mrb[42].mxu1 %v860_v54 }
 0x1c0   : > { %1255 = vmatprep.mubr.f32.mxu1 %v863_v59 }
 0x1c3   : > { %1256 = vmatmul.mubr.f32.gmra.mrb[44].mxu1 %v862_v60 }
 0x1c4   : > { %1260 = vmatprep.mubr.f32.mxu1 %v865_v61 }
 0x1c7   : > { %1261 = vmatmul.mubr.f32.gmra.mrb[46].mxu1 %v864_v1 }
 0x23e   : > { %v3119_v6 = vpop.f32.mrb[0].mxu1  ;;  %v3095_v16 = vpop.f32.mrb[0].mxu0 }
 0x23f   : > { %v3120_v10 = vpop.f32.mrb[1].mxu1  ;;  %v3096_v19 = vpop.f32.mrb[1].mxu0 }
 0x240   : > { %v3121_v13 = vadd.f32 %v3120_v10, %v3119_v6  ;;  %v3097_v23 = vadd.f32 %v3096_v19, %v3095_v16 }
 0x242   : > { %v5191_v17 = vadd.f32 %v3121_v13, %v5188_v9  ;;  %v3122_v18 = vpop.f32.mrb[2].mxu1  ;;  %v1004_v28 = vadd.f32 %v3097_v23, %v5188_v9  ;;  %v3098_v29 = vpop.f32.mrb[2].mxu0 }
 0x243   : > { %v3123_v20 = vpop.f32.mrb[3].mxu1  ;;  %v3099_v34 = vpop.f32.mrb[3].mxu0 }
 0x244   : > { %v3124_v27 = vadd.f32 %v3123_v20, %v3122_v18  ;;  %v3100_v41 = vadd.f32 %v3099_v34, %v3098_v29  ;;  %3399 = vmatprep.mubr.f32.mxu1 %v1004_v28 }
 0x246   : > { %v5195_v30 = vadd.f32 %v3124_v27, %v5188_v9  ;;  %v3125_v31 = vpop.f32.mrb[4].mxu1  ;;  %v5202_v50 = vadd.f32 %v3100_v41, %v5188_v9  ;;  %v3101_v51 = vpop.f32.mrb[4].mxu0 }
 0x247   : > { %v3126_v40 = vpop.f32.mrb[5].mxu1  ;;  %v3102_v60 = vpop.f32.mrb[5].mxu0 }
 0x248   : > { %v3127_v48 = vadd.f32 %v3126_v40, %v3125_v31  ;;  %v3103_v1 = vadd.f32 %v3102_v60, %v3101_v51 }
 0x24a   : > { %v5205_v54 = vadd.f32 %v3127_v48, %v5188_v9  ;;  %v3128_v59 = vpop.f32.mrb[6].mxu1  ;;  %v5208_v10 = vadd.f32 %v3103_v1, %v5188_v9  ;;  %v3104_v13 = vpop.f32.mrb[6].mxu0 }
 0x24b   : > { %v3129_v61 = vpop.f32.mrb[7].mxu1  ;;  %v3105_v19 = vpop.f32.mrb[7].mxu0 }
 0x24c   : > { %v3130_v6 = vadd.f32 %v3129_v61, %v3128_v59  ;;  %v3106_v23 = vadd.f32 %v3105_v19, %v3104_v13 }
 0x24e   : > { %v5211_v16 = vadd.f32 %v3130_v6, %v5188_v9  ;;  %v3131_v18 = vpop.f32.mrb[8].mxu1  ;;  %v5214_v28 = vadd.f32 %v3106_v23, %v5188_v9  ;;  %v3107_v29 = vpop.f32.mrb[8].mxu0 }
 0x24f   : > { %v3132_v20 = vpop.f32.mrb[9].mxu1  ;;  %v3108_v37 = vpop.f32.mrb[9].mxu0 }
 0x250   : > { %v3133_v27 = vadd.f32 %v3132_v20, %v3131_v18  ;;  %v3109_v39 = vadd.f32 %v3108_v37, %v3107_v29 }
 0x252   : > { %v5217_v31 = vadd.f32 %v3133_v27, %v5188_v9  ;;  %v3134_v34 = vpop.f32.mrb[10].mxu1  ;;  %v5220_v41 = vadd.f32 %v3109_v39, %v5188_v9  ;;  %v3110_v44 = vpop.f32.mrb[10].mxu0 }
 0x253   : > { %v3135_v38 = vpop.f32.mrb[11].mxu1  ;;  %v3111_v49 = vpop.f32.mrb[11].mxu0 }
 0x254   : > { %v3136_v40 = vadd.f32 %v3135_v38, %v3134_v34  ;;  %v3112_v59 = vadd.f32 %v3111_v49, %v3110_v44 }
 0x256   : > { %v5223_v47 = vadd.f32 %v3136_v40, %v5188_v9  ;;  %v3137_v48 = vpop.f32.mrb[12].mxu1  ;;  %v5226_v61 = vadd.f32 %v3112_v59, %v5188_v9  ;;  %v3113_v1 = vpop.f32.mrb[12].mxu0 }
 0x257   : > { %v3138_v51 = vpop.f32.mrb[13].mxu1  ;;  %v3114_v18 = vpop.f32.mrb[13].mxu0 }
 0x258   : > { %v3139_v60 = vadd.f32 %v3138_v51, %v3137_v48  ;;  %v3115_v20 = vadd.f32 %v3114_v18, %v3113_v1  ;;  %v5244_v51 = vld [vmem:[%s795_s23] ss:$0 sm:$0xff] }
 0x25a   : > { %v5229_v6 = vadd.f32 %v3139_v60, %v5188_v9  ;;  %v3140_v13 = vpop.f32.mrb[14].mxu1  ;;  %v5232_v27 = vadd.f32 %v3115_v20, %v5188_v9  ;;  %v3116_v29 = vpop.f32.mrb[14].mxu0 }
 0x25b   : > { %v3141_v19 = vpop.f32.mrb[15].mxu1  ;;  %v3117_v38 = vpop.f32.mrb[15].mxu0 }
 0x25c   : > { %v3142_v23 = vadd.f32 %v3141_v19, %v3140_v13  ;;  %v3118_v40 = vadd.f32 %v3117_v38, %v3116_v29 }
 0x25e   : > { %v5235_v34 = vadd.f32 %v3142_v23, %v5188_v9  ;;  %v3175_v37 = vpop.f32.mrb[16].mxu1  ;;  %v5242_v48 = vadd.f32 %v3118_v40, %v5188_v9 }
 0x25f   : > { %v3176_v39 = vpop.f32.mrb[17].mxu1 }
 0x260   : > { %v3177_v44 = vadd.f32 %v3176_v39, %v3175_v37 }
 0x262   : > { %v3178_v49 = vpop.f32.mrb[18].mxu1  ;;  %v1188_v1 = vadd.f32 %v3177_v44, %v5244_v51 }
 0x263   : > { %v3179_v59 = vpop.f32.mrb[19].mxu1 }
 0x264   : > { %v3180_v60 = vadd.f32 %v3179_v59, %v3178_v49 }
 0x266   : > { %v1193_v13 = vadd.f32 %v3180_v60, %v5244_v51  ;;  %v3181_v18 = vpop.f32.mrb[20].mxu1 }
 0x267   : > { %v3182_v19 = vpop.f32.mrb[21].mxu1 }
 0x268   : > { %v3183_v20 = vadd.f32 %v3182_v19, %v3181_v18  ;;  %v3575_v23 = vpack.c.bf16 %v1193_v13, %v1188_v1 }
 0x26a   : > { %v3184_v29 = vpop.f32.mrb[22].mxu1  ;;  %3576 = vmatprep.subr.bf16.mxu1 %v3575_v23  ;;  %v1198_v9 = vadd.f32 %v3183_v20, %v5244_v51 }
 0x26b   : > { %v3185_v38 = vpop.f32.mrb[23].mxu1  ;;  %3578 = vmatpush3.bf16.xpose.msra.mxu1 %v3575_v23 }
 0x26c   : > { %v3186_v37 = vadd.f32 %v3185_v38, %v3184_v29 }
 0x26e   : > { %v1203_v39 = vadd.f32 %v3186_v37, %v5244_v51  ;;  %v3187_v40 = vpop.f32.mrb[24].mxu1 }
 0x26f   : > { %v3188_v57 = vpop.f32.mrb[25].mxu1 }
 0x270   : > { %v3189_v49 = vadd.f32 %v3188_v57, %v3187_v40  ;;  %v3579_v59 = vpack.c.bf16 %v1203_v39, %v1198_v9 }
 0x272   : > { %v3190_v44 = vpop.f32.mrb[26].mxu1  ;;  %3580 = vmatprep.subr.bf16.mxu1 %v3579_v59  ;;  %v1208_v1 = vadd.f32 %v3189_v49, %v5244_v51 }
 0x273   : > { %v3191_v60 = vpop.f32.mrb[27].mxu1  ;;  %3582 = vmatpush3.bf16.xpose.msra.mxu1 %v3579_v59 }
 0x274   : > { %v3192_v63 = vadd.f32 %v3191_v60, %v3190_v44 }
 0x276   : > { %v1213_v13 = vadd.f32 %v3192_v63, %v5244_v51  ;;  %v3193_v18 = vpop.f32.mrb[28].mxu1 }
 0x277   : > { %v3194_v19 = vpop.f32.mrb[29].mxu1 }
 0x278   : > { %v3195_v23 = vadd.f32 %v3194_v19, %v3193_v18  ;;  %v3583_v29 = vpack.c.bf16 %v1213_v13, %v1208_v1 }
 0x27a   : > { %v3196_v20 = vpop.f32.mrb[30].mxu1  ;;  %3584 = vmatprep.subr.bf16.mxu1 %v3583_v29  ;;  %v1218_v57 = vadd.f32 %v3195_v23, %v5244_v51 }
 0x27b   : > { %v3197_v38 = vpop.f32.mrb[31].mxu1  ;;  %3586 = vmatpush3.bf16.xpose.msra.mxu1 %v3583_v29 }
 0x27c   : > { %v3198_v37 = vadd.f32 %v3197_v38, %v3196_v20 }
 0x27e   : > { %v1223_v9 = vadd.f32 %v3198_v37, %v5244_v51  ;;  %v3199_v39 = vpop.f32.mrb[32].mxu1 }
 0x27f   : > { %v3200_v40 = vpop.f32.mrb[33].mxu1 }
 0x280   : > { %v3201_v59 = vadd.f32 %v3200_v40, %v3199_v39  ;;  %v3587_v44 = vpack.c.bf16 %v1223_v9, %v1218_v57 }
 0x282   : > { %v3202_v49 = vpop.f32.mrb[34].mxu1  ;;  %3588 = vmatprep.subr.bf16.mxu1 %v3587_v44  ;;  %v1228_v1 = vadd.f32 %v3201_v59, %v5244_v51 }
 0x283   : > { %v3203_v63 = vpop.f32.mrb[35].mxu1  ;;  %3590 = vmatpush3.bf16.xpose.msra.mxu1 %v3587_v44 }
 0x284   : > { %v3204_v60 = vadd.f32 %v3203_v63, %v3202_v49 }
 0x286   : > { %v1233_v13 = vadd.f32 %v3204_v60, %v5244_v51  ;;  %v3205_v18 = vpop.f32.mrb[36].mxu1 }
 0x287   : > { %v3206_v19 = vpop.f32.mrb[37].mxu1 }
 0x288   : > { %v3207_v29 = vadd.f32 %v3206_v19, %v3205_v18  ;;  %v3591_v20 = vpack.c.bf16 %v1233_v13, %v1228_v1 }
 0x28a   : > { %v3208_v23 = vpop.f32.mrb[38].mxu1  ;;  %3592 = vmatprep.subr.bf16.mxu1 %v3591_v20  ;;  %v1238_v57 = vadd.f32 %v3207_v29, %v5244_v51 }
 0x28b   : > { %v3209_v38 = vpop.f32.mrb[39].mxu1  ;;  %3594 = vmatpush3.bf16.xpose.msra.mxu1 %v3591_v20 }
 0x28c   : > { %v3210_v37 = vadd.f32 %v3209_v38, %v3208_v23 }
 0x28e   : > { %v1243_v9 = vadd.f32 %v3210_v37, %v5244_v51  ;;  %v3211_v39 = vpop.f32.mrb[40].mxu1 }
 0x28f   : > { %v3212_v40 = vpop.f32.mrb[41].mxu1 }
 0x290   : > { %v3213_v44 = vadd.f32 %v3212_v40, %v3211_v39  ;;  %v3595_v49 = vpack.c.bf16 %v1243_v9, %v1238_v57  ;;  %v1273_v40 = vld [vmem:[%s4950_s10 + $0x38] sm:$0xff] }
 0x292   : > { %v3214_v59 = vpop.f32.mrb[42].mxu1  ;;  %3596 = vmatprep.subr.bf16.mxu1 %v3595_v49  ;;  %v1248_v1 = vadd.f32 %v3213_v44, %v5244_v51 }
 0x293   : > { %v3215_v63 = vpop.f32.mrb[43].mxu1  ;;  %3598 = vmatpush3.bf16.xpose.msra.mxu1 %v3595_v49  ;;  %v1290_v49 = vld [vmem:[%s4950_s10 + $0xc0] sm:$0xff] }
 0x294   : > { %v3216_v60 = vadd.f32 %v3215_v63, %v3214_v59  ;;  %v1291_v59 = vld [vmem:[%s4950_s10 + $0xc8] sm:$0xff] }
 0x295   : > { %v3559_v63 = vpack.c.bf16 %v1291_v59, %v1290_v49  ;;  %v877_v49 = vld [vmem:[%s4937_s11 + $0x58] sm:$0xff]  ;;  %v876_v59 = vld [vmem:[%s4937_s11 + $0x50] sm:$0xff] }
 0x296   : > { %v1253_v13 = vadd.f32 %v3216_v60, %v5244_v51  ;;  %v3217_v18 = vpop.f32.mrb[44].mxu1  ;;  %v1274_v60 = vld [vmem:[%s4950_s10 + $0x40] sm:$0xff] }
 0x297   : > { %v3218_v19 = vpop.f32.mrb[45].mxu1 }
 0x298   : > { %v3219_v20 = vadd.f32 %v3218_v19, %v3217_v18  ;;  %v3599_v23 = vpack.c.bf16 %v1253_v13, %v1248_v1  ;;  %v1275_v1 = vld [vmem:[%s4950_s10 + $0x48] sm:$0xff]  ;;  %v1292_v18 = vld [vmem:[%s4950_s10 + $0xd0] sm:$0xff]  ;;  %v1293_v19 = vld [vmem:[%s4950_s10 + $0xd8] sm:$0xff] }
 0x299   : > { %v3561_v13 = vpack.c.bf16 %v1275_v1, %v1274_v60  ;;  %v878_v60 = vld [vmem:[%s4937_s11 + $0x60] sm:$0xff]  ;;  %v881_v1 = vld [vmem:[%s4937_s11 + $0x78] sm:$0xff] }
 0x29a   : > { %v3220_v29 = vpop.f32.mrb[46].mxu1  ;;  %3600 = vmatprep.subr.bf16.mxu1 %v3599_v23  ;;  %v1258_v57 = vadd.f32 %v3219_v20, %v5244_v51  ;;  %v3563_v20 = vpack.c.bf16 %v1293_v19, %v1292_v18  ;;  %v883_v18 = vld [vmem:[%s4937_s11 + $0x88] sm:$0xff]  ;;  %v882_v19 = vld [vmem:[%s4937_s11 + $0x80] sm:$0xff] }
 0x29b   : > { %v3221_v38 = vpop.f32.mrb[47].mxu1  ;;  %3602 = vmatpush3.bf16.xpose.msra.mxu1 %v3599_v23  ;;  %v1276_v23 = vld [vmem:[%s4950_s10 + $0x50] sm:$0xff] }
 0x29c   : > { %v3222_v37 = vadd.f32 %v3221_v38, %v3220_v29  ;;  %v1277_v29 = vld [vmem:[%s4950_s10 + $0x58] sm:$0xff] }
 0x29d   : > { %v3565_v38 = vpack.c.bf16 %v1277_v29, %v1276_v23  ;;  %v884_v23 = vld [vmem:[%s4937_s11 + $0x90] sm:$0xff]  ;;  %v887_v29 = vld [vmem:[%s4937_s11 + $0xa8] sm:$0xff] }
 0x29e   : > { %v1263_v9 = vadd.f32 %v3222_v37, %v5244_v51  ;;  %v1272_v51 = vld [vmem:[%s4950_s10 + $0x30] sm:$0xff]  ;;  %v1294_v37 = vld [vmem:[%s4950_s10 + $0xe0] sm:$0xff] }
 0x29f   : > { %v3557_v44 = vpack.c.bf16 %v1273_v40, %v1272_v51  ;;  %v872_v51 = vld [vmem:[%s4937_s11 + $0x30] sm:$0xff]  ;;  %v875_v40 = vld [vmem:[%s4937_s11 + $0x48] sm:$0xff] }
 0x2a0   : > { %v3603_v39 = vpack.c.bf16 %v1263_v9, %v1258_v57  ;;  %v1295_v57 = vld [vmem:[%s4950_s10 + $0xe8] sm:$0xff] }
 0x2a1   : > { %v3567_v9 = vpack.c.bf16 %v1295_v57, %v1294_v37  ;;  %v889_v37 = vld [vmem:[%s4937_s11 + $0xb8] sm:$0xff]  ;;  %v888_v57 = vld [vmem:[%s4937_s11 + $0xb0] sm:$0xff] }
 0x2a2   : > { %3604 = vmatprep.subr.bf16.mxu1 %v3603_v39 }
 0x2a3   : > { %3606 = vmatpush3.bf16.xpose.msra.mxu1 %v3603_v39  ;;  %v1278_v39 = vld [vmem:[%s4950_s10 + $0x60] sm:$0xff] }
 0x2aa   : > { %3400 = vmatmul.mubr.f32.vlgmr.msra.gmra.mrb[48].mxu1 %v5202_v50  ;;  %v1284_v50 = vld [vmem:[%s4950_s10 + $0x90] sm:$0xff] }
 0x2ab   : > { %3402 = vmatprep.mubr.f32.mxu1 %v5208_v10  ;;  %v1268_v10 = vld [vmem:[%s4950_s10 + $0x10] sm:$0xff] }
 0x2ae   : > { %3403 = vmatmul.mubr.f32.gmra.mrb[50].mxu1 %v5214_v28  ;;  %v1286_v28 = vld [vmem:[%s4950_s10 + $0xa0] sm:$0xff] }
 0x2af   : > { %3405 = vmatprep.mubr.f32.mxu1 %v5220_v41 }
 0x2b2   : > { %3406 = vmatmul.mubr.f32.gmra.mrb[52].mxu1 %v5226_v61  ;;  %v1271_v61 = vld [vmem:[%s4950_s10 + $0x28] sm:$0xff] }
 0x2b3   : > { %3408 = vmatprep.mubr.f32.mxu1 %v5232_v27  ;;  %v1288_v27 = vld [vmem:[%s4950_s10 + $0xb0] sm:$0xff] }
 0x2b6   : > { %3409 = vmatmul.mubr.f32.gmra.mrb[54].mxu1 %v5242_v48 }
 0x2b7   : > { %3411 = vmatprep.mubr.f32.mxu1 %v5191_v17  ;;  %v1285_v17 = vld [vmem:[%s4950_s10 + $0x98] sm:$0xff] }
 0x2ba   : > { %3412 = vmatmul.mubr.f32.gmra.mrb[56].mxu1 %v5195_v30  ;;  %v3547_v30 = vpack.c.bf16 %v1285_v17, %v1284_v50  ;;  %v1279_v50 = vld [vmem:[%s4950_s10 + $0x68] sm:$0xff] }
 0x2bb   : > { %3414 = vmatprep.mubr.f32.mxu1 %v5205_v54  ;;  %v1269_v54 = vld [vmem:[%s4950_s10 + $0x18] sm:$0xff]  ;;  %v3569_v17 = vpack.c.bf16 %v1279_v50, %v1278_v39  ;;  %v890_v39 = vld [vmem:[%s4937_s11 + $0xc0] sm:$0xff] }
 0x2bc   : > { %3548 = vmatprep.subr.bf16.mxu0 %v3547_v30  ;;  %v1296_v30 = vld [vmem:[%s4950_s10 + $0xf0] sm:$0xff]  ;;  %v893_v50 = vld [vmem:[%s4937_s11 + $0xd8] sm:$0xff] }
 0x2be   : > { %3415 = vmatmul.mubr.f32.gmra.mrb[58].mxu1 %v5211_v16  ;;  %v3549_v16 = vpack.c.bf16 %v1269_v54, %v1268_v10  ;;  %v1297_v10 = vld [vmem:[%s4950_s10 + $0xf8] sm:$0xff] }
 0x2bf   : > { %3417 = vmatprep.mubr.f32.mxu1 %v5217_v31  ;;  %v1287_v31 = vld [vmem:[%s4950_s10 + $0xa8] sm:$0xff]  ;;  %v3571_v54 = vpack.c.bf16 %v1297_v10, %v1296_v30  ;;  %v894_v10 = vld [vmem:[%s4937_s11 + $0xe0] sm:$0xff] }
 0x2c0   : > { %3550 = vmatpush3.bf16.msra.mxu0 %v3549_v16  ;;  %v3551_v41 = vpack.c.bf16 %v1287_v31, %v1286_v28  ;;  %v1280_v16 = vld [vmem:[%s4950_s10 + $0x70] sm:$0xff]  ;;  %v1281_v28 = vld [vmem:[%s4950_s10 + $0x78] sm:$0xff]  ;;  %v895_v30 = vld [vmem:[%s4937_s11 + $0xe8] sm:$0xff] }
 0x2c1   : > { %v3573_v31 = vpack.c.bf16 %v1281_v28, %v1280_v16  ;;  %v896_v16 = vld [vmem:[%s4937_s11 + $0xf0] sm:$0xff] }
 0x2c2   : > { %3418 = vmatmul.mubr.f32.gmra.mrb[60].mxu1 %v5223_v47  ;;  %v1270_v47 = vld [vmem:[%s4950_s10 + $0x20] sm:$0xff]  ;;  %3552 = vmatprep.subr.bf16.mxu0 %v3551_v41  ;;  %v867_v41 = vld [vmem:[%s4937_s11 + $0x8] sm:$0xff] }
 0x2c3   : > { %3420 = vmatprep.mubr.f32.mxu1 %v5229_v6  ;;  %v3553_v6 = vpack.c.bf16 %v1271_v61, %v1270_v47  ;;  %1369 = vmatprep.mubr.f32.mxu0 %v867_v41  ;;  %v866_v47 = vld [vmem:[%s4937_s11] sm:$0xff]  ;;  %v869_v61 = vld [vmem:[%s4937_s11 + $0x18] sm:$0xff] }
 0x2c5   : > { %3554 = vmatpush3.bf16.msra.mxu0 %v3553_v6  ;;  %v868_v6 = vld [vmem:[%s4937_s11 + $0x10] sm:$0xff] }
 0x2c6   : > { %3421 = vmatmul.mubr.f32.gmra.mrb[62].mxu1 %v5235_v34  ;;  %v1289_v34 = vld [vmem:[%s4950_s10 + $0xb8] sm:$0xff]  ;;  %s5475_s10 = scalar_lea.vmem [#allocation16], %s3042_s29 }
 0x2c7   : > { %v3555_v48 = vpack.c.bf16 %v1289_v34, %v1288_v27  ;;  %v871_v27 = vld [vmem:[%s4937_s11 + $0x28] sm:$0xff]  ;;  %v870_v34 = vld [vmem:[%s4937_s11 + $0x20] sm:$0xff] }
 0x2c9   : > { %3556 = vmatprep.subr.bf16.mxu0 %v3555_v48  ;;  %v873_v48 = vld [vmem:[%s4937_s11 + $0x38] sm:$0xff] }
 0x2ca   : > { %3558 = vmatpush3.bf16.msra.mxu0 %v3557_v44  ;;  %v874_v44 = vld [vmem:[%s4937_s11 + $0x40] sm:$0xff] }
 0x2cb   : > { %3560 = vmatprep.subr.bf16.mxu0 %v3559_v63  ;;  %v879_v63 = vld [vmem:[%s4937_s11 + $0x68] sm:$0xff] }
 0x2ce   : > { %3562 = vmatpush3.bf16.msra.mxu0 %v3561_v13  ;;  %v880_v13 = vld [vmem:[%s4937_s11 + $0x70] sm:$0xff] }
 0x2cf   : > { %3564 = vmatprep.subr.bf16.mxu0 %v3563_v20  ;;  %v885_v20 = vld [vmem:[%s4937_s11 + $0x98] sm:$0xff] }
 0x2d2   : > { %3566 = vmatpush3.bf16.msra.mxu0 %v3565_v38  ;;  %v886_v38 = vld [vmem:[%s4937_s11 + $0xa0] sm:$0xff] }
 0x2d3   : > { %3568 = vmatprep.subr.bf16.mxu0 %v3567_v9  ;;  %v891_v9 = vld [vmem:[%s4937_s11 + $0xc8] sm:$0xff] }
 0x2d6   : > { %3570 = vmatpush3.bf16.msra.mxu0 %v3569_v17  ;;  %v892_v17 = vld [vmem:[%s4937_s11 + $0xd0] sm:$0xff] }
 0x2d7   : > { %3572 = vmatprep.subr.bf16.mxu0 %v3571_v54  ;;  %v897_v54 = vld [vmem:[%s4937_s11 + $0xf8] sm:$0xff]  ;;  %s6329_s11 = sld [smem:[#allocation56_spill]] }
 0x2da   : > { %3574 = vmatpush3.bf16.msra.mxu0 %v3573_v31 }
 0x2dd   : > { %1370 = vmatmul.mubr.f32.vlgmr.msra.gmra.mrb[16].mxu0 %v866_v47  ;;  %s798_s25 = scalar_lea.vmem %s6329_s11, %s5182_s9  ;;  %s5541_s9 = scalar_lea.vmem [#allocation14], %s4934_s12 }
 0x2de   : > { %1374 = vmatprep.mubr.f32.mxu0 %v869_v61 }
 0x2e1   : > { %1375 = vmatmul.mubr.f32.gmra.mrb[18].mxu0 %v868_v6 }
 0x2e2   : > { %1379 = vmatprep.mubr.f32.mxu0 %v871_v27 }
 0x2e5   : > { %1380 = vmatmul.mubr.f32.gmra.mrb[20].mxu0 %v870_v34 }
 0x2e6   : > { %1384 = vmatprep.mubr.f32.mxu0 %v873_v48 }
 0x2e9   : > { %1385 = vmatmul.mubr.f32.gmra.mrb[22].mxu0 %v872_v51 }
 0x2ea   : > { %1389 = vmatprep.mubr.f32.mxu0 %v875_v40 }
 0x2ed   : > { %1390 = vmatmul.mubr.f32.gmra.mrb[24].mxu0 %v874_v44 }
 0x2ee   : > { %1394 = vmatprep.mubr.f32.mxu0 %v877_v49 }
 0x2f1   : > { %1395 = vmatmul.mubr.f32.gmra.mrb[26].mxu0 %v876_v59 }
 0x2f2   : > { %1399 = vmatprep.mubr.f32.mxu0 %v879_v63 }
 0x2f5   : > { %1400 = vmatmul.mubr.f32.gmra.mrb[28].mxu0 %v878_v60 }
 0x2f6   : > { %1404 = vmatprep.mubr.f32.mxu0 %v881_v1 }
 0x2f9   : > { %1405 = vmatmul.mubr.f32.gmra.mrb[30].mxu0 %v880_v13 }
 0x2fa   : > { %1409 = vmatprep.mubr.f32.mxu0 %v883_v18 }
 0x2fd   : > { %1410 = vmatmul.mubr.f32.gmra.mrb[32].mxu0 %v882_v19  ;;  %v5389_v19 = vld [vmem:[%s798_s25] ss:$0 sm:$0xff] }
 0x2fe   : > { %1414 = vmatprep.mubr.f32.mxu0 %v885_v20 }
 0x301   : > { %1415 = vmatmul.mubr.f32.gmra.mrb[34].mxu0 %v884_v23 }
 0x302   : > { %1419 = vmatprep.mubr.f32.mxu0 %v887_v29 }
 0x305   : > { %1420 = vmatmul.mubr.f32.gmra.mrb[36].mxu0 %v886_v38 }
 0x306   : > { %1424 = vmatprep.mubr.f32.mxu0 %v889_v37 }
 0x309   : > { %1425 = vmatmul.mubr.f32.gmra.mrb[38].mxu0 %v888_v57 }
 0x30a   : > { %1429 = vmatprep.mubr.f32.mxu0 %v891_v9 }
 0x30d   : > { %1430 = vmatmul.mubr.f32.gmra.mrb[40].mxu0 %v890_v39 }
 0x30e   : > { %1434 = vmatprep.mubr.f32.mxu0 %v893_v50 }
 0x311   : > { %1435 = vmatmul.mubr.f32.gmra.mrb[42].mxu0 %v892_v17 }
 0x312   : > { %1439 = vmatprep.mubr.f32.mxu0 %v895_v30 }
 0x315   : > { %1440 = vmatmul.mubr.f32.gmra.mrb[44].mxu0 %v894_v10 }
 0x316   : > { %1444 = vmatprep.mubr.f32.mxu0 %v897_v54 }
 0x319   : > { %1445 = vmatmul.mubr.f32.gmra.mrb[46].mxu0 %v896_v16 }
 0x37d   : > { %v5337_v28 = vpop.f32.mrb[48].mxu1 }
 0x37e   : > { %v5339_v31 = vpop.f32.mrb[49].mxu1 }
 0x37f   : > { %1595 = vmax.xlane.f32.xlu0 %v5339_v31 }
 0x381   : > { %v5342_v41 = vpop.f32.mrb[50].mxu1 }
 0x382   : > { %v5344_v47 = vpop.f32.mrb[51].mxu1 }
 0x383   : > { %1597 = vmax.xlane.f32.xlu0 %v5337_v28  ;;  %1599 = vmax.xlane.f32.xlu1 %v5344_v47 }
 0x385   : > { %v5348_v61 = vpop.f32.mrb[52].mxu1 }
 0x386   : > { %v5350_v6 = vpop.f32.mrb[53].mxu1 }
 0x387   : > { %1601 = vmax.xlane.f32.xlu1 %v5342_v41  ;;  %1603 = vmax.xlane.f32.xlu0 %v5350_v6 }
 0x389   : > { %v5354_v27 = vpop.f32.mrb[54].mxu1 }
 0x38a   : > { %v5356_v34 = vpop.f32.mrb[55].mxu1 }
 0x38b   : > { %1605 = vmax.xlane.f32.xlu1 %v5348_v61  ;;  %1607 = vmax.xlane.f32.xlu0 %v5356_v34 }
 0x38d   : > { %v5360_v48 = vpop.f32.mrb[56].mxu1 }
 0x38e   : > { %v5362_v51 = vpop.f32.mrb[57].mxu1 }
 0x38f   : > { %1609 = vmax.xlane.f32.xlu1 %v5354_v27  ;;  %1611 = vmax.xlane.f32.xlu0 %v5362_v51 }
 0x391   : > { %v5366_v40 = vpop.f32.mrb[58].mxu1 }
 0x392   : > { %v5368_v44 = vpop.f32.mrb[59].mxu1 }
 0x393   : > { %1613 = vmax.xlane.f32.xlu1 %v5360_v48  ;;  %1615 = vmax.xlane.f32.xlu0 %v5368_v44 }
 0x395   : > { %v5372_v49 = vpop.f32.mrb[60].mxu1 }
 0x396   : > { %v5374_v59 = vpop.f32.mrb[61].mxu1 }
 0x397   : > { %1617 = vmax.xlane.f32.xlu1 %v5366_v40  ;;  %1619 = vmax.xlane.f32.xlu0 %v5374_v59 }
 0x399   : > { %v5378_v63 = vpop.f32.mrb[62].mxu1 }
 0x39a   : > { %v5380_v60 = vpop.f32.mrb[63].mxu1 }
 0x39b   : > { %1621 = vmax.xlane.f32.xlu1 %v5372_v49  ;;  %1623 = vmax.xlane.f32.xlu0 %v5380_v60 }
 0x39f   : > { %1625 = vmax.xlane.f32.xlu1 %v5378_v63 }
 0x3b0   : > { %v3255_v1 = vpop.f32.mrb[16].mxu0 }
 0x3b1   : > { %v3256_v13 = vpop.f32.mrb[17].mxu0 }
 0x3b2   : > { %v3257_v18 = vadd.f32 %v3256_v13, %v3255_v1 }
 0x3b4   : > { %v3258_v20 = vpop.f32.mrb[18].mxu0  ;;  %v1372_v29 = vadd.f32 %v3257_v18, %v5389_v19 }
 0x3b5   : > { %v3259_v23 = vpop.f32.mrb[19].mxu0 }
 0x3b6   : > { %v3260_v38 = vadd.f32 %v3259_v23, %v3258_v20 }
 0x3b8   : > { %v1377_v37 = vadd.f32 %v3260_v38, %v5389_v19  ;;  %v3261_v57 = vpop.f32.mrb[20].mxu0 }
 0x3b9   : > { %v3262_v9 = vpop.f32.mrb[21].mxu0 }
 0x3ba   : > { %v3263_v39 = vadd.f32 %v3262_v9, %v3261_v57  ;;  %v3607_v50 = vpack.c.bf16 %v1377_v37, %v1372_v29 }
 0x3bc   : > { %v3264_v17 = vpop.f32.mrb[22].mxu0  ;;  %3608 = vmatprep.subr.bf16.mxu1 %v3607_v50  ;;  %v1382_v10 = vadd.f32 %v3263_v39, %v5389_v19 }
 0x3bd   : > { %v3265_v30 = vpop.f32.mrb[23].mxu0  ;;  %3610 = vmatpush3.bf16.msra.mxu1 %v3607_v50 }
 0x3be   : > { %v3266_v54 = vadd.f32 %v3265_v30, %v3264_v17 }
 0x3c0   : > { %v1387_v16 = vadd.f32 %v3266_v54, %v5389_v19  ;;  %v3267_v1 = vpop.f32.mrb[24].mxu0 }
 0x3c1   : > { %v3268_v13 = vpop.f32.mrb[25].mxu0 }
 0x3c2   : > { %v3269_v46 = vadd.f32 %v3268_v13, %v3267_v1  ;;  %v3611_v18 = vpack.c.bf16 %v1387_v16, %v1382_v10 }
 0x3c4   : > { %v3270_v20 = vpop.f32.mrb[26].mxu0  ;;  %3612 = vmatprep.subr.bf16.mxu1 %v3611_v18  ;;  %v1392_v38 = vadd.f32 %v3269_v46, %v5389_v19 }
 0x3c5   : > { %v3271_v23 = vpop.f32.mrb[27].mxu0  ;;  %3614 = vmatpush3.bf16.msra.mxu1 %v3611_v18 }
 0x3c6   : > { %v3272_v29 = vadd.f32 %v3271_v23, %v3270_v20 }
 0x3c8   : > { %v1397_v37 = vadd.f32 %v3272_v29, %v5389_v19  ;;  %v3273_v57 = vpop.f32.mrb[28].mxu0 }
 0x3c9   : > { %v3274_v9 = vpop.f32.mrb[29].mxu0 }
 0x3ca   : > { %v3275_v50 = vadd.f32 %v3274_v9, %v3273_v57  ;;  %v3615_v39 = vpack.c.bf16 %v1397_v37, %v1392_v38 }
 0x3cc   : > { %v3276_v17 = vpop.f32.mrb[30].mxu0  ;;  %3616 = vmatprep.subr.bf16.mxu1 %v3615_v39  ;;  %v1402_v54 = vadd.f32 %v3275_v50, %v5389_v19 }
 0x3cd   : > { %v3277_v30 = vpop.f32.mrb[31].mxu0  ;;  %3618 = vmatpush3.bf16.msra.mxu1 %v3615_v39 }
 0x3ce   : > { %v3278_v10 = vadd.f32 %v3277_v30, %v3276_v17 }
 0x3d0   : > { %v1407_v13 = vadd.f32 %v3278_v10, %v5389_v19  ;;  %v3279_v46 = vpop.f32.mrb[32].mxu0 }
 0x3d1   : > { %v3280_v18 = vpop.f32.mrb[33].mxu0 }
 0x3d2   : > { %v3281_v23 = vadd.f32 %v3280_v18, %v3279_v46  ;;  %v3619_v29 = vpack.c.bf16 %v1407_v13, %v1402_v54 }
 0x3d4   : > { %v3282_v9 = vpop.f32.mrb[34].mxu0  ;;  %3620 = vmatprep.subr.bf16.mxu1 %v3619_v29  ;;  %v1412_v17 = vadd.f32 %v3281_v23, %v5389_v19 }
 0x3d5   : > { %v3283_v50 = vpop.f32.mrb[35].mxu0  ;;  %3622 = vmatpush3.bf16.msra.mxu1 %v3619_v29 }
 0x3d6   : > { %v3284_v30 = vadd.f32 %v3283_v50, %v3282_v9 }
 0x40c   : > { %v1596_v16 = vpop.xlane.xlu0 %1595 }
 0x40d   : > { %v1627_v1 = vsub.f32 %v5339_v31, %v1596_v16 }
 0x40f   : > { %v1643_v20 = vmul.f32 1.442695, %v1627_v1 }
 0x410   : > { %v1598_v53 = vpop.xlane.xlu0 %1597  ;;  %v1600_v57 = vpop.xlane.xlu1 %1599 }
 0x411   : > { %3857 = vpow2.f32 %v1643_v20  ;;  %v1628_v38 = vsub.f32 %v5337_v28, %v1598_v53  ;;  %v1629_v37 = vsub.f32 %v5344_v47, %v1600_v57  ;;  %v1417_v53 = vadd.f32 %v3284_v30, %v5389_v19  ;;  %v3285_v28 = vpop.f32.mrb[36].mxu0 }
 0x412   : > { %v3286_v47 = vpop.f32.mrb[37].mxu0 }
 0x413   : > { %v1645_v39 = vmul.f32 1.442695, %v1628_v38  ;;  %v1647_v31 = vmul.f32 1.442695, %v1629_v37  ;;  %v3287_v18 = vadd.f32 %v3286_v47, %v3285_v28  ;;  %v3623_v20 = vpack.c.bf16 %v1417_v53, %v1412_v17  ;;  %v3288_v37 = vpop.f32.mrb[38].mxu0 }
 0x414   : > { %v1602_v10 = vpop.xlane.xlu1 %1601  ;;  %v1604_v16 = vpop.xlane.xlu0 %1603 }
 0x415   : > { %3859 = vpow2.f32 %v1645_v39  ;;  %v1630_v54 = vsub.f32 %v5342_v41, %v1602_v10  ;;  %v1631_v1 = vsub.f32 %v5350_v6, %v1604_v16  ;;  %3624 = vmatprep.subr.bf16.mxu1 %v3623_v20  ;;  %v3289_v41 = vpop.f32.mrb[39].mxu0  ;;  %v1422_v39 = vadd.f32 %v3287_v18, %v5389_v19 }
 0x416   : > { %3861 = vpow2.f32 %v1647_v31  ;;  %3626 = vmatpush3.bf16.msra.mxu1 %v3623_v20  ;;  %v3290_v31 = vadd.f32 %v3289_v41, %v3288_v37  ;;  %v3291_v16 = vpop.f32.mrb[40].mxu0 }
 0x417   : > { %v1649_v13 = vmul.f32 1.442695, %v1630_v54  ;;  %v1651_v46 = vmul.f32 1.442695, %v1631_v1  ;;  %v3292_v54 = vpop.f32.mrb[41].mxu0 }
 0x418   : > { %v1606_v29 = vpop.xlane.xlu1 %1605  ;;  %v1608_v57 = vpop.xlane.xlu0 %1607  ;;  %v1427_v10 = vadd.f32 %v3290_v31, %v5389_v19  ;;  %v3293_v47 = vadd.f32 %v3292_v54, %v3291_v16 }
 0x419   : > { %3863 = vpow2.f32 %v1649_v13  ;;  %v1632_v23 = vsub.f32 %v5348_v61, %v1606_v29  ;;  %v1633_v38 = vsub.f32 %v5356_v34, %v1608_v57  ;;  %v3294_v29 = vpop.f32.mrb[42].mxu0 }
 0x41a   : > { %3865 = vpow2.f32 %v1651_v46  ;;  %v3627_v13 = vpack.c.bf16 %v1427_v10, %v1422_v39  ;;  %v3295_v57 = vpop.f32.mrb[43].mxu0  ;;  %v1432_v41 = vadd.f32 %v3293_v47, %v5389_v19 }
 0x41b   : > { %v5408_v6 = vpop.eup %3857  ;;  %v1653_v9 = vmul.f32 1.442695, %v1632_v23  ;;  %v1655_v50 = vmul.f32 1.442695, %v1633_v38 }
 0x41c   : > { %v1610_v17 = vpop.xlane.xlu1 %1609  ;;  %v1612_v30 = vpop.xlane.xlu0 %1611  ;;  %1675 = vadd.xlane.f32.xlu0 %v5408_v6  ;;  %3628 = vmatprep.subr.bf16.mxu1 %v3627_v13 }
 0x41d   : > { %3867 = vpow2.f32 %v1653_v9  ;;  %v1634_v61 = vsub.f32 %v5354_v27, %v1610_v17  ;;  %v1635_v34 = vsub.f32 %v5362_v51, %v1612_v30  ;;  %3630 = vmatpush3.bf16.msra.mxu1 %v3627_v13  ;;  %v3296_v9 = vadd.f32 %v3295_v57, %v3294_v29  ;;  %v3297_v30 = vpop.f32.mrb[44].mxu0 }
 0x41e   : > { %3869 = vpow2.f32 %v1655_v50 }
 0x41f   : > { %v5415_v1 = vpop.eup %3859  ;;  %v1657_v53 = vmul.f32 1.442695, %v1634_v61  ;;  %v1659_v28 = vmul.f32 1.442695, %v1635_v34  ;;  %v1437_v17 = vadd.f32 %v3296_v9, %v5389_v19  ;;  %v3298_v61 = vpop.f32.mrb[45].mxu0 }
 0x420   : > { %v5417_v46 = vpop.eup %3861  ;;  %v1614_v18 = vpop.xlane.xlu1 %1613  ;;  %1677 = vadd.xlane.f32.xlu1 %v5415_v1  ;;  %v3299_v54 = vadd.f32 %v3298_v61, %v3297_v30 }
 0x421   : > { %v1616_v20 = vpop.xlane.xlu0 %1615  ;;  %3871 = vpow2.f32 %v1657_v53  ;;  %v1636_v27 = vsub.f32 %v5360_v48, %v1614_v18  ;;  %1679 = vadd.xlane.f32.xlu0 %v5417_v46  ;;  %v3631_v53 = vpack.c.bf16 %v1437_v17, %v1432_v41  ;;  %v3300_v18 = vpop.f32.mrb[46].mxu0 }
 0x422   : > { %v1637_v51 = vsub.f32 %v5368_v44, %v1616_v20  ;;  %3873 = vpow2.f32 %v1659_v28  ;;  %v3301_v20 = vpop.f32.mrb[47].mxu0 }
 0x423   : > { %v5423_v23 = vpop.eup %3863  ;;  %v1661_v38 = vmul.f32 1.442695, %v1636_v27  ;;  %3632 = vmatprep.subr.bf16.mxu1 %v3631_v53  ;;  %v3302_v57 = vadd.f32 %v3301_v20, %v3300_v18 }
 0x424   : > { %v1663_v37 = vmul.f32 1.442695, %v1637_v51  ;;  %v5426_v50 = vpop.eup %3865  ;;  %v1618_v39 = vpop.xlane.xlu1 %1617  ;;  %1681 = vadd.xlane.f32.xlu1 %v5423_v23  ;;  %3634 = vmatpush3.bf16.msra.mxu1 %v3631_v53 }
 0x425   : > { %v1620_v48 = vpop.xlane.xlu0 %1619  ;;  %3875 = vpow2.f32 %v1661_v38  ;;  %v1638_v44 = vsub.f32 %v5366_v40, %v1618_v39  ;;  %1683 = vadd.xlane.f32.xlu0 %v5426_v50  ;;  %v1447_v41 = vadd.f32 %v3302_v57, %v5389_v19 }
 0x426   : > { %v1639_v31 = vsub.f32 %v5374_v59, %v1620_v48  ;;  %3877 = vpow2.f32 %v1663_v37 }
 0x427   : > { %v5433_v34 = vpop.eup %3867  ;;  %v1665_v10 = vmul.f32 1.442695, %v1638_v44 }
 0x428   : > { %v1667_v16 = vmul.f32 1.442695, %v1639_v31  ;;  %v5435_v28 = vpop.eup %3869  ;;  %v1622_v47 = vpop.xlane.xlu1 %1621  ;;  %1685 = vadd.xlane.f32.xlu1 %v5433_v34 }
 0x429   : > { %v1624_v40 = vpop.xlane.xlu0 %1623  ;;  %3879 = vpow2.f32 %v1665_v10  ;;  %v1640_v59 = vsub.f32 %v5372_v49, %v1622_v47  ;;  %1687 = vadd.xlane.f32.xlu0 %v5435_v28  ;;  %v1442_v49 = vadd.f32 %v3299_v54, %v5389_v19 }
 0x42a   : > { %v1641_v13 = vsub.f32 %v5380_v60, %v1624_v40  ;;  %3881 = vpow2.f32 %v1667_v16 }
 0x42b   : > { %v5441_v27 = vpop.eup %3871  ;;  %v1669_v51 = vmul.f32 1.442695, %v1640_v59  ;;  %v3635_v44 = vpack.c.bf16 %v1447_v41, %v1442_v49 }
 0x42c   : > { %v1671_v29 = vmul.f32 1.442695, %v1641_v13  ;;  %v5443_v38 = vpop.eup %3873  ;;  %1689 = vadd.xlane.f32.xlu1 %v5441_v27  ;;  %v1626_v37 = vpop.xlane.xlu1 %1625 }
 0x42d   : > { %3883 = vpow2.f32 %v1669_v51  ;;  %v1642_v60 = vsub.f32 %v5378_v63, %v1626_v37  ;;  %1691 = vadd.xlane.f32.xlu0 %v5443_v38  ;;  %3636 = vmatprep.subr.bf16.mxu1 %v3635_v44 }
 0x42e   : > { %3885 = vpow2.f32 %v1671_v29  ;;  %3638 = vmatpush3.bf16.msra.mxu1 %v3635_v44 }
 0x42f   : > { %v5450_v9 = vpop.eup %3875  ;;  %v1673_v39 = vmul.f32 1.442695, %v1642_v60 }
 0x430   : > { %v5452_v48 = vpop.eup %3877  ;;  %1693 = vadd.xlane.f32.xlu1 %v5450_v9 }
 0x431   : > { %3887 = vpow2.f32 %v1673_v39  ;;  %1695 = vadd.xlane.f32.xlu0 %v5452_v48 }
 0x433   : > { %v5456_v31 = vpop.eup %3879 }
 0x434   : > { %v5458_v63 = vpop.eup %3881  ;;  %1697 = vadd.xlane.f32.xlu1 %v5456_v31 }
 0x435   : > { %1699 = vadd.xlane.f32.xlu0 %v5458_v63 }
 0x437   : > { %v5462_v19 = vpop.eup %3883 }
 0x438   : > { %v5464_v17 = vpop.eup %3885  ;;  %1701 = vadd.xlane.f32.xlu1 %v5462_v19 }
 0x439   : > { %1703 = vadd.xlane.f32.xlu0 %v5464_v17 }
 0x43b   : > { %v5468_v30 = vpop.eup %3887 }
 0x43c   : > { %1705 = vadd.xlane.f32.xlu1 %v5468_v30 }
 0x4a9   : > { %v1676_v61 = vpop.xlane.xlu0 %1675 }
 0x4aa   : > { %3889 = vrcp.f32 %v1676_v61 }
 0x4ad   : > { %v1678_v10 = vpop.xlane.xlu1 %1677 }
 0x4ae   : > { %3891 = vrcp.f32 %v1678_v10  ;;  %v1680_v16 = vpop.xlane.xlu0 %1679 }
 0x4af   : > { %3893 = vrcp.f32 %v1680_v16 }
 0x4b1   : > { %v1682_v54 = vpop.xlane.xlu1 %1681 }
 0x4b2   : > { %3895 = vrcp.f32 %v1682_v54  ;;  %v1684_v53 = vpop.xlane.xlu0 %1683 }
 0x4b3   : > { %3897 = vrcp.f32 %v1684_v53 }
 0x4b4   : > { %v3890_v47 = vpop.eup %3889 }
 0x4b5   : > { %v1686_v40 = vpop.xlane.xlu1 %1685  ;;  %v1723_v59 = vmul.f32 %v3890_v47, %v5408_v6 }
 0x4b6   : > { %3899 = vrcp.f32 %v1686_v40  ;;  %v1688_v13 = vpop.xlane.xlu0 %1687 }
 0x4b7   : > { %3901 = vrcp.f32 %v1688_v13  ;;  %1739 = vst [vmem:[%s5475_s10] sm:$0xff] %v1723_v59  ;;  %3455 = vmatprep.mubr.f32.mxu1 %v1723_v59 }
 0x4b8   : > { %v3892_v18 = vpop.eup %3891 }
 0x4b9   : > { %v3894_v20 = vpop.eup %3893  ;;  %v1724_v51 = vmul.f32 %v3892_v18, %v5415_v1  ;;  %v1690_v29 = vpop.xlane.xlu1 %1689 }
 0x4ba   : > { %3903 = vrcp.f32 %v1690_v29  ;;  %v1692_v57 = vpop.xlane.xlu0 %1691  ;;  %v1725_v6 = vmul.f32 %v3894_v20, %v5417_v46 }
 0x4bb   : > { %1740 = vst [vmem:[%s5475_s10 + $0x8] sm:$0xff] %v1724_v51  ;;  %3905 = vrcp.f32 %v1692_v57  ;;  %3456 = vmatmul.mubr.f32.vlgmr.msra.gmra.mrb[64].mxu1 %v1724_v51 }
 0x4bc   : > { %v3896_v37 = vpop.eup %3895  ;;  %1741 = vst [vmem:[%s5475_s10 + $0x10] sm:$0xff] %v1725_v6  ;;  %3458 = vmatprep.mubr.f32.mxu1 %v1725_v6 }
 0x4bd   : > { %v3898_v49 = vpop.eup %3897  ;;  %v1694_v60 = vpop.xlane.xlu1 %1693  ;;  %v1726_v41 = vmul.f32 %v3896_v37, %v5423_v23 }
 0x4be   : > { %3907 = vrcp.f32 %v1694_v60  ;;  %v1696_v1 = vpop.xlane.xlu0 %1695  ;;  %v1727_v39 = vmul.f32 %v3898_v49, %v5426_v50 }
 0x4bf   : > { %3909 = vrcp.f32 %v1696_v1  ;;  %1742 = vst [vmem:[%s5475_s10 + $0x18] sm:$0xff] %v1726_v41  ;;  %3459 = vmatmul.mubr.f32.gmra.mrb[66].mxu1 %v1726_v41 }
 0x4c0   : > { %v3900_v46 = vpop.eup %3899  ;;  %1743 = vst [vmem:[%s5475_s10 + $0x20] sm:$0xff] %v1727_v39  ;;  %3461 = vmatprep.mubr.f32.mxu1 %v1727_v39 }
 0x4c1   : > { %v3902_v44 = vpop.eup %3901  ;;  %v1698_v61 = vpop.xlane.xlu1 %1697  ;;  %v1728_v10 = vmul.f32 %v3900_v46, %v5433_v34 }
 0x4c2   : > { %3911 = vrcp.f32 %v1698_v61  ;;  %v1700_v16 = vpop.xlane.xlu0 %1699  ;;  %v1729_v23 = vmul.f32 %v3902_v44, %v5435_v28 }
 0x4c3   : > { %3913 = vrcp.f32 %v1700_v16  ;;  %1744 = vst [vmem:[%s5475_s10 + $0x28] sm:$0xff] %v1728_v10  ;;  %3462 = vmatmul.mubr.f32.gmra.mrb[68].mxu1 %v1728_v10 }
 0x4c4   : > { %v3904_v50 = vpop.eup %3903  ;;  %1745 = vst [vmem:[%s5475_s10 + $0x30] sm:$0xff] %v1729_v23  ;;  %3464 = vmatprep.mubr.f32.mxu1 %v1729_v23 }
 0x4c5   : > { %v3906_v54 = vpop.eup %3905  ;;  %v1702_v53 = vpop.xlane.xlu1 %1701  ;;  %v1730_v47 = vmul.f32 %v3904_v50, %v5441_v27 }
 0x4c6   : > { %3915 = vrcp.f32 %v1702_v53  ;;  %v1704_v40 = vpop.xlane.xlu0 %1703  ;;  %v1731_v34 = vmul.f32 %v3906_v54, %v5443_v38  ;;  %v1906_v54 = vlaneseq (!%p3046_p9) }
 0x4c7   : > { %3917 = vrcp.f32 %v1704_v40  ;;  %1746 = vst [vmem:[%s5475_s10 + $0x38] sm:$0xff] %v1730_v47  ;;  %3465 = vmatmul.mubr.f32.gmra.mrb[70].mxu1 %v1730_v47  ;;  %v1904_v47 = vld [vmem:[%s6331_s19] sm:$0x3] (!%p3046_p9) }
 0x4c8   : > { %v3908_v28 = vpop.eup %3907  ;;  %1747 = vst [vmem:[%s5475_s10 + $0x40] sm:$0xff] %v1731_v34  ;;  %3467 = vmatprep.mubr.f32.mxu1 %v1731_v34  ;;  %v1907_v53 = vshrl.u32 (!%p3046_p9), %v1906_v54, 7 }
 0x4c9   : > { %v3910_v59 = vpop.eup %3909  ;;  %v1706_v13 = vpop.xlane.xlu1 %1705  ;;  %v1732_v18 = vmul.f32 %v3908_v28, %v5450_v9 }
 0x4ca   : > { %3919 = vrcp.f32 %v1706_v13  ;;  %v1733_v27 = vmul.f32 %v3910_v59, %v5452_v48  ;;  %v1908_v40 = vsub.s32 (!%p3046_p9), 0, %v1907_v53  ;;  %v1912_v34 = vsub.s32 (!%p3046_p9), 1, %v1907_v53 }
 0x4cb   : > { %1748 = vst [vmem:[%s5475_s10 + $0x48] sm:$0xff] %v1732_v18  ;;  %3468 = vmatmul.mubr.f32.gmra.mrb[72].mxu1 %v1732_v18 }
 0x4cc   : > { %v3912_v20 = vpop.eup %3911  ;;  %1749 = vst [vmem:[%s5475_s10 + $0x50] sm:$0xff] %v1733_v27  ;;  %3470 = vmatprep.mubr.f32.mxu1 %v1733_v27  ;;  %v1909_v28 = vrot.slane (!%p3046_p9), %v1904_v47, %v1908_v40  ;;  %v1913_v59 = vrot.slane (!%p3046_p9), %v1904_v47, %v1912_v34 }
 0x4cd   : > { %v3914_v38 = vpop.eup %3913  ;;  %v1734_v51 = vmul.f32 %v3912_v20, %v5456_v31 }
 0x4ce   : > { %v1735_v29 = vmul.f32 %v3914_v38, %v5458_v63  ;;  %v1916_v13 = vadd.f32 (!%p3046_p9), %v1909_v28, %v5020_v4  ;;  %v1917_v18 = vadd.f32 (!%p3046_p9), %v1913_v59, %v5017_v3  ;;  %v1918_v27 = vadd.f32 (!%p3046_p9), %v1909_v28, %v5034_v11 }
 0x4cf   : > { %1750 = vst [vmem:[%s5475_s10 + $0x58] sm:$0xff] %v1734_v51  ;;  %3471 = vmatmul.mubr.f32.gmra.mrb[74].mxu1 %v1734_v51  ;;  %v1919_v20 = vadd.f32 (!%p3046_p9), %v1913_v59, %v5026_v8  ;;  %v1920_v38 = vadd.f32 (!%p3046_p9), %v1909_v28, %v5054_v21  ;;  %v1921_v51 = vadd.f32 (!%p3046_p9), %v1913_v59, %v5041_v14 }
 0x4d0   : > { %v3916_v57 = vpop.eup %3915  ;;  %1751 = vst [vmem:[%s5475_s10 + $0x60] sm:$0xff] %v1735_v29  ;;  %3473 = vmatprep.mubr.f32.mxu1 %v1735_v29  ;;  %v1922_v29 = vadd.f32 (!%p3046_p9), %v1909_v28, %v5074_v32  ;;  %1948 = vst [vmem:[#allocation2] sm:$0xff] (!%p3046_p9), %v1916_v13  ;;  %v1924_v4 = vadd.f32 (!%p3046_p9), %v1909_v28, %v5094_v42  ;;  %v1925_v3 = vadd.f32 (!%p3046_p9), %v1913_v59, %v5081_v35 }
 0x4d1   : > { %v3918_v9 = vpop.eup %3917  ;;  %v1736_v48 = vmul.f32 %v3916_v57, %v5462_v19  ;;  %v1923_v57 = vadd.f32 (!%p3046_p9), %v1913_v59, %v5061_v24  ;;  %1949 = vst [vmem:[#allocation2 + $0x8] sm:$0xff] (!%p3046_p9), %v1917_v18  ;;  %1950 = vst [vmem:[#allocation2 + $0x10] sm:$0xff] (!%p3046_p9), %v1918_v27  ;;  %v1926_v11 = vadd.f32 (!%p3046_p9), %v1909_v28, %v5114_v52 }
 0x4d2   : > { %v1737_v6 = vmul.f32 %v3918_v9, %v5464_v17  ;;  %1951 = vst [vmem:[#allocation2 + $0x18] sm:$0xff] (!%p3046_p9), %v1919_v20  ;;  %v1927_v8 = vadd.f32 (!%p3046_p9), %v1913_v59, %v5101_v45  ;;  %1952 = vst [vmem:[#allocation2 + $0x20] sm:$0xff] (!%p3046_p9), %v1920_v38  ;;  %v1928_v14 = vadd.f32 (!%p3046_p9), %v1909_v28, %v5132_v62  ;;  %v6334_v9 = vld [vmem:[#allocation47_spill] sm:$0xff] (!%p3046_p9) }
 0x4d3   : > { %1752 = vst [vmem:[%s5475_s10 + $0x68] sm:$0xff] %v1736_v48  ;;  %3474 = vmatmul.mubr.f32.gmra.mrb[76].mxu1 %v1736_v48  ;;  %1953 = vst [vmem:[#allocation2 + $0x28] sm:$0xff] (!%p3046_p9), %v1921_v51  ;;  %v1929_v21 = vadd.f32 (!%p3046_p9), %v1913_v59, %v5121_v55  ;;  %v1930_v24 = vadd.f32 (!%p3046_p9), %v1909_v28, %v5146_v7  ;;  %v1931_v32 = vadd.f32 (!%p3046_p9), %v1913_v59, %v5139_v5 }
 0x4d4   : > { %v3920_v37 = vpop.eup %3919  ;;  %1753 = vst [vmem:[%s5475_s10 + $0x70] sm:$0xff] %v1737_v6  ;;  %3476 = vmatprep.mubr.f32.mxu1 %v1737_v6  ;;  %1954 = vst [vmem:[#allocation2 + $0x30] sm:$0xff] (!%p3046_p9), %v1922_v29  ;;  %v1932_v35 = vadd.f32 (!%p3046_p9), %v1909_v28, %v4999_v56  ;;  %v1933_v42 = vadd.f32 (!%p3046_p9), %v1913_v59, %v4975_v25  ;;  %v1934_v45 = vadd.f32 (!%p3046_p9), %v1909_v28, %v5010_v0  ;;  %v6335_v6 = vld [vmem:[#allocation46_spill] sm:$0xff] (!%p3046_p9) }
 0x4d5   : > { %v1738_v31 = vmul.f32 %v3920_v37, %v5468_v30  ;;  %1955 = vst [vmem:[#allocation2 + $0x38] sm:$0xff] (!%p3046_p9), %v1923_v57  ;;  %1956 = vst [vmem:[#allocation2 + $0x40] sm:$0xff] (!%p3046_p9), %v1924_v4  ;;  %v1935_v52 = vadd.f32 (!%p3046_p9), %v1913_v59, %v5002_v58  ;;  %v1936_v55 = vadd.f32 (!%p3046_p9), %v1909_v28, %v5038_v12 }
 0x4d6   : > { %1957 = vst [vmem:[#allocation2 + $0x48] sm:$0xff] (!%p3046_p9), %v1925_v3  ;;  %1958 = vst [vmem:[#allocation2 + $0x50] sm:$0xff] (!%p3046_p9), %v1926_v11  ;;  %v1937_v62 = vadd.f32 (!%p3046_p9), %v1913_v59, %v5014_v2  ;;  %v1938_v5 = vadd.f32 (!%p3046_p9), %v1909_v28, %v5058_v22  ;;  %v1939_v7 = vadd.f32 (!%p3046_p9), %v1913_v59, %v5044_v15  ;;  %v6332_v2 = vld [vmem:[#allocation45_spill] sm:$0xff] (!%p3046_p9)  ;;  %v6333_v22 = vld [vmem:[#allocation44_spill] sm:$0xff] (!%p3046_p9) }
 0x4d7   : > { %1754 = vst [vmem:[%s5475_s10 + $0x78] sm:$0xff] %v1738_v31  ;;  %3477 = vmatmul.mubr.f32.gmra.mrb[78].mxu1 %v1738_v31  ;;  %1959 = vst [vmem:[#allocation2 + $0x58] sm:$0xff] (!%p3046_p9), %v1927_v8  ;;  %v1940_v25 = vadd.f32 (!%p3046_p9), %v1909_v28, %v5078_v33  ;;  %v1941_v56 = vadd.f32 (!%p3046_p9), %v1913_v59, %v5064_v26  ;;  %v1942_v58 = vadd.f32 (!%p3046_p9), %v1909_v28, %v5098_v43 }
 0x4d8   : > { %1960 = vst [vmem:[#allocation2 + $0x60] sm:$0xff] (!%p3046_p9), %v1928_v14  ;;  %1961 = vst [vmem:[#allocation2 + $0x68] sm:$0xff] (!%p3046_p9), %v1929_v21  ;;  %v1943_v0 = vadd.f32 (!%p3046_p9), %v1913_v59, %v5084_v36  ;;  %v1944_v12 = vadd.f32 (!%p3046_p9), %v1909_v28, %v6332_v2  ;;  %v1945_v15 = vadd.f32 (!%p3046_p9), %v1913_v59, %v6333_v22 }
 0x4d9   : > { %1962 = vst [vmem:[#allocation2 + $0x70] sm:$0xff] (!%p3046_p9), %v1930_v24  ;;  %1963 = vst [vmem:[#allocation2 + $0x78] sm:$0xff] (!%p3046_p9), %v1931_v32  ;;  %v1946_v48 = vadd.f32 (!%p3046_p9), %v1909_v28, %v6334_v9  ;;  %v1947_v37 = vadd.f32 (!%p3046_p9), %v1913_v59, %v6335_v6 }
 0x4da   : > { %1964 = vst [vmem:[#allocation2 + $0x80] sm:$0xff] (!%p3046_p9), %v1932_v35  ;;  %1965 = vst [vmem:[#allocation2 + $0x88] sm:$0xff] (!%p3046_p9), %v1933_v42 }
 0x4db   : > { %1966 = vst [vmem:[#allocation2 + $0x90] sm:$0xff] (!%p3046_p9), %v1934_v45  ;;  %1967 = vst [vmem:[#allocation2 + $0x98] sm:$0xff] (!%p3046_p9), %v1935_v52 }
 0x4dc   : > { %1968 = vst [vmem:[#allocation2 + $0xa0] sm:$0xff] (!%p3046_p9), %v1936_v55  ;;  %1969 = vst [vmem:[#allocation2 + $0xa8] sm:$0xff] (!%p3046_p9), %v1937_v62 }
 0x4dd   : > { %1970 = vst [vmem:[#allocation2 + $0xb0] sm:$0xff] (!%p3046_p9), %v1938_v5  ;;  %1971 = vst [vmem:[#allocation2 + $0xb8] sm:$0xff] (!%p3046_p9), %v1939_v7 }
 0x4de   : > { %1972 = vst [vmem:[#allocation2 + $0xc0] sm:$0xff] (!%p3046_p9), %v1940_v25  ;;  %1973 = vst [vmem:[#allocation2 + $0xc8] sm:$0xff] (!%p3046_p9), %v1941_v56 }
 0x4df   : > { %1974 = vst [vmem:[#allocation2 + $0xd0] sm:$0xff] (!%p3046_p9), %v1942_v58  ;;  %1975 = vst [vmem:[#allocation2 + $0xd8] sm:$0xff] (!%p3046_p9), %v1943_v0 }
 0x4e0   : > { %1976 = vst [vmem:[#allocation2 + $0xe0] sm:$0xff] (!%p3046_p9), %v1944_v12  ;;  %1977 = vst [vmem:[#allocation2 + $0xe8] sm:$0xff] (!%p3046_p9), %v1945_v15 }
 0x4e1   : > { %1978 = vst [vmem:[#allocation2 + $0xf0] sm:$0xff] (!%p3046_p9), %v1946_v48  ;;  %1979 = vst [vmem:[#allocation2 + $0xf8] sm:$0xff] (!%p3046_p9), %v1947_v37 }
 0x58e   : > { %v5508_v63 = vpop.f32.mrb[64].mxu1 }
 0x58f   : > { %v5510_v49 = vpop.f32.mrb[65].mxu1 }
 0x592   : > { %v5512_v60 = vpop.f32.mrb[66].mxu1 }
 0x593   : > { %v5514_v19 = vpop.f32.mrb[67].mxu1 }
 0x596   : > { %v5516_v17 = vpop.f32.mrb[68].mxu1 }
 0x597   : > { %v5518_v41 = vpop.f32.mrb[69].mxu1 }
 0x59a   : > { %v5520_v1 = vpop.f32.mrb[70].mxu1 }
 0x59b   : > { %v5522_v39 = vpop.f32.mrb[71].mxu1 }
 0x59e   : > { %v5524_v30 = vpop.f32.mrb[72].mxu1 }
 0x59f   : > { %v5526_v46 = vpop.f32.mrb[73].mxu1 }
 0x5a2   : > { %v5528_v44 = vpop.f32.mrb[74].mxu1 }
 0x5a3   : > { %v5530_v61 = vpop.f32.mrb[75].mxu1 }
 0x5a5   : > { %1903 = sbr.rel (%p3046_p9) target bundleno = 1452 (0x5ac), region = 104 }
 0x5a6   : > { %v5532_v10 = vpop.f32.mrb[76].mxu1 }
 0x5a7   : > { %v5534_v16 = vpop.f32.mrb[77].mxu1 }
 0x5aa   : > { %v5536_v23 = vpop.f32.mrb[78].mxu1 }
 0x5ab   : > { %v5538_v50 = vpop.f32.mrb[79].mxu1 }
 0x5ac PF: > { %v2013_v26 = vld [vmem:[%s5541_s9 + $0x8] sm:$0xff]  ;;  %v2015_v33 = vld [vmem:[%s5541_s9 + $0x18] sm:$0xff]  ;;  %v2012_v36 = vld [vmem:[%s5541_s9] sm:$0xff]  ;;  %v4366_v47 = vmov 0.0   ;;  %s6336_s3 = sld [smem:[#allocation29_spill]] }
 0x5ad   : > { %v3639_v43 = vpack.c.bf16 %v2015_v33, %v2013_v26  ;;  %v2014_v31 = vld [vmem:[%s5541_s9 + $0x10] sm:$0xff]  ;;  %v2017_v54 = vld [vmem:[%s5541_s9 + $0x28] sm:$0xff]  ;;  %v2019_v53 = vld [vmem:[%s5541_s9 + $0x38] sm:$0xff]  ;;  %2108 = vmatprep.mubr.f32.mxu0 %v4366_v47 }
 0x5ae   : > { %v3641_v40 = vpack.c.bf16 %v2014_v31, %v2012_v36  ;;  %v3643_v34 = vpack.c.bf16 %v2019_v53, %v2017_v54  ;;  %v2016_v28 = vld [vmem:[%s5541_s9 + $0x20] sm:$0xff]  ;;  %v2018_v59 = vld [vmem:[%s5541_s9 + $0x30] sm:$0xff]  ;;  %v2021_v13 = vld [vmem:[%s5541_s9 + $0x48] sm:$0xff] }
 0x5af   : > { %3640 = vmatprep.subr.bf16.mxu0 %v3639_v43  ;;  %v2023_v18 = vld [vmem:[%s5541_s9 + $0x58] sm:$0xff]  ;;  %v3645_v27 = vpack.c.bf16 %v2018_v59, %v2016_v28  ;;  %v2020_v38 = vld [vmem:[%s5541_s9 + $0x40] sm:$0xff]  ;;  %v2022_v51 = vld [vmem:[%s5541_s9 + $0x50] sm:$0xff] }
 0x5b0   : > { %3642 = vmatpush1.bf16.msra.mxu0 %v3641_v40  ;;  %v3647_v20 = vpack.c.bf16 %v2023_v18, %v2021_v13  ;;  %v2025_v29 = vld [vmem:[%s5541_s9 + $0x68] sm:$0xff]  ;;  %v2027_v57 = vld [vmem:[%s5541_s9 + $0x78] sm:$0xff]  ;;  %v3649_v4 = vpack.c.bf16 %v2022_v51, %v2020_v38  ;;  %v2024_v11 = vld [vmem:[%s5541_s9 + $0x60] sm:$0xff] }
 0x5b1   : > { %3644 = vmatprep.subr.bf16.mxu0 %v3643_v34  ;;  %v3651_v3 = vpack.c.bf16 %v2027_v57, %v2025_v29  ;;  %v2026_v8 = vld [vmem:[%s5541_s9 + $0x70] sm:$0xff]  ;;  %v2029_v14 = vld [vmem:[%s5541_s9 + $0x88] sm:$0xff]  ;;  %v2031_v21 = vld [vmem:[%s5541_s9 + $0x98] sm:$0xff] }
 0x5b2   : > { %v3653_v24 = vpack.c.bf16 %v2026_v8, %v2024_v11  ;;  %v3655_v32 = vpack.c.bf16 %v2031_v21, %v2029_v14  ;;  %v2028_v35 = vld [vmem:[%s5541_s9 + $0x80] sm:$0xff]  ;;  %v2030_v42 = vld [vmem:[%s5541_s9 + $0x90] sm:$0xff]  ;;  %v2033_v45 = vld [vmem:[%s5541_s9 + $0xa8] sm:$0xff]  ;;  %p3047_p0 = scmp.ne.s32.totalorder %s6336_s3, 1 }
 0x5b3   : > { %v2035_v52 = vld [vmem:[%s5541_s9 + $0xb8] sm:$0xff]  ;;  %v3657_v55 = vpack.c.bf16 %v2030_v42, %v2028_v35  ;;  %v2032_v5 = vld [vmem:[%s5541_s9 + $0xa0] sm:$0xff]  ;;  %v2034_v7 = vld [vmem:[%s5541_s9 + $0xb0] sm:$0xff]  ;;  %s6337_s1 = sld [smem:[#allocation59_spill]] (!%p3047_p0)  ;;  %s6338_s23 = sld [smem:[#allocation60_spill]] (!%p3047_p0) }
 0x5b4   : > { %3646 = vmatpush1.bf16.msra.mxu0 %v3645_v27  ;;  %v3659_v62 = vpack.c.bf16 %v2035_v52, %v2033_v45  ;;  %v2037_v25 = vld [vmem:[%s5541_s9 + $0xc8] sm:$0xff]  ;;  %v2039_v56 = vld [vmem:[%s5541_s9 + $0xd8] sm:$0xff]  ;;  %v3661_v58 = vpack.c.bf16 %v2034_v7, %v2032_v5  ;;  %v2036_v2 = vld [vmem:[%s5541_s9 + $0xc0] sm:$0xff] }
 0x5b5   : > { %3648 = vmatprep.subr.bf16.mxu0 %v3647_v20  ;;  %v3663_v0 = vpack.c.bf16 %v2039_v56, %v2037_v25  ;;  %v2038_v12 = vld [vmem:[%s5541_s9 + $0xd0] sm:$0xff]  ;;  %v2041_v22 = vld [vmem:[%s5541_s9 + $0xe8] sm:$0xff]  ;;  %v2043_v15 = vld [vmem:[%s5541_s9 + $0xf8] sm:$0xff] }
 0x5b6   : > { %v3665_v9 = vpack.c.bf16 %v2038_v12, %v2036_v2  ;;  %v3667_v48 = vpack.c.bf16 %v2043_v15, %v2041_v22  ;;  %v2040_v6 = vld [vmem:[%s5541_s9 + $0xe0] sm:$0xff]  ;;  %v2042_v37 = vld [vmem:[%s5541_s9 + $0xf0] sm:$0xff]  ;;  %v1987_v31 = vld [vmem:[#allocation2 + $0x38] sm:$0xff] }
 0x5b7   : > { %v3669_v26 = vpack.c.bf16 %v2042_v37, %v2040_v6  ;;  %v1986_v43 = vld [vmem:[#allocation2 + $0x30] sm:$0xff]  ;;  %v1988_v34 = vld [vmem:[#allocation2 + $0x40] sm:$0xff]  ;;  %v1989_v28 = vld [vmem:[#allocation2 + $0x48] sm:$0xff] }
 0x5b8   : > { %3650 = vmatpush1.bf16.msra.mxu0 %v3649_v4  ;;  %v1990_v20 = vld [vmem:[#allocation2 + $0x50] sm:$0xff]  ;;  %v1991_v38 = vld [vmem:[#allocation2 + $0x58] sm:$0xff]  ;;  %v1993_v11 = vld [vmem:[#allocation2 + $0x68] sm:$0xff] }
 0x5b9   : > { %3652 = vmatprep.subr.bf16.mxu0 %v3651_v3  ;;  %v1992_v3 = vld [vmem:[#allocation2 + $0x60] sm:$0xff]  ;;  %v1995_v35 = vld [vmem:[#allocation2 + $0x78] sm:$0xff]  ;;  %v1997_v5 = vld [vmem:[#allocation2 + $0x88] sm:$0xff] }
 0x5ba   : > { %v1999_v2 = vld [vmem:[#allocation2 + $0x98] sm:$0xff]  ;;  %v2001_v6 = vld [vmem:[#allocation2 + $0xa8] sm:$0xff] }
 0x5bc   : > { %3654 = vmatpush1.bf16.msra.mxu0 %v3653_v24 }
 0x5bd   : > { %3656 = vmatprep.subr.bf16.mxu0 %v3655_v32  ;;  %v1994_v32 = vld [vmem:[#allocation2 + $0x70] sm:$0xff] }
 0x5c0   : > { %3658 = vmatpush1.bf16.msra.mxu0 %v3657_v55 }
 0x5c1   : > { %3660 = vmatprep.subr.bf16.mxu0 %v3659_v62  ;;  %v1996_v62 = vld [vmem:[#allocation2 + $0x80] sm:$0xff] }
 0x5c4   : > { %3662 = vmatpush1.bf16.msra.mxu0 %v3661_v58 }
 0x5c5   : > { %3664 = vmatprep.subr.bf16.mxu0 %v3663_v0  ;;  %v1998_v0 = vld [vmem:[#allocation2 + $0x90] sm:$0xff] }
 0x5c8   : > { %3666 = vmatpush1.bf16.msra.mxu0 %v3665_v9 }
 0x5c9   : > { %3668 = vmatprep.subr.bf16.mxu0 %v3667_v48  ;;  %v2000_v48 = vld [vmem:[#allocation2 + $0xa0] sm:$0xff] }
 0x5cc   : > { %3670 = vmatpush1.bf16.msra.mxu0 %v3669_v26 }
 0x5cf   : > { %2109 = vmatmul.mubr.f32.vlgmr.msra.gmra.mrb[48].mxu0 %v5510_v49  ;;  %v1981_v49 = vld [vmem:[#allocation2 + $0x8] sm:$0xff] }
 0x5d0   : > { %2114 = vmatprep.mubr.f32.mxu0 %v4366_v47 }
 0x5d3   : > { %2115 = vmatmul.mubr.f32.gmra.mrb[50].mxu0 %v5508_v63  ;;  %v1980_v63 = vld [vmem:[#allocation2] sm:$0xff] }
 0x5d4   : > { %2120 = vmatprep.mubr.f32.mxu0 %v4366_v47 }
 0x5d7   : > { %2121 = vmatmul.mubr.f32.gmra.mrb[52].mxu0 %v5514_v19 }
 0x5d8   : > { %2126 = vmatprep.mubr.f32.mxu0 %v4366_v47 }
 0x5db   : > { %2127 = vmatmul.mubr.f32.gmra.mrb[54].mxu0 %v5512_v60 }
 0x5dc   : > { %2132 = vmatprep.mubr.f32.mxu0 %v4366_v47 }
 0x5df   : > { %2133 = vmatmul.mubr.f32.gmra.mrb[56].mxu0 %v5518_v41 }
 0x5e0   : > { %2138 = vmatprep.mubr.f32.mxu0 %v4366_v47 }
 0x5e3   : > { %2139 = vmatmul.mubr.f32.gmra.mrb[58].mxu0 %v5516_v17 }
 0x5e4   : > { %2144 = vmatprep.mubr.f32.mxu0 %v4366_v47 }
 0x5e7   : > { %2145 = vmatmul.mubr.f32.gmra.mrb[60].mxu0 %v5522_v39  ;;  %v1983_v39 = vld [vmem:[#allocation2 + $0x18] sm:$0xff] }
 0x5e8   : > { %2150 = vmatprep.mubr.f32.mxu0 %v4366_v47 }
 0x5eb   : > { %2151 = vmatmul.mubr.f32.gmra.mrb[62].mxu0 %v5520_v1  ;;  %v1982_v1 = vld [vmem:[#allocation2 + $0x10] sm:$0xff] }
 0x5ec   : > { %2156 = vmatprep.mubr.f32.mxu0 %v4366_v47 }
 0x5ef   : > { %2157 = vmatmul.mubr.f32.gmra.mrb[64].mxu0 %v5526_v46 }
 0x5f0   : > { %2162 = vmatprep.mubr.f32.mxu0 %v4366_v47 }
 0x5f3   : > { %2163 = vmatmul.mubr.f32.gmra.mrb[66].mxu0 %v5524_v30 }
 0x5f4   : > { %2168 = vmatprep.mubr.f32.mxu0 %v4366_v47 }
 0x5f7   : > { %2169 = vmatmul.mubr.f32.gmra.mrb[68].mxu0 %v5530_v61 }
 0x5f8   : > { %2174 = vmatprep.mubr.f32.mxu0 %v4366_v47 }
 0x5fb   : > { %2175 = vmatmul.mubr.f32.gmra.mrb[70].mxu0 %v5528_v44 }
 0x5fc   : > { %2180 = vmatprep.mubr.f32.mxu0 %v4366_v47 }
 0x5ff   : > { %2181 = vmatmul.mubr.f32.gmra.mrb[72].mxu0 %v5534_v16  ;;  %v1985_v16 = vld [vmem:[#allocation2 + $0x28] sm:$0xff] }
 0x600   : > { %2186 = vmatprep.mubr.f32.mxu0 %v4366_v47 }
 0x603   : > { %2187 = vmatmul.mubr.f32.gmra.mrb[74].mxu0 %v5532_v10  ;;  %v1984_v10 = vld [vmem:[#allocation2 + $0x20] sm:$0xff] }
 0x604   : > { %2192 = vmatprep.mubr.f32.mxu0 %v4366_v47 }
 0x607   : > { %2193 = vmatmul.mubr.f32.gmra.mrb[76].mxu0 %v5538_v50 }
 0x608   : > { %2198 = vmatprep.mubr.f32.mxu0 %v4366_v47 }
 0x60b   : > { %2199 = vmatmul.mubr.f32.gmra.mrb[78].mxu0 %v5536_v23 }
 0x6a2   : > { %v2110_v60 = vpop.f32.mrb[48].mxu0 }
 0x6a3   : > { %v2205_v19 = vadd.f32 %v2110_v60, %v1980_v63  ;;  %v2112_v17 = vpop.f32.mrb[49].mxu0  ;;  %v2002_v60 = vld [vmem:[#allocation2 + $0xb0] sm:$0xff] }
 0x6a4   : > { %v2206_v41 = vadd.f32 %v2112_v17, %v1981_v49 }
 0x6a5   : > { %2237 = vst [vmem:[#allocation2] sm:$0xff] %v2205_v19  ;;  %v2003_v19 = vld [vmem:[#allocation2 + $0xb8] sm:$0xff] }
 0x6a6   : > { %2238 = vst [vmem:[#allocation2 + $0x8] sm:$0xff] %v2206_v41  ;;  %v2116_v30 = vpop.f32.mrb[50].mxu0 }
 0x6a7   : > { %v2207_v46 = vadd.f32 %v2116_v30, %v1982_v1  ;;  %v2118_v44 = vpop.f32.mrb[51].mxu0  ;;  %v2004_v30 = vld [vmem:[#allocation2 + $0xc0] sm:$0xff] }
 0x6a8   : > { %v2208_v61 = vadd.f32 %v2118_v44, %v1983_v39 }
 0x6a9   : > { %2239 = vst [vmem:[#allocation2 + $0x10] sm:$0xff] %v2207_v46  ;;  %v2005_v46 = vld [vmem:[#allocation2 + $0xc8] sm:$0xff] }
 0x6aa   : > { %2240 = vst [vmem:[#allocation2 + $0x18] sm:$0xff] %v2208_v61  ;;  %v2122_v50 = vpop.f32.mrb[52].mxu0 }
 0x6ab   : > { %v2209_v23 = vadd.f32 %v2122_v50, %v1984_v10  ;;  %v2124_v33 = vpop.f32.mrb[53].mxu0  ;;  %v2006_v50 = vld [vmem:[#allocation2 + $0xd0] sm:$0xff] }
 0x6ac   : > { %v2210_v36 = vadd.f32 %v2124_v33, %v1985_v16 }
 0x6ad   : > { %2241 = vst [vmem:[#allocation2 + $0x20] sm:$0xff] %v2209_v23  ;;  %v2007_v23 = vld [vmem:[#allocation2 + $0xd8] sm:$0xff] }
 0x6ae   : > { %2242 = vst [vmem:[#allocation2 + $0x28] sm:$0xff] %v2210_v36  ;;  %v2128_v54 = vpop.f32.mrb[54].mxu0 }
 0x6af   : > { %v2211_v53 = vadd.f32 %v2128_v54, %v1986_v43  ;;  %v2130_v47 = vpop.f32.mrb[55].mxu0  ;;  %v2008_v54 = vld [vmem:[#allocation2 + $0xe0] sm:$0xff] }
 0x6b0   : > { %v2212_v40 = vadd.f32 %v2130_v47, %v1987_v31 }
 0x6b1   : > { %2243 = vst [vmem:[#allocation2 + $0x30] sm:$0xff] %v2211_v53  ;;  %v2009_v53 = vld [vmem:[#allocation2 + $0xe8] sm:$0xff] }
 0x6b2   : > { %2244 = vst [vmem:[#allocation2 + $0x38] sm:$0xff] %v2212_v40  ;;  %v2134_v59 = vpop.f32.mrb[56].mxu0 }
 0x6b3   : > { %v2213_v13 = vadd.f32 %v2134_v59, %v1988_v34  ;;  %v2136_v18 = vpop.f32.mrb[57].mxu0  ;;  %v2010_v59 = vld [vmem:[#allocation2 + $0xf0] sm:$0xff] }
 0x6b4   : > { %v2214_v27 = vadd.f32 %v2136_v18, %v1989_v28 }
 0x6b5   : > { %2245 = vst [vmem:[#allocation2 + $0x40] sm:$0xff] %v2213_v13  ;;  %v2011_v13 = vld [vmem:[#allocation2 + $0xf8] sm:$0xff] }
 0x6b6   : > { %2246 = vst [vmem:[#allocation2 + $0x48] sm:$0xff] %v2214_v27  ;;  %v2140_v51 = vpop.f32.mrb[58].mxu0 }
 0x6b7   : > { %v2215_v29 = vadd.f32 %v2140_v51, %v1990_v20  ;;  %v2142_v57 = vpop.f32.mrb[59].mxu0  ;;  %v5647_v51 = vld [vmem:[#allocation2] sm:$0xff] (!%p3047_p0) }
 0x6b8   : > { %v2216_v4 = vadd.f32 %v2142_v57, %v1991_v38  ;;  %v5651_v57 = vld [vmem:[#allocation2 + $0x20] sm:$0xff] (!%p3047_p0) }
 0x6b9   : > { %2247 = vst [vmem:[#allocation2 + $0x50] sm:$0xff] %v2215_v29  ;;  %v5649_v29 = vld [vmem:[#allocation2 + $0x8] sm:$0xff] (!%p3047_p0) }
 0x6ba   : > { %2248 = vst [vmem:[#allocation2 + $0x58] sm:$0xff] %v2216_v4  ;;  %v2146_v8 = vpop.f32.mrb[60].mxu0  ;;  %v2305_v4 = vadd.f32 (!%p3047_p0), %v5649_v29, %v5647_v51 }
 0x6bb   : > { %v2217_v14 = vadd.f32 %v2146_v8, %v1992_v3  ;;  %v2148_v21 = vpop.f32.mrb[61].mxu0  ;;  %v5655_v3 = vld [vmem:[#allocation2 + $0x28] sm:$0xff] (!%p3047_p0)  ;;  %v5659_v8 = vld [vmem:[#allocation2 + $0x18] sm:$0xff] (!%p3047_p0) }
 0x6bc   : > { %v2218_v24 = vadd.f32 %v2148_v21, %v1993_v11  ;;  %v5657_v11 = vld [vmem:[#allocation2 + $0x10] sm:$0xff] (!%p3047_p0)  ;;  %2306 = vadd.xlane.f32.xlu0 (!%p3047_p0), %v2305_v4 }
 0x6bd   : > { %2249 = vst [vmem:[#allocation2 + $0x60] sm:$0xff] %v2217_v14  ;;  %v2311_v14 = vadd.f32 (!%p3047_p0), %v5655_v3, %v5651_v57  ;;  %v5663_v21 = vld [vmem:[#allocation2 + $0x30] sm:$0xff] (!%p3047_p0) }
 0x6be   : > { %2250 = vst [vmem:[#allocation2 + $0x68] sm:$0xff] %v2218_v24  ;;  %v2152_v42 = vpop.f32.mrb[62].mxu0  ;;  %v5665_v24 = vld [vmem:[#allocation2 + $0x38] sm:$0xff] (!%p3047_p0) }
 0x6bf   : > { %v2219_v45 = vadd.f32 %v2152_v42, %v1994_v32  ;;  %v2154_v52 = vpop.f32.mrb[63].mxu0  ;;  %v2308_v32 = vadd.f32 (!%p3047_p0), %v5659_v8, %v5657_v11  ;;  %2312 = vadd.xlane.f32.xlu1 (!%p3047_p0), %v2311_v14  ;;  %v5671_v42 = vld [vmem:[#allocation2 + $0x40] sm:$0xff] (!%p3047_p0) }
 0x6c0   : > { %v2220_v55 = vadd.f32 %v2154_v52, %v1995_v35  ;;  %v2314_v35 = vadd.f32 (!%p3047_p0), %v5665_v24, %v5663_v21  ;;  %v5675_v52 = vld [vmem:[#allocation2 + $0x50] sm:$0xff] (!%p3047_p0) }
 0x6c1   : > { %2251 = vst [vmem:[#allocation2 + $0x70] sm:$0xff] %v2219_v45  ;;  %v5673_v45 = vld [vmem:[#allocation2 + $0x48] sm:$0xff] (!%p3047_p0)  ;;  %2309 = vadd.xlane.f32.xlu0 (!%p3047_p0), %v2308_v32 }
 0x6c2   : > { %2252 = vst [vmem:[#allocation2 + $0x78] sm:$0xff] %v2220_v55  ;;  %v2158_v7 = vpop.f32.mrb[64].mxu0  ;;  %v5677_v55 = vld [vmem:[#allocation2 + $0x58] sm:$0xff] (!%p3047_p0) }
 0x6c3   : > { %v2221_v25 = vadd.f32 %v2158_v7, %v1996_v62  ;;  %v2160_v56 = vpop.f32.mrb[65].mxu0  ;;  %v2317_v62 = vadd.f32 (!%p3047_p0), %v5673_v45, %v5671_v42  ;;  %2315 = vadd.xlane.f32.xlu1 (!%p3047_p0), %v2314_v35 }
 0x6c4   : > { %v2222_v58 = vadd.f32 %v2160_v56, %v1997_v5  ;;  %v2320_v5 = vadd.f32 (!%p3047_p0), %v5677_v55, %v5675_v52  ;;  %v5683_v7 = vld [vmem:[#allocation2 + $0x60] sm:$0xff] (!%p3047_p0) }
 0x6c5   : > { %2253 = vst [vmem:[#allocation2 + $0x80] sm:$0xff] %v2221_v25  ;;  %v5685_v25 = vld [vmem:[#allocation2 + $0x68] sm:$0xff] (!%p3047_p0)  ;;  %2318 = vadd.xlane.f32.xlu0 (!%p3047_p0), %v2317_v62 }
 0x6c6   : > { %2254 = vst [vmem:[#allocation2 + $0x88] sm:$0xff] %v2222_v58  ;;  %v2164_v12 = vpop.f32.mrb[66].mxu0 }
 0x6c7   : > { %v2223_v22 = vadd.f32 %v2164_v12, %v1998_v0  ;;  %v2166_v15 = vpop.f32.mrb[67].mxu0  ;;  %v2323_v0 = vadd.f32 (!%p3047_p0), %v5685_v25, %v5683_v7  ;;  %2321 = vadd.xlane.f32.xlu1 (!%p3047_p0), %v2320_v5 }
 0x6c8   : > { %v2224_v9 = vadd.f32 %v2166_v15, %v1999_v2  ;;  %v5687_v56 = vld [vmem:[#allocation2 + $0x70] sm:$0xff] (!%p3047_p0) }
 0x6c9   : > { %2255 = vst [vmem:[#allocation2 + $0x90] sm:$0xff] %v2223_v22  ;;  %v5689_v58 = vld [vmem:[#allocation2 + $0x78] sm:$0xff] (!%p3047_p0)  ;;  %2324 = vadd.xlane.f32.xlu0 (!%p3047_p0), %v2323_v0 }
 0x6ca   : > { %2256 = vst [vmem:[#allocation2 + $0x98] sm:$0xff] %v2224_v9  ;;  %v2170_v37 = vpop.f32.mrb[68].mxu0  ;;  %v2326_v2 = vadd.f32 (!%p3047_p0), %v5689_v58, %v5687_v56 }
 0x6cb   : > { %v2225_v26 = vadd.f32 %v2170_v37, %v2000_v48  ;;  %v2172_v63 = vpop.f32.mrb[69].mxu0 }
 0x6cc   : > { %v2226_v49 = vadd.f32 %v2172_v63, %v2001_v6  ;;  %v5695_v12 = vld [vmem:[#allocation2 + $0x80] sm:$0xff] (!%p3047_p0)  ;;  %2327 = vadd.xlane.f32.xlu1 (!%p3047_p0), %v2326_v2 }
 0x6cd   : > { %2257 = vst [vmem:[#allocation2 + $0xa0] sm:$0xff] %v2225_v26  ;;  %v5697_v22 = vld [vmem:[#allocation2 + $0x88] sm:$0xff] (!%p3047_p0) }
 0x6ce   : > { %2258 = vst [vmem:[#allocation2 + $0xa8] sm:$0xff] %v2226_v49  ;;  %v2176_v17 = vpop.f32.mrb[70].mxu0  ;;  %v2329_v48 = vadd.f32 (!%p3047_p0), %v5697_v22, %v5695_v12 }
 0x6cf   : > { %v2227_v41 = vadd.f32 %v2176_v17, %v2002_v60  ;;  %v2178_v1 = vpop.f32.mrb[71].mxu0 }
 0x6d0   : > { %v2228_v39 = vadd.f32 %v2178_v1, %v2003_v19  ;;  %v5699_v15 = vld [vmem:[#allocation2 + $0x90] sm:$0xff] (!%p3047_p0)  ;;  %2330 = vadd.xlane.f32.xlu0 (!%p3047_p0), %v2329_v48 }
 0x6d1   : > { %2259 = vst [vmem:[#allocation2 + $0xb0] sm:$0xff] %v2227_v41  ;;  %v5701_v9 = vld [vmem:[#allocation2 + $0x98] sm:$0xff] (!%p3047_p0) }
 0x6d2   : > { %2260 = vst [vmem:[#allocation2 + $0xb8] sm:$0xff] %v2228_v39  ;;  %v2182_v44 = vpop.f32.mrb[72].mxu0  ;;  %v2332_v6 = vadd.f32 (!%p3047_p0), %v5701_v9, %v5699_v15 }
 0x6d3   : > { %v2229_v61 = vadd.f32 %v2182_v44, %v2004_v30  ;;  %v2184_v10 = vpop.f32.mrb[73].mxu0 }
 0x6d4   : > { %v2230_v16 = vadd.f32 %v2184_v10, %v2005_v46  ;;  %v5707_v37 = vld [vmem:[#allocation2 + $0xa0] sm:$0xff] (!%p3047_p0)  ;;  %2333 = vadd.xlane.f32.xlu1 (!%p3047_p0), %v2332_v6 }
 0x6d5   : > { %2261 = vst [vmem:[#allocation2 + $0xc0] sm:$0xff] %v2229_v61  ;;  %v5709_v26 = vld [vmem:[#allocation2 + $0xa8] sm:$0xff] (!%p3047_p0) }
 0x6d6   : > { %2262 = vst [vmem:[#allocation2 + $0xc8] sm:$0xff] %v2230_v16  ;;  %v2188_v33 = vpop.f32.mrb[74].mxu0  ;;  %v2335_v60 = vadd.f32 (!%p3047_p0), %v5709_v26, %v5707_v37 }
 0x6d7   : > { %v2231_v36 = vadd.f32 %v2188_v33, %v2006_v50  ;;  %v2190_v43 = vpop.f32.mrb[75].mxu0 }
 0x6d8   : > { %v2232_v31 = vadd.f32 %v2190_v43, %v2007_v23  ;;  %v5711_v63 = vld [vmem:[#allocation2 + $0xb0] sm:$0xff] (!%p3047_p0)  ;;  %2336 = vadd.xlane.f32.xlu0 (!%p3047_p0), %v2335_v60 }
 0x6d9   : > { %2263 = vst [vmem:[#allocation2 + $0xd0] sm:$0xff] %v2231_v36  ;;  %v5713_v49 = vld [vmem:[#allocation2 + $0xb8] sm:$0xff] (!%p3047_p0) }
 0x6da   : > { %2264 = vst [vmem:[#allocation2 + $0xd8] sm:$0xff] %v2232_v31  ;;  %v2194_v47 = vpop.f32.mrb[76].mxu0  ;;  %v2338_v19 = vadd.f32 (!%p3047_p0), %v5713_v49, %v5711_v63 }
 0x6db   : > { %v2233_v40 = vadd.f32 %v2194_v47, %v2008_v54  ;;  %v2196_v34 = vpop.f32.mrb[77].mxu0 }
 0x6dc   : > { %v2234_v28 = vadd.f32 %v2196_v34, %v2009_v53  ;;  %2272 = sbr.rel (%p3047_p0) target bundleno = 2086 (0x826), region = 108  ;;  %v5719_v17 = vld [vmem:[#allocation2 + $0xc0] sm:$0xff] (!%p3047_p0)  ;;  %2339 = vadd.xlane.f32.xlu1 (!%p3047_p0), %v2338_v19 }
 0x6dd   : > { %2265 = vst [vmem:[#allocation2 + $0xe0] sm:$0xff] %v2233_v40  ;;  %v5721_v41 = vld [vmem:[#allocation2 + $0xc8] sm:$0xff] (!%p3047_p0) }
 0x6de   : > { %2266 = vst [vmem:[#allocation2 + $0xe8] sm:$0xff] %v2234_v28  ;;  %v2200_v18 = vpop.f32.mrb[78].mxu0  ;;  %v2341_v30 = vadd.f32 (!%p3047_p0), %v5721_v41, %v5719_v17 }
 0x6df   : > { %v2235_v27 = vadd.f32 %v2200_v18, %v2010_v59  ;;  %v2202_v20 = vpop.f32.mrb[79].mxu0 }
 0x6e0   : > { %v2236_v38 = vadd.f32 %v2202_v20, %v2011_v13  ;;  %v5723_v1 = vld [vmem:[#allocation2 + $0xd0] sm:$0xff] (!%p3047_p0)  ;;  %2342 = vadd.xlane.f32.xlu0 (!%p3047_p0), %v2341_v30 }
 0x6e1   : > { %2267 = vst [vmem:[#allocation2 + $0xf0] sm:$0xff] %v2235_v27  ;;  %v5725_v39 = vld [vmem:[#allocation2 + $0xd8] sm:$0xff] (!%p3047_p0) }
 0x6e2   : > { %2268 = vst [vmem:[#allocation2 + $0xf8] sm:$0xff] %v2236_v38  ;;  %v2344_v46 = vadd.f32 (!%p3047_p0), %v5725_v39, %v5723_v1 }
 0x6e4   : > { %v5731_v44 = vld [vmem:[#allocation2 + $0xe0] sm:$0xff]  ;;  %2345 = vadd.xlane.f32.xlu1 %v2344_v46 }
 0x6e5   : > { %v5733_v61 = vld [vmem:[#allocation2 + $0xe8] sm:$0xff] }
 0x6e6   : > { %v2347_v50 = vadd.f32 %v5733_v61, %v5731_v44 }
 0x6e8   : > { %v5735_v10 = vld [vmem:[#allocation2 + $0xf0] sm:$0xff]  ;;  %2348 = vadd.xlane.f32.xlu0 %v2347_v50 }
 0x6e9   : > { %v5737_v16 = vld [vmem:[#allocation2 + $0xf8] sm:$0xff] }
 0x6ea   : > { %v2350_v23 = vadd.f32 %v5737_v16, %v5735_v10 }
 0x6ec   : > { %2351 = vadd.xlane.f32.xlu1 %v2350_v23 }
 0x749   : > { %v2307_v33 = vpop.xlane.xlu0 %2306 }
 0x74a   : > { %v2354_v36 = vmul.f32 0.00390625, %v2307_v33 }
 0x74c   : > { %v2313_v43 = vpop.xlane.xlu1 %2312  ;;  %v5744_v54 = vsub.f32 %v5647_v51, %v2354_v36  ;;  %v5747_v53 = vsub.f32 %v5649_v29, %v2354_v36 }
 0x74d   : > { %v2356_v31 = vmul.f32 0.00390625, %v2313_v43 }
 0x74e   : > { %v2310_v34 = vpop.xlane.xlu0 %2309  ;;  %v2402_v13 = vmul.f32 %v5744_v54, %v5744_v54  ;;  %v2403_v18 = vmul.f32 %v5747_v53, %v5747_v53 }
 0x74f   : > { %v5750_v47 = vsub.f32 %v5651_v57, %v2356_v31  ;;  %v5753_v40 = vsub.f32 %v5655_v3, %v2356_v31  ;;  %v2355_v28 = vmul.f32 0.00390625, %v2310_v34 }
 0x750   : > { %v2316_v59 = vpop.xlane.xlu1 %2315  ;;  %v2434_v57 = vadd.f32 %v2403_v18, %v2402_v13 }
 0x751   : > { %v2357_v27 = vmul.f32 0.00390625, %v2316_v59  ;;  %v2406_v20 = vmul.f32 %v5750_v47, %v5750_v47  ;;  %v2407_v38 = vmul.f32 %v5753_v40, %v5753_v40  ;;  %v5764_v51 = vsub.f32 %v5657_v11, %v2355_v28 }
 0x752   : > { %v5767_v29 = vsub.f32 %v5659_v8, %v2355_v28  ;;  %v2319_v14 = vpop.xlane.xlu0 %2318  ;;  %2435 = vadd.xlane.f32.xlu0 %v2434_v57 }
 0x753   : > { %v5770_v4 = vsub.f32 %v5663_v21, %v2357_v27  ;;  %v5773_v3 = vsub.f32 %v5665_v24, %v2357_v27  ;;  %v2358_v32 = vmul.f32 0.00390625, %v2319_v14  ;;  %v2440_v62 = vadd.f32 %v2407_v38, %v2406_v20 }
 0x754   : > { %v2322_v35 = vpop.xlane.xlu1 %2321  ;;  %v2404_v5 = vmul.f32 %v5764_v51, %v5764_v51  ;;  %v2405_v11 = vmul.f32 %v5767_v29, %v5767_v29 }
 0x755   : > { %v2359_v8 = vmul.f32 0.00390625, %v2322_v35  ;;  %v2408_v0 = vmul.f32 %v5770_v4, %v5770_v4  ;;  %v2409_v21 = vmul.f32 %v5773_v3, %v5773_v3  ;;  %v5784_v24 = vsub.f32 %v5671_v42, %v2358_v32 }
 0x756   : > { %v5787_v2 = vsub.f32 %v5673_v45, %v2358_v32  ;;  %v2437_v48 = vadd.f32 %v2405_v11, %v2404_v5  ;;  %v2325_v19 = vpop.xlane.xlu0 %2324  ;;  %2441 = vadd.xlane.f32.xlu0 %v2440_v62 }
 0x757   : > { %v5790_v6 = vsub.f32 %v5675_v52, %v2359_v8  ;;  %v5793_v60 = vsub.f32 %v5677_v55, %v2359_v8  ;;  %v2360_v30 = vmul.f32 0.00390625, %v2325_v19  ;;  %v2443_v50 = vadd.f32 %v2409_v21, %v2408_v0 }
 0x758   : > { %2438 = vadd.xlane.f32.xlu1 %v2437_v48  ;;  %v2410_v42 = vmul.f32 %v5784_v24, %v5784_v24  ;;  %v2411_v45 = vmul.f32 %v5787_v2, %v5787_v2 }
 0x759   : > { %v2328_v46 = vpop.xlane.xlu1 %2327  ;;  %v2412_v52 = vmul.f32 %v5790_v6, %v5790_v6  ;;  %v2413_v55 = vmul.f32 %v5793_v60, %v5793_v60  ;;  %v5804_v33 = vsub.f32 %v5683_v7, %v2360_v30  ;;  %v5807_v36 = vsub.f32 %v5685_v25, %v2360_v30 }
 0x75a   : > { %v2361_v23 = vmul.f32 0.00390625, %v2328_v46  ;;  %v2446_v43 = vadd.f32 %v2411_v45, %v2410_v42 }
 0x75b   : > { %v2449_v18 = vadd.f32 %v2413_v55, %v2412_v52  ;;  %v2414_v7 = vmul.f32 %v5804_v33, %v5804_v33  ;;  %v2415_v25 = vmul.f32 %v5807_v36, %v5807_v36 }
 0x75c   : > { %v5810_v31 = vsub.f32 %v5687_v56, %v2361_v23  ;;  %v5813_v34 = vsub.f32 %v5689_v58, %v2361_v23  ;;  %2444 = vadd.xlane.f32.xlu1 %v2443_v50  ;;  %2447 = vadd.xlane.f32.xlu0 %v2446_v43 }
 0x75d   : > { %v2331_v28 = vpop.xlane.xlu0 %2330  ;;  %v2452_v57 = vadd.f32 %v2415_v25, %v2414_v7 }
 0x75e   : > { %v2362_v59 = vmul.f32 0.00390625, %v2331_v28  ;;  %v2416_v56 = vmul.f32 %v5810_v31, %v5810_v31  ;;  %v2417_v58 = vmul.f32 %v5813_v34, %v5813_v34 }
 0x760   : > { %v5824_v20 = vsub.f32 %v5695_v12, %v2362_v59  ;;  %v5827_v38 = vsub.f32 %v5697_v22, %v2362_v59  ;;  %2450 = vadd.xlane.f32.xlu1 %v2449_v18  ;;  %2453 = vadd.xlane.f32.xlu0 %v2452_v57  ;;  %v2455_v11 = vadd.f32 %v2417_v58, %v2416_v56 }
 0x761   : > { %v2334_v13 = vpop.xlane.xlu1 %2333 }
 0x762   : > { %v2363_v27 = vmul.f32 0.00390625, %v2334_v13  ;;  %v2418_v12 = vmul.f32 %v5824_v20, %v5824_v20  ;;  %v2419_v22 = vmul.f32 %v5827_v38, %v5827_v38 }
 0x764   : > { %v5830_v14 = vsub.f32 %v5699_v15, %v2363_v27  ;;  %v5833_v32 = vsub.f32 %v5701_v9, %v2363_v27  ;;  %v2458_v48 = vadd.f32 %v2419_v22, %v2418_v12  ;;  %2456 = vadd.xlane.f32.xlu1 %v2455_v11 }
 0x765   : > { %v2337_v35 = vpop.xlane.xlu0 %2336 }
 0x766   : > { %v2364_v62 = vmul.f32 0.00390625, %v2337_v35  ;;  %v2420_v15 = vmul.f32 %v5830_v14, %v5830_v14  ;;  %v2421_v9 = vmul.f32 %v5833_v32, %v5833_v32  ;;  %2459 = vadd.xlane.f32.xlu0 %v2458_v48 }
 0x768   : > { %v5844_v0 = vsub.f32 %v5707_v37, %v2364_v62  ;;  %v5847_v21 = vsub.f32 %v5709_v26, %v2364_v62  ;;  %v2461_v45 = vadd.f32 %v2421_v9, %v2420_v15  ;;  %v2564_v15 = vlaneseq }
 0x769   : > { %v2340_v5 = vpop.xlane.xlu1 %2339 }
 0x76a   : > { %v2365_v8 = vmul.f32 0.00390625, %v2340_v5  ;;  %v2422_v37 = vmul.f32 %v5844_v0, %v5844_v0  ;;  %v2423_v26 = vmul.f32 %v5847_v21, %v5847_v21  ;;  %2462 = vadd.xlane.f32.xlu1 %v2461_v45  ;;  %v2565_v45 = vshrl.u32 %v2564_v15, 7 }
 0x76c   : > { %v5850_v19 = vsub.f32 %v5711_v63, %v2365_v8  ;;  %v5853_v30 = vsub.f32 %v5713_v49, %v2365_v8  ;;  %v2464_v43 = vadd.f32 %v2423_v26, %v2422_v37 }
 0x76d   : > { %v2343_v46 = vpop.xlane.xlu0 %2342 }
 0x76e   : > { %v2366_v50 = vmul.f32 0.00390625, %v2343_v46  ;;  %v2424_v63 = vmul.f32 %v5850_v19, %v5850_v19  ;;  %v2425_v49 = vmul.f32 %v5853_v30, %v5853_v30  ;;  %2465 = vadd.xlane.f32.xlu0 %v2464_v43 }
 0x770   : > { %v5864_v52 = vsub.f32 %v5719_v17, %v2366_v50  ;;  %v5867_v55 = vsub.f32 %v5721_v41, %v2366_v50  ;;  %v2467_v25 = vadd.f32 %v2425_v49, %v2424_v63 }
 0x771   : > { %v2346_v42 = vpop.xlane.xlu1 %2345 }
 0x772   : > { %v2367_v23 = vmul.f32 0.00390625, %v2346_v42  ;;  %v2426_v17 = vmul.f32 %v5864_v52, %v5864_v52  ;;  %v2427_v41 = vmul.f32 %v5867_v55, %v5867_v55  ;;  %2468 = vadd.xlane.f32.xlu1 %v2467_v25 }
 0x774   : > { %v5870_v28 = vsub.f32 %v5723_v1, %v2367_v23  ;;  %v5873_v59 = vsub.f32 %v5725_v39, %v2367_v23  ;;  %v2470_v57 = vadd.f32 %v2427_v41, %v2426_v17 }
 0x775   : > { %v2349_v13 = vpop.xlane.xlu0 %2348 }
 0x776   : > { %v2368_v18 = vmul.f32 0.00390625, %v2349_v13  ;;  %v2428_v1 = vmul.f32 %v5870_v28, %v5870_v28  ;;  %v2429_v39 = vmul.f32 %v5873_v59, %v5873_v59  ;;  %2471 = vadd.xlane.f32.xlu0 %v2470_v57  ;;  %v2566_v13 = vsub.s32 0, %v2565_v45 }
 0x778   : > { %v5884_v56 = vsub.f32 %v5731_v44, %v2368_v18  ;;  %v5887_v58 = vsub.f32 %v5733_v61, %v2368_v18  ;;  %v2473_v5 = vadd.f32 %v2429_v39, %v2428_v1  ;;  %v2570_v18 = vsub.s32 1, %v2565_v45  ;;  %v2606_v1 = vld [vmem:[%s6338_s23] sm:$0x3] }
 0x779   : > { %v2352_v7 = vpop.xlane.xlu1 %2351 }
 0x77a   : > { %v2369_v27 = vmul.f32 0.00390625, %v2352_v7  ;;  %v2430_v11 = vmul.f32 %v5884_v56, %v5884_v56  ;;  %v2431_v44 = vmul.f32 %v5887_v58, %v5887_v58  ;;  %2474 = vadd.xlane.f32.xlu1 %v2473_v5  ;;  %v2562_v7 = vld [vmem:[%s6337_s1] sm:$0x3] }
 0x77b   : > { %v5909_v5 = vrot.slane %v2562_v7, %v2566_v13 }
 0x77c   : > { %v5890_v35 = vsub.f32 %v5735_v10, %v2369_v27  ;;  %v5893_v62 = vsub.f32 %v5737_v16, %v2369_v27  ;;  %v2476_v10 = vadd.f32 %v2431_v44, %v2430_v11  ;;  %v5911_v11 = vrot.slane %v2562_v7, %v2570_v18 }
 0x77e   : > { %v2432_v61 = vmul.f32 %v5890_v35, %v5890_v35  ;;  %v2433_v12 = vmul.f32 %v5893_v62, %v5893_v62  ;;  %2477 = vadd.xlane.f32.xlu0 %v2476_v10  ;;  %v5913_v10 = vrot.slane %v2606_v1, %v2566_v13 }
 0x780   : > { %v2479_v16 = vadd.f32 %v2433_v12, %v2432_v61 }
 0x782   : > { %2480 = vadd.xlane.f32.xlu1 %v2479_v16  ;;  %v5915_v16 = vrot.slane %v2606_v1, %v2570_v18 }
 0x7df   : > { %v2436_v22 = vpop.xlane.xlu0 %2435 }
 0x7e0   : > { %v2482_v8 = vmul.f32 0.00390625, %v2436_v22 }
 0x7e2   : > { %v2498_v9 = vadd.f32 1e-06, %v2482_v8 }
 0x7e3   : > { %v2442_v46 = vpop.xlane.xlu0 %2441 }
 0x7e4   : > { %3921 = vrsqrt.f32 %v2498_v9  ;;  %v2484_v42 = vmul.f32 0.00390625, %v2442_v46 }
 0x7e5   : > { %v2439_v48 = vpop.xlane.xlu1 %2438 }
 0x7e6   : > { %v2483_v50 = vmul.f32 0.00390625, %v2439_v48  ;;  %v2500_v26 = vadd.f32 1e-06, %v2484_v42 }
 0x7e8   : > { %v2499_v37 = vadd.f32 1e-06, %v2483_v50 }
 0x7e9   : > { %v2445_v23 = vpop.xlane.xlu1 %2444  ;;  %v2448_v63 = vpop.xlane.xlu0 %2447 }
 0x7ea   : > { %3923 = vrsqrt.f32 %v2499_v37  ;;  %v2485_v49 = vmul.f32 0.00390625, %v2445_v23  ;;  %v2486_v43 = vmul.f32 0.00390625, %v2448_v63 }
 0x7eb   : > { %3925 = vrsqrt.f32 %v2500_v26 }
 0x7ec   : > { %v2501_v25 = vadd.f32 1e-06, %v2485_v49  ;;  %v2502_v17 = vadd.f32 1e-06, %v2486_v43 }
 0x7ed   : > { %v2451_v41 = vpop.xlane.xlu1 %2450  ;;  %v2454_v27 = vpop.xlane.xlu0 %2453 }
 0x7ee   : > { %3927 = vrsqrt.f32 %v2501_v25  ;;  %v2487_v39 = vmul.f32 0.00390625, %v2451_v41  ;;  %v2488_v57 = vmul.f32 0.00390625, %v2454_v27  ;;  %v3922_v44 = vpop.eup %3921 }
 0x7ef   : > { %3929 = vrsqrt.f32 %v2502_v17  ;;  %v2530_v22 = vmul.f32 %v3922_v44, %v5744_v54  ;;  %v2531_v8 = vmul.f32 %v3922_v44, %v5747_v53 }
 0x7f0   : > { %v2503_v61 = vadd.f32 1e-06, %v2487_v39  ;;  %v2504_v12 = vadd.f32 1e-06, %v2488_v57 }
 0x7f1   : > { %v2457_v15 = vpop.xlane.xlu1 %2456  ;;  %v2574_v50 = vmul.f32 %v5909_v5, %v2530_v22  ;;  %v2575_v42 = vmul.f32 %v5911_v11, %v2531_v8 }
 0x7f2   : > { %3931 = vrsqrt.f32 %v2503_v61  ;;  %v2489_v48 = vmul.f32 0.00390625, %v2457_v15 }
 0x7f3   : > { %v2460_v9 = vpop.xlane.xlu0 %2459  ;;  %3933 = vrsqrt.f32 %v2504_v12  ;;  %v2618_v54 = vadd.f32 %v5913_v10, %v2574_v50  ;;  %v2619_v53 = vadd.f32 %v5915_v16, %v2575_v42 }
 0x7f4   : > { %v2490_v46 = vmul.f32 0.00390625, %v2460_v9  ;;  %v3924_v45 = vpop.eup %3923  ;;  %v2505_v37 = vadd.f32 1e-06, %v2489_v48 }
 0x7f5   : > { %v3926_v23 = vpop.eup %3925  ;;  %v2532_v63 = vmul.f32 %v3924_v45, %v5764_v51  ;;  %v2533_v49 = vmul.f32 %v3924_v45, %v5767_v29  ;;  %2650 = vst [vmem:[%s5544_s6] sm:$0xff] %v2618_v54  ;;  %2651 = vst [vmem:[%s5544_s6 + $0x8] sm:$0xff] %v2619_v53 }
 0x7f6   : > { %v2506_v26 = vadd.f32 1e-06, %v2490_v46  ;;  %v2534_v18 = vmul.f32 %v3926_v23, %v5750_v47  ;;  %v2535_v7 = vmul.f32 %v3926_v23, %v5753_v40  ;;  %3935 = vrsqrt.f32 %v2505_v37 }
 0x7f7   : > { %v2463_v43 = vpop.xlane.xlu1 %2462  ;;  %v2576_v17 = vmul.f32 %v5909_v5, %v2532_v63  ;;  %v2577_v41 = vmul.f32 %v5911_v11, %v2533_v49 }
 0x7f8   : > { %v2491_v25 = vmul.f32 0.00390625, %v2463_v43  ;;  %3937 = vrsqrt.f32 %v2506_v26  ;;  %v3928_v51 = vpop.eup %3927  ;;  %v2578_v29 = vmul.f32 %v5909_v5, %v2534_v18  ;;  %v2579_v1 = vmul.f32 %v5911_v11, %v2535_v7 }
 0x7f9   : > { %v3930_v39 = vpop.eup %3929  ;;  %v2620_v40 = vadd.f32 %v5913_v10, %v2576_v17  ;;  %v2621_v57 = vadd.f32 %v5915_v16, %v2577_v41  ;;  %v2536_v44 = vmul.f32 %v3928_v51, %v5770_v4  ;;  %v2537_v61 = vmul.f32 %v3928_v51, %v5773_v3 }
 0x7fa   : > { %v2507_v47 = vadd.f32 1e-06, %v2491_v25  ;;  %v2622_v8 = vadd.f32 %v5913_v10, %v2578_v29  ;;  %v2623_v15 = vadd.f32 %v5915_v16, %v2579_v1  ;;  %v2538_v9 = vmul.f32 %v3930_v39, %v5784_v24 }
 0x7fb   : > { %v2466_v13 = vpop.xlane.xlu0 %2465  ;;  %v2539_v48 = vmul.f32 %v3930_v39, %v5787_v2  ;;  %2652 = vst [vmem:[%s5544_s6 + $0x10] sm:$0xff] %v2620_v40  ;;  %2653 = vst [vmem:[%s5544_s6 + $0x18] sm:$0xff] %v2621_v57  ;;  %v2580_v46 = vmul.f32 %v5909_v5, %v2536_v44  ;;  %v2581_v50 = vmul.f32 %v5911_v11, %v2537_v61 }
 0x7fc   : > { %v2492_v27 = vmul.f32 0.00390625, %v2466_v13  ;;  %3939 = vrsqrt.f32 %v2507_v47  ;;  %v3932_v42 = vpop.eup %3931  ;;  %2654 = vst [vmem:[%s5544_s6 + $0x20] sm:$0xff] %v2622_v8  ;;  %2655 = vst [vmem:[%s5544_s6 + $0x28] sm:$0xff] %v2623_v15  ;;  %v2582_v3 = vmul.f32 %v5909_v5, %v2538_v9 }
 0x7fd   : > { %v2583_v45 = vmul.f32 %v5911_v11, %v2539_v48  ;;  %v3934_v2 = vpop.eup %3933  ;;  %v2624_v26 = vadd.f32 %v5913_v10, %v2580_v46  ;;  %v2625_v23 = vadd.f32 %v5915_v16, %v2581_v50  ;;  %v2540_v54 = vmul.f32 %v3932_v42, %v5790_v6 }
 0x7fe   : > { %v2508_v4 = vadd.f32 1e-06, %v2492_v27  ;;  %v2541_v53 = vmul.f32 %v3932_v42, %v5793_v60  ;;  %v2626_v49 = vadd.f32 %v5913_v10, %v2582_v3  ;;  %v2542_v13 = vmul.f32 %v3934_v2, %v5804_v33 }
 0x7ff   : > { %v2469_v12 = vpop.xlane.xlu1 %2468  ;;  %v2627_v43 = vadd.f32 %v5915_v16, %v2583_v45  ;;  %v2543_v18 = vmul.f32 %v3934_v2, %v5807_v36  ;;  %2656 = vst [vmem:[%s5544_s6 + $0x30] sm:$0xff] %v2624_v26  ;;  %2657 = vst [vmem:[%s5544_s6 + $0x38] sm:$0xff] %v2625_v23  ;;  %v2584_v7 = vmul.f32 %v5909_v5, %v2540_v54 }
 0x800   : > { %v2493_v24 = vmul.f32 0.00390625, %v2469_v12  ;;  %v2585_v25 = vmul.f32 %v5911_v11, %v2541_v53  ;;  %3941 = vrsqrt.f32 %v2508_v4  ;;  %v3936_v6 = vpop.eup %3935  ;;  %2658 = vst [vmem:[%s5544_s6 + $0x40] sm:$0xff] %v2626_v49  ;;  %v2586_v60 = vmul.f32 %v5909_v5, %v2542_v13 }
 0x801   : > { %2659 = vst [vmem:[%s5544_s6 + $0x48] sm:$0xff] %v2627_v43  ;;  %v2587_v41 = vmul.f32 %v5911_v11, %v2543_v18  ;;  %v2628_v51 = vadd.f32 %v5913_v10, %v2584_v7  ;;  %v2544_v1 = vmul.f32 %v3936_v6, %v5810_v31  ;;  %v2545_v47 = vmul.f32 %v3936_v6, %v5813_v34 }
 0x802   : > { %v2509_v17 = vadd.f32 1e-06, %v2493_v24  ;;  %v3938_v36 = vpop.eup %3937  ;;  %v2629_v29 = vadd.f32 %v5915_v16, %v2585_v25  ;;  %v2630_v40 = vadd.f32 %v5913_v10, %v2586_v60 }
 0x803   : > { %v2472_v22 = vpop.xlane.xlu0 %2471  ;;  %v2631_v57 = vadd.f32 %v5915_v16, %v2587_v41  ;;  %v2546_v44 = vmul.f32 %v3938_v36, %v5824_v20  ;;  %v2547_v61 = vmul.f32 %v3938_v36, %v5827_v38  ;;  %2660 = vst [vmem:[%s5544_s6 + $0x50] sm:$0xff] %v2628_v51  ;;  %v2589_v8 = vmul.f32 %v5911_v11, %v2545_v47 }
 0x804   : > { %v2494_v37 = vmul.f32 0.00390625, %v2472_v22  ;;  %2661 = vst [vmem:[%s5544_s6 + $0x58] sm:$0xff] %v2629_v29  ;;  %v2588_v22 = vmul.f32 %v5909_v5, %v2544_v1  ;;  %3943 = vrsqrt.f32 %v2509_v17  ;;  %2662 = vst [vmem:[%s5544_s6 + $0x60] sm:$0xff] %v2630_v40 }
 0x805   : > { %2663 = vst [vmem:[%s5544_s6 + $0x68] sm:$0xff] %v2631_v57  ;;  %v2590_v34 = vmul.f32 %v5909_v5, %v2546_v44  ;;  %v2591_v15 = vmul.f32 %v5911_v11, %v2547_v61  ;;  %v2633_v48 = vadd.f32 %v5915_v16, %v2589_v8 }
 0x806   : > { %v2510_v33 = vadd.f32 1e-06, %v2494_v37  ;;  %v3940_v38 = vpop.eup %3939  ;;  %v2632_v9 = vadd.f32 %v5913_v10, %v2588_v22 }
 0x807   : > { %v2475_v63 = vpop.xlane.xlu1 %2474  ;;  %v2634_v50 = vadd.f32 %v5913_v10, %v2590_v34  ;;  %v2635_v4 = vadd.f32 %v5915_v16, %v2591_v15  ;;  %v2548_v42 = vmul.f32 %v3940_v38, %v5830_v14  ;;  %v2549_v3 = vmul.f32 %v3940_v38, %v5833_v32  ;;  %2665 = vst [vmem:[%s5544_s6 + $0x78] sm:$0xff] %v2633_v48 }
 0x808   : > { %v2495_v27 = vmul.f32 0.00390625, %v2475_v63  ;;  %3945 = vrsqrt.f32 %v2510_v33  ;;  %2664 = vst [vmem:[%s5544_s6 + $0x70] sm:$0xff] %v2632_v9 }
 0x809   : > { %2666 = vst [vmem:[%s5544_s6 + $0x80] sm:$0xff] %v2634_v50  ;;  %2667 = vst [vmem:[%s5544_s6 + $0x88] sm:$0xff] %v2635_v4  ;;  %v2592_v37 = vmul.f32 %v5909_v5, %v2548_v42  ;;  %v2593_v2 = vmul.f32 %v5911_v11, %v2549_v3 }
 0x80a   : > { %v2511_v31 = vadd.f32 1e-06, %v2495_v27  ;;  %v3942_v26 = vpop.eup %3941 }
 0x80b   : > { %v2478_v39 = vpop.xlane.xlu0 %2477  ;;  %v2636_v23 = vadd.f32 %v5913_v10, %v2592_v37  ;;  %v2637_v14 = vadd.f32 %v5915_v16, %v2593_v2  ;;  %v2550_v32 = vmul.f32 %v3942_v26, %v5844_v0  ;;  %v2551_v54 = vmul.f32 %v3942_v26, %v5847_v21 }
 0x80c   : > { %v2496_v20 = vmul.f32 0.00390625, %v2478_v39  ;;  %3947 = vrsqrt.f32 %v2511_v31 }
 0x80d   : > { %2668 = vst [vmem:[%s5544_s6 + $0x90] sm:$0xff] %v2636_v23  ;;  %2669 = vst [vmem:[%s5544_s6 + $0x98] sm:$0xff] %v2637_v14  ;;  %v2594_v53 = vmul.f32 %v5909_v5, %v2550_v32  ;;  %v2595_v63 = vmul.f32 %v5911_v11, %v2551_v54 }
 0x80e   : > { %v2512_v45 = vadd.f32 1e-06, %v2496_v20  ;;  %v3944_v49 = vpop.eup %3943 }
 0x80f   : > { %v2481_v12 = vpop.xlane.xlu1 %2480  ;;  %v2638_v13 = vadd.f32 %v5913_v10, %v2594_v53  ;;  %v2639_v18 = vadd.f32 %v5915_v16, %v2595_v63  ;;  %v2552_v7 = vmul.f32 %v3944_v49, %v5850_v19  ;;  %v2553_v0 = vmul.f32 %v3944_v49, %v5853_v30 }
 0x810   : > { %v2497_v46 = vmul.f32 0.00390625, %v2481_v12  ;;  %3949 = vrsqrt.f32 %v2512_v45 }
 0x811   : > { %2670 = vst [vmem:[%s5544_s6 + $0xa0] sm:$0xff] %v2638_v13  ;;  %2671 = vst [vmem:[%s5544_s6 + $0xa8] sm:$0xff] %v2639_v18  ;;  %v2596_v6 = vmul.f32 %v5909_v5, %v2552_v7  ;;  %v2597_v60 = vmul.f32 %v5911_v11, %v2553_v0 }
 0x812   : > { %v2513_v24 = vadd.f32 1e-06, %v2497_v46  ;;  %v3946_v43 = vpop.eup %3945 }
 0x813   : > { %v2554_v21 = vmul.f32 %v3946_v43, %v5864_v52  ;;  %v2555_v17 = vmul.f32 %v3946_v43, %v5867_v55  ;;  %v2640_v52 = vadd.f32 %v5913_v10, %v2596_v6  ;;  %v2641_v55 = vadd.f32 %v5915_v16, %v2597_v60 }
 0x814   : > { %3951 = vrsqrt.f32 %v2513_v24 }
 0x815   : > { %v2598_v19 = vmul.f32 %v5909_v5, %v2554_v21  ;;  %v2599_v30 = vmul.f32 %v5911_v11, %v2555_v17  ;;  %2672 = vst [vmem:[%s5544_s6 + $0xb0] sm:$0xff] %v2640_v52  ;;  %2673 = vst [vmem:[%s5544_s6 + $0xb8] sm:$0xff] %v2641_v55 }
 0x816   : > { %v3948_v25 = vpop.eup %3947 }
 0x817   : > { %v2556_v41 = vmul.f32 %v3948_v25, %v5870_v28  ;;  %v2557_v33 = vmul.f32 %v3948_v25, %v5873_v59  ;;  %v2642_v28 = vadd.f32 %v5913_v10, %v2598_v19  ;;  %v2643_v59 = vadd.f32 %v5915_v16, %v2599_v30 }
 0x819   : > { %v2600_v27 = vmul.f32 %v5909_v5, %v2556_v41  ;;  %v2601_v36 = vmul.f32 %v5911_v11, %v2557_v33  ;;  %2674 = vst [vmem:[%s5544_s6 + $0xc0] sm:$0xff] %v2642_v28  ;;  %2675 = vst [vmem:[%s5544_s6 + $0xc8] sm:$0xff] %v2643_v59 }
 0x81a   : > { %v3950_v51 = vpop.eup %3949 }
 0x81b   : > { %v2644_v29 = vadd.f32 %v5913_v10, %v2600_v27  ;;  %v2645_v1 = vadd.f32 %v5915_v16, %v2601_v36  ;;  %v2558_v47 = vmul.f32 %v3950_v51, %v5884_v56  ;;  %v2559_v39 = vmul.f32 %v3950_v51, %v5887_v58 }
 0x81d   : > { %2676 = vst [vmem:[%s5544_s6 + $0xd0] sm:$0xff] %v2644_v29  ;;  %2677 = vst [vmem:[%s5544_s6 + $0xd8] sm:$0xff] %v2645_v1  ;;  %v2602_v57 = vmul.f32 %v5909_v5, %v2558_v47  ;;  %v2603_v44 = vmul.f32 %v5911_v11, %v2559_v39 }
 0x81e   : > { %v3952_v40 = vpop.eup %3951 }
 0x81f   : > { %v2560_v61 = vmul.f32 %v3952_v40, %v5890_v35  ;;  %v2561_v12 = vmul.f32 %v3952_v40, %v5893_v62  ;;  %v2646_v56 = vadd.f32 %v5913_v10, %v2602_v57  ;;  %v2647_v22 = vadd.f32 %v5915_v16, %v2603_v44 }
 0x821   : > { %v2604_v58 = vmul.f32 %v5909_v5, %v2560_v61  ;;  %v2605_v8 = vmul.f32 %v5911_v11, %v2561_v12  ;;  %2678 = vst [vmem:[%s5544_s6 + $0xe0] sm:$0xff] %v2646_v56  ;;  %2679 = vst [vmem:[%s5544_s6 + $0xe8] sm:$0xff] %v2647_v22 }
 0x823   : > { %v2648_v31 = vadd.f32 %v5913_v10, %v2604_v58  ;;  %v2649_v34 = vadd.f32 %v5915_v16, %v2605_v8 }
 0x825   : > { %2680 = vst [vmem:[%s5544_s6 + $0xf0] sm:$0xff] %v2648_v31  ;;  %2681 = vst [vmem:[%s5544_s6 + $0xf8] sm:$0xff] %v2649_v34 }
 0x826 PF: > { %s6339_s22 = sld [smem:[#allocation30_spill]]  ;;  %s6340_s17 = sld [smem:[#allocation34_spill]] }
 0x827   : > { %s6341_s29 = sld [smem:[#allocation61_spill]]  ;;  %s2704_s14 = sshll.u32 %s5544_s6, 4  ;;  %s6052_s14 = int_to_ptr.vmem [resolvable:$true] %s2704_s14 }
 0x828   : > { %s2683_s19 = scalar_lea.sflag [#allocation5], %s4912_s30  ;;  %s4163_s3 = scalar_lea.vmem %s6052_s14, 4096 }
 0x829   : > { %p4164_p5 = scmp.ne.s32.totalorder %s6052_s14, %s4163_s3  ;;  %s4367_s12 = smov [#allocation15]  }
 0x82a   : > { %s4167_s5 = sshll.u32 %s4367_s12, 4  ;;  %s4168_s5 = int_to_ptr.vmem [resolvable:$false] %s4167_s5 }
 0x82b   : > { %s4169_s1 = scalar_lea.vmem %s4168_s5, 8192  ;;  %p4170_p7 = scmp.lt.s32.totalorder %s6052_s14, %s4168_s5 }
 0x82c   : > { %s3062_s11 = sshll.u32 %s6339_s22, 12  ;;  %p6343_p2 = scmp.ne.s32.totalorder %s6340_s17, 0 }
 0x82d   : > { %s6342_s9 = smov %s6341_s29  ;;  %s6049_s27 = scalar_lea.hbm %s6341_s29, %s3062_s11 }
 0x82e   : > { %p4165_p3 = pnand %p4164_p5, %p6343_p2  ;;  %p4171_p8 = scmp.lt.s32.totalorder %s4169_s1, %s4163_s3 }
 0x830   : > { %p4166_p10 = pneg %p4165_p3  ;;  %p4172_p13 = por %p4171_p8, %p4170_p7 }
 0x832   : > { %p4173_p4 = pnand %p4172_p13, %p4166_p10 }
 0x834   : > { %4176 = shalt.err (!%p4173_p4)
}
 0x835   : > { %s4177_s6 = scalar_lea.hbm %s6049_s27, 4096  ;;  %s4181_s23 = scalar_lea.hbm %s6342_s9, 8192 }
 0x836   : > { %p4178_p1 = scmp.ne.s32.totalorder %s6049_s27, %s4177_s6  ;;  %p4182_p12 = scmp.lt.u32.totalorder %s6049_s27, %s6342_s9 }
 0x837   : > { %p4183_p9 = scmp.lt.u32.totalorder %s4181_s23, %s4177_s6  ;;  %p4185_p5 = scmp.lt.u32.totalorder %s4177_s6, %s6049_s27 }
 0x838   : > { %p4179_p6 = pnand %p4178_p1, %p6343_p2 }
 0x839   : > { %p4184_p0 = por %p4183_p9, %p4182_p12 }
 0x83a   : > { %p4180_p11 = pneg %p4179_p6 }
 0x83b   : > { %p4186_p3 = por %p4185_p5, %p4184_p0 }
 0x83d   : > { %p4187_p10 = pnand %p4186_p3, %p4180_p11 }
 0x83f   : > { %4190 = shalt.err (!%p4187_p10)
}
 0x840   : > { %s4368_s4 = smov 256   ;;  %s6344_s29 = sld [smem:[#allocation29_spill]] }
 0x841   : > { %s6345_s3 = sld [smem:[#allocation25_spill]]  ;;  %s4369_s5 = smov 16  }
 0x842   : > { %s6346_s12 = sld [smem:[#allocation36_spill]]  ;;  %s3053_s7 = sshll.u32 %s6339_s22, 5 }
 0x843   : > { %3701 = dma.vmem_to_hbm [thread:$0]  (%p6343_p2), %s6052_s14, 4096, %s6049_s27, %s2683_s19, %s4368_s4, %s4368_s4, %s4369_s5  }
 0x844   : > { %s2724_s13 = sshll.u32 %s5475_s10, 4  ;;  %s6347_s20 = sld [smem:[#allocation62_spill]]  ;;  %s6081_s13 = int_to_ptr.vmem [resolvable:$true] %s2724_s13 }
 0x845   : > { %s4191_s30 = scalar_lea.vmem %s6081_s13, 2048  ;;  %s4370_s10 = smov [#allocation16]  }
 0x846   : > { %s3052_s1 = sshll.u32 %s6344_s29, 4  ;;  %p4192_p2 = scmp.ne.s32.totalorder %s6081_s13, %s4191_s30 }
 0x847   : > { %s2721_s6 = sadd.s32 %s3053_s7, %s3052_s1  ;;  %s6349_s8 = sand.u32 1, %s6345_s3  }
 0x848   : > { %s3054_s23 = sshll.u32 %s2721_s6, 7  ;;  %s6090_s9 = scalar_lea.sflag [#allocation17], %s6349_s8 }
 0x849   : > { %p6350_p7 = scmp.ne.s32.totalorder %s6346_s12, 0  ;;  %s4195_s22 = sshll.u32 %s4370_s10, 4  ;;  %s4196_s22 = int_to_ptr.vmem [resolvable:$false] %s4195_s22 }
 0x84a   : > { %s6348_s0 = smov %s6347_s20  ;;  %s6086_s2 = scalar_lea.hbm %s6347_s20, %s3054_s23 }
 0x84b   : > { %p4193_p8 = pnand %p4192_p2, %p6350_p7  ;;  %s4197_s17 = scalar_lea.vmem %s4196_s22, 4096 }
 0x84c   : > { %p4198_p4 = scmp.lt.s32.totalorder %s6081_s13, %s4196_s22  ;;  %p4199_p1 = scmp.lt.s32.totalorder %s4197_s17, %s4191_s30 }
 0x84d   : > { %p4194_p13 = pneg %p4193_p8 }
 0x84e   : > { %p4200_p6 = por %p4199_p1, %p4198_p4 }
 0x850   : > { %p4201_p11 = pnand %p4200_p6, %p4194_p13 }
 0x852   : > { %4204 = shalt.err (!%p4201_p11)
}
 0x853   : > { %s4205_s8 = scalar_lea.hbm %s6086_s2, 2048  ;;  %s4209_s14 = scalar_lea.hbm %s6348_s0, 8192 }
 0x854   : > { %p4206_p12 = scmp.ne.s32.totalorder %s6086_s2, %s4205_s8  ;;  %p4210_p5 = scmp.lt.u32.totalorder %s6086_s2, %s6348_s0 }
 0x855   : > { %p4211_p3 = scmp.lt.u32.totalorder %s4209_s14, %s4205_s8  ;;  %p4213_p2 = scmp.lt.u32.totalorder %s4205_s8, %s6086_s2 }
 0x856   : > { %p4207_p9 = pnand %p4206_p12, %p6350_p7 }
 0x857   : > { %p4212_p10 = por %p4211_p3, %p4210_p5 }
 0x858   : > { %p4208_p0 = pneg %p4207_p9 }
 0x859   : > { %p4214_p8 = por %p4213_p2, %p4212_p10 }
 0x85b   : > { %p4215_p13 = pnand %p4214_p8, %p4208_p0 }
 0x85d   : > { %4218 = shalt.err (!%p4215_p13)
}
 0x85e   : > { %s4371_s29 = smov 128   ;;  %s4372_s3 = smov 8  }
 0x85f   : > { %3702 = dma.vmem_to_hbm [thread:$0]  (%p6350_p7), %s6081_s13, 2048, %s6086_s2, %s6090_s9, %s4371_s29, %s4371_s29, %s4372_s3  }
 0x860 PF: > { %s6351_s5 = sld [smem:[#allocation27_spill]]  ;;  %s6352_s1 = sld [smem:[#allocation35_spill]] }
 0x861   : > { %p3735_p4 = scmp.ge.s32.totalorder %s4353_s26, 2 }
 0x866   : > { %s2739_s7 = sand.u32 1, %s6351_s5   ;;  %p6353_p1 = scmp.ne.s32.totalorder %s6352_s1, 0 }
 0x867   : > { %s2740_s6 = scalar_lea.sflag [#allocation5], %s2739_s7 }
 0x868   : > { %p3728_p6 = pnand %p3735_p4, %p6353_p1 }
 0x86a   : > { %4292 = dma.done.wait (!%p3728_p6), %s2740_s6, 4096  }
 0x86b   : > { %4294 = vsyncadd (!%p3728_p6), %s2740_s6, 4294963200  ;;  %s6354_s23 = sld [smem:[#allocation24_spill]]  ;;  %s6355_s11 = sld [smem:[#allocation37_spill]] }
 0x871   : > { %s2748_s25 = sand.u32 1, %s6354_s23   ;;  %p6356_p11 = scmp.ne.s32.totalorder %s6355_s11, 0 }
 0x872   : > { %s2749_s30 = scalar_lea.sflag [#allocation17], %s2748_s25 }
 0x873   : > { %p3731_p12 = pnand %p3735_p4, %p6356_p11 }
 0x875   : > { %4296 = dma.done.wait (!%p3731_p12), %s2749_s30, 2048  }
 0x876   : > { %4298 = vsyncadd (!%p3731_p12), %s2749_s30, 4294965248  ;;  %s43_s26 = sadd.s32 1, %s4353_s26   ;;  %s6358_s29 = sld [smem:[#allocation25_spill]] }
 0x877   : > { %p6122_p7 = scmp.ge.s32.totalorder %s43_s26, 6   ;;  %s6359_s9 = sld [smem:[#allocation26_spill]] }
 0x878   : > { %s6360_s12 = sld [smem:[#allocation42_spill]]  ;;  %s6361_s19 = sld [smem:[#allocation28_spill]] }
 0x879   : > { %s6362_s13 = sld [smem:[#allocation43_spill]]  ;;  %s6363_s23 = sld [smem:[#allocation31_spill]] }
 0x87a   : > { %s6364_s10 = sld [smem:[#allocation39_spill]]  ;;  %s6365_s25 = sld [smem:[#allocation41_spill]] }
 0x87b   : > { %s6366_s30 = smov %s4309_s15  ;;  %s6367_s15 = smov %s4675_s16 }
 0x87c   : > { %s6369_s17 = smov %s4321_s18  ;;  %s6371_s20 = smov %s4333_s21 }
 0x87d   : > { %s6368_s16 = smov %s6359_s9  ;;  %s6373_s22 = smov %s4345_s24 }
 0x87e   : > { %s6370_s18 = smov %s6360_s12  ;;  %42 = sbr.rel (!%p6122_p7) target bundleno = 34 (0x22), region = 223 }
 0x87f   : > { %s6372_s21 = smov %s6362_s13 }
 0x880   : > { %s6374_s24 = smov %s6364_s10 }
 0x885   :  { %2754 = vsyncpa [#allocation4], 1 }
 0x886   :  { %2756 = vsyncpa [#allocation4 + $0x1], 1 }
 0x887   :  { %2757 = vsyncpa [#allocation7], 1 }
 0x888   :  { %2759 = vsyncpa [#allocation7 + $0x1], 1 }
 0x889   :  { %2760 = vsyncpa [#allocation10], 1 }
 0x88a   :  { %2762 = vsyncpa [#allocation10 + $0x1], 1 }
 0x88b   :  { %2763 = vsyncpa [#allocation13], 1 }
 0x88c   :  { %2765 = vsyncpa [#allocation13 + $0x1], 1 }
 0x88d   :  { %2766 = vsyncpa [#allocation5], 1 }
 0x88e   :  { %2768 = vsyncpa [#allocation5 + $0x1], 1 }
 0x88f   :  { %2769 = vsyncpa [#allocation17], 1 }
 0x890   :  { %2771 = vsyncpa [#allocation17 + $0x1], 1 }

</bundles_post_ra>
